<compile_context>
chip_gen: v7x
topology: tpu7x:2x2x1
jax: 0.10.0
libtpu: 0.0.40
codegen_flags: <defaults>
</compile_context>

<pallas_src>
from functools import partial

import jax
import jax.numpy as jnp
from jax import lax
from jax.experimental import pallas as pl
from jax.experimental.pallas import tpu as pltpu


def attention2d_kernel(x_ref, a_ref, p_ref, mask_ref, b_ref, o_ref, *, num_heads):
    # x_ref   : (M, C)   stacked tokens of `bb` windows, M = bb * N   (bf16)
    # a_ref   : (H, C, C)  A_h = scale * Wq_h @ Wk_h^T                (bf16)
    # p_ref   : (H, C, D)  P_h = Wv_h @ Wproj_rows_h                  (bf16)
    # mask_ref: (M, M)   block-diagonal additive mask (0 / -1e30)     (f32)
    # b_ref   : (1, D)   proj bias                                    (f32)
    # o_ref   : (M, D)
    x = x_ref[...]
    mask = mask_ref[...]
    m_rows = x.shape[0]
    d_out = p_ref.shape[2]

    def head_body(h, acc):
        # (M, C) @ (C, C) -> (M, C); MXU contraction K = C.
        xa = jnp.dot(x, a_ref[h], preferred_element_type=jnp.float32)
        # scores: contract the channel axis of both operands -> (M, M); K = C.
        # scale is already folded into A_h.
        s = lax.dot_general(xa.astype(x.dtype), x,
                            dimension_numbers=(((1,), (1,)), ((), ())),
                            preferred_element_type=jnp.float32)
        # keep attention window-local (cross-window entries -> ~0 after exp)
        s = s + mask
        # softmax in f32; reciprocal goes to the otherwise idle EUP slot.
        s = s - jnp.max(s, axis=-1, keepdims=True)
        e = jnp.exp(s)
        probs = e * pl.reciprocal(jnp.sum(e, axis=-1, keepdims=True), approx=True)
        # value path with the output projection pre-folded: (M, C) @ (C, D); K = C.
        xp = jnp.dot(x, p_ref[h], preferred_element_type=jnp.float32)
        # (M, M) @ (M, D) -> (M, D); K = M.  Per-head accumulate in f32.
        return acc + jnp.dot(probs.astype(x.dtype), xp.astype(x.dtype),
                             preferred_element_type=jnp.float32)

    acc = lax.fori_loop(0, num_heads, head_body,
                        jnp.zeros((m_rows, d_out), jnp.float32), unroll=True)
    # NOTE: D = 32 < 128 lanes -> masked partial stores; out_dim is fixed by
    # the module config so we accept the narrow output slab.
    o_ref[...] = (acc + b_ref[...].astype(jnp.float32)).astype(o_ref.dtype)


def attention2d(x_nchw, wqkv, wproj, bproj, *, num_heads,
                compute_dtype=jnp.bfloat16, batch_block=None):
    """x_nchw: (B, C, H, W).  Returns (B, out_dim, H, W) matching the PyTorch module."""
    B, C, H, W = x_nchw.shape
    N = H * W
    D3 = wqkv.shape[1]
    D = D3 // 3
    hd = D // num_heads
    scale = hd ** (-0.5)

    # Fold the qkv / proj 1x1-conv weights per head (computed in f32 by XLA).
    wq = wqkv[:, 0 * D:1 * D]
    wk = wqkv[:, 1 * D:2 * D]
    wv = wqkv[:, 2 * D:3 * D]
    wq_h = wq.reshape(C, num_heads, hd).transpose(1, 0, 2)      # (h, C, hd)
    wk_h = wk.reshape(C, num_heads, hd).transpose(1, 0, 2)      # (h, C, hd)
    wv_h = wv.reshape(C, num_heads, hd).transpose(1, 0, 2)      # (h, C, hd)
    wp_h = wproj.reshape(num_heads, hd, D)                      # (h, hd, D)
    A = scale * jnp.einsum('hck,hdk->hcd', wq_h, wk_h)          # (h, C, C)
    P = jnp.einsum('hck,hkd->hcd', wv_h, wp_h)                  # (h, C, D)

    # Batch-block: stack ~128 token rows per grid step (bb windows of N tokens).
    if batch_block is None:
        batch_block = max(1, min(B, 128 // N))
    bb = batch_block
    assert N % 8 == 0 or (B == 1 and bb == 1), "token count must be sublane aligned"

    Bp = ((B + bb - 1) // bb) * bb                              # padded batch
    x_tokens = x_nchw.transpose(0, 2, 3, 1).reshape(B * N, C)   # channels-last tokens
    if Bp != B:
        x_tokens = jnp.pad(x_tokens, ((0, (Bp - B) * N), (0, 0)))

    M = bb * N
    blk = jnp.arange(M) // N
    mask = jnp.where(blk[:, None] == blk[None, :], 0.0, -1e30).astype(jnp.float32)

    x_in = x_tokens.astype(compute_dtype)
    A_in = A.astype(compute_dtype)
    P_in = P.astype(compute_dtype)
    b_in = bproj.astype(jnp.float32)

    kernel = partial(attention2d_kernel, num_heads=num_heads)

    out_tokens = pl.pallas_call(
        kernel,
        out_shape=jax.ShapeDtypeStruct((Bp * N, D), x_nchw.dtype),
        grid_spec=pltpu.PrefetchScalarGridSpec(
            num_scalar_prefetch=0,
            grid=(Bp // bb,),
            in_specs=[
                pl.BlockSpec((M, C), lambda i: (i, 0)),
                pl.BlockSpec((num_heads, C, C), lambda i: (0, 0, 0)),
                pl.BlockSpec((num_heads, C, D), lambda i: (0, 0, 0)),
                pl.BlockSpec((M, M), lambda i: (0, 0)),
                pl.BlockSpec((1, D), lambda i: (0, 0)),
            ],
            out_specs=pl.BlockSpec((M, D), lambda i: (i, 0)),
        ),
        compiler_params=pltpu.CompilerParams(
            dimension_semantics=("parallel",)),
    )(x_in, A_in, P_in, mask, b_in)

    out_tokens = out_tokens[:B * N]
    return out_tokens.reshape(B, H, W, D).transpose(0, 3, 1, 2)  # (B, D, H, W)


def attention2d_ref(x_nchw, wqkv, wproj, bproj, *, num_heads):
    """Pure-JAX f32 reference mirroring the PyTorch forward exactly."""
    B, C, H, W = x_nchw.shape
    N = H * W
    D = wqkv.shape[1] // 3
    hd = D // num_heads
    scale = hd ** (-0.5)
    x_flat = x_nchw.reshape(B, C, N)                               # (B, C, N)
    qkv = jnp.einsum('bcn,cd->bdn', x_flat, wqkv)                  # (B, 3D, N)
    qkv = qkv.reshape(B, 3, num_heads, hd, N).transpose(1, 0, 2, 4, 3)
    q, k, v = qkv[0], qkv[1], qkv[2]                               # (B, h, N, hd)
    attn = jnp.einsum('bhnd,bhmd->bhnm', q, k) * scale
    attn = jax.nn.softmax(attn, axis=-1)
    out = jnp.einsum('bhnm,bhmd->bhnd', attn, v)                   # (B, h, N, hd)
    out = out.transpose(0, 1, 3, 2).reshape(B, D, N)               # (B, D, N)
    out = jnp.einsum('bcn,cd->bdn', out, wproj) + bproj.reshape(1, D, 1)
    return out.reshape(B, D, H, W)


if __name__ == "__main__":
    # Module config: dim=32 (out_dim defaults to dim), num_heads=8 -> head_dim=4,
    # qkv_bias=False (default), proj has bias.  Input: B=2, C=32, H=W=8.
    dim = 32
    out_dim = dim
    num_heads = 8
    B, H, W = 2, 8, 8

    key = jax.random.PRNGKey(0)
    kx, kq, kp, kb = jax.random.split(key, 4)

    x = jax.random.normal(kx, (B, dim, H, W), dtype=jnp.float32)
    # qkv: Conv2d(dim, 3*out_dim, 1, bias=False) -> stored as (dim, 3*out_dim) for x @ W
    wqkv = jax.random.normal(kq, (dim, 3 * out_dim), dtype=jnp.float32) * 0.05
    # proj: Conv2d(out_dim, out_dim, 1, bias=True) -> stored as (out_dim, out_dim)
    wproj = jax.random.normal(kp, (out_dim, out_dim), dtype=jnp.float32) * 0.05
    bproj = jax.random.normal(kb, (1, out_dim), dtype=jnp.float32) * 0.05

    out = attention2d(x, wqkv, wproj, bproj, num_heads=num_heads)
    out = jax.block_until_ready(out)

    ref = attention2d_ref(x, wqkv, wproj, bproj, num_heads=num_heads)
    assert out.shape == (B, out_dim, H, W), out.shape
    max_err = float(jnp.max(jnp.abs(out - ref)))
    # bf16 matmul inputs + approx reciprocal -> loosened (but still tight) tolerance.
    assert jnp.allclose(out, ref, atol=1e-2, rtol=1e-2), max_err

    print("KERNEL_OK")
</pallas_src>

<mosaic_0001>
module attributes {stable_mosaic.version = 11 : i64} {
  func.func @attention2d_kernel(%arg0: i32, %arg1: memref<128x32xbf16, #tpu.memory_space<vmem>>, %arg2: memref<8x32x32xbf16, #tpu.memory_space<vmem>>, %arg3: memref<8x32x32xbf16, #tpu.memory_space<vmem>>, %arg4: memref<128x128xf32, #tpu.memory_space<vmem>>, %arg5: memref<1x32xf32, #tpu.memory_space<vmem>>, %arg6: memref<128x32xf32, #tpu.memory_space<vmem>>) attributes {dimension_semantics = [#tpu.dimension_semantics<parallel>], iteration_bounds = array<i64: 1>, scalar_prefetch = 0 : i64, scratch_operands = 0 : i64, tpu.core_type = #tpu.core_type<tc>, window_params = [{transform_indices = @transform_0, window_bounds = array<i64: 128, 32>}, {pipeline_mode = #tpu.pipeline_mode<synchronous>, transform_indices = @transform_1, window_bounds = array<i64: 8, 32, 32>}, {pipeline_mode = #tpu.pipeline_mode<synchronous>, transform_indices = @transform_2, window_bounds = array<i64: 8, 32, 32>}, {pipeline_mode = #tpu.pipeline_mode<synchronous>, transform_indices = @transform_3, window_bounds = array<i64: 128, 128>}, {pipeline_mode = #tpu.pipeline_mode<synchronous>, transform_indices = @transform_4, window_bounds = array<i64: 1, 32>}, {transform_indices = @transform_5, window_bounds = array<i64: 128, 32>}]} {
    %c0 = arith.constant 0 : index
    %c0_0 = arith.constant 0 : index
    %0 = vector.load %arg1[%c0, %c0_0] : memref<128x32xbf16, #tpu.memory_space<vmem>>, vector<128x32xbf16>
    %c0_1 = arith.constant 0 : index
    %c0_2 = arith.constant 0 : index
    %1 = vector.load %arg4[%c0_1, %c0_2] : memref<128x128xf32, #tpu.memory_space<vmem>>, vector<128x128xf32>
    %cst = arith.constant 0.000000e+00 : f32
    %2 = vector.broadcast %cst : f32 to vector<128x32xf32>
    %c0_i32 = arith.constant 0 : i32
    %3 = arith.index_cast %c0_i32 : i32 to index
    %c0_3 = arith.constant 0 : index
    %c0_4 = arith.constant 0 : index
    %4 = vector.load %arg2[%3, %c0_3, %c0_4] : memref<8x32x32xbf16, #tpu.memory_space<vmem>>, vector<1x32x32xbf16>
    %5 = vector.shape_cast %4 : vector<1x32x32xbf16> to vector<32x32xbf16>
    %cst_5 = arith.constant dense<0.000000e+00> : vector<128x32xf32>
    %6 = tpu.matmul %0, %5, %cst_5 {dimension_numbers = #tpu.dot_dimension_numbers<[1], [0], [0], [1], [0, 0, 1, 1], [], []>} : vector<128x32xbf16>, vector<32x32xbf16>, vector<128x32xf32> -> vector<128x32xf32>
    %7 = arith.truncf %6 : vector<128x32xf32> to vector<128x32xbf16>
    %cst_6 = arith.constant dense<0.000000e+00> : vector<128x128xf32>
    %8 = tpu.matmul %7, %0, %cst_6 {dimension_numbers = #tpu.dot_dimension_numbers<[1], [1], [0], [0], [0, 0, 1, 0], [], []>} : vector<128x32xbf16>, vector<128x32xbf16>, vector<128x128xf32> -> vector<128x128xf32>
    %9 = arith.addf %8, %1 : vector<128x128xf32>
    %cst_7 = arith.constant dense<0xFF800000> : vector<128xf32>
    %10 = vector.multi_reduction <maximumf>, %9, %cst_7 [1] : vector<128x128xf32> to vector<128xf32>
    %11 = vector.shape_cast %10 : vector<128xf32> to vector<128x1xf32>
    %12 = vector.broadcast %11 : vector<128x1xf32> to vector<128x128xf32>
    %13 = arith.subf %9, %12 : vector<128x128xf32>
    %14 = math.exp %13 : vector<128x128xf32>
    %cst_8 = arith.constant dense<0.000000e+00> : vector<128xf32>
    %15 = vector.multi_reduction <add>, %14, %cst_8 [1] : vector<128x128xf32> to vector<128xf32>
    %16 = vector.shape_cast %15 : vector<128xf32> to vector<128x1xf32>
    %17 = tpu.reciprocal %16 {approx = true} : vector<128x1xf32> -> vector<128x1xf32>
    %18 = vector.broadcast %17 : vector<128x1xf32> to vector<128x128xf32>
    %19 = arith.mulf %14, %18 : vector<128x128xf32>
    %20 = arith.index_cast %c0_i32 : i32 to index
    %c0_9 = arith.constant 0 : index
    %c0_10 = arith.constant 0 : index
    %21 = vector.load %arg3[%20, %c0_9, %c0_10] : memref<8x32x32xbf16, #tpu.memory_space<vmem>>, vector<1x32x32xbf16>
    %22 = vector.shape_cast %21 : vector<1x32x32xbf16> to vector<32x32xbf16>
    %cst_11 = arith.constant dense<0.000000e+00> : vector<128x32xf32>
    %23 = tpu.matmul %0, %22, %cst_11 {dimension_numbers = #tpu.dot_dimension_numbers<[1], [0], [0], [1], [0, 0, 1, 1], [], []>} : vector<128x32xbf16>, vector<32x32xbf16>, vector<128x32xf32> -> vector<128x32xf32>
    %24 = arith.truncf %19 : vector<128x128xf32> to vector<128x128xbf16>
    %25 = arith.truncf %23 : vector<128x32xf32> to vector<128x32xbf16>
    %cst_12 = arith.constant dense<0.000000e+00> : vector<128x32xf32>
    %26 = tpu.matmul %24, %25, %cst_12 {dimension_numbers = #tpu.dot_dimension_numbers<[1], [0], [0], [1], [0, 0, 1, 1], [], []>} : vector<128x128xbf16>, vector<128x32xbf16>, vector<128x32xf32> -> vector<128x32xf32>
    %27 = arith.addf %2, %26 : vector<128x32xf32>
    %c1_i32 = arith.constant 1 : i32
    %28 = arith.index_cast %c1_i32 : i32 to index
    %c0_13 = arith.constant 0 : index
    %c0_14 = arith.constant 0 : index
    %29 = vector.load %arg2[%28, %c0_13, %c0_14] : memref<8x32x32xbf16, #tpu.memory_space<vmem>>, vector<1x32x32xbf16>
    %30 = vector.shape_cast %29 : vector<1x32x32xbf16> to vector<32x32xbf16>
    %cst_15 = arith.constant dense<0.000000e+00> : vector<128x32xf32>
    %31 = tpu.matmul %0, %30, %cst_15 {dimension_numbers = #tpu.dot_dimension_numbers<[1], [0], [0], [1], [0, 0, 1, 1], [], []>} : vector<128x32xbf16>, vector<32x32xbf16>, vector<128x32xf32> -> vector<128x32xf32>
    %32 = arith.truncf %31 : vector<128x32xf32> to vector<128x32xbf16>
    %cst_16 = arith.constant dense<0.000000e+00> : vector<128x128xf32>
    %33 = tpu.matmul %32, %0, %cst_16 {dimension_numbers = #tpu.dot_dimension_numbers<[1], [1], [0], [0], [0, 0, 1, 0], [], []>} : vector<128x32xbf16>, vector<128x32xbf16>, vector<128x128xf32> -> vector<128x128xf32>
    %34 = arith.addf %33, %1 : vector<128x128xf32>
    %cst_17 = arith.constant dense<0xFF800000> : vector<128xf32>
    %35 = vector.multi_reduction <maximumf>, %34, %cst_17 [1] : vector<128x128xf32> to vector<128xf32>
    %36 = vector.shape_cast %35 : vector<128xf32> to vector<128x1xf32>
    %37 = vector.broadcast %36 : vector<128x1xf32> to vector<128x128xf32>
    %38 = arith.subf %34, %37 : vector<128x128xf32>
    %39 = math.exp %38 : vector<128x128xf32>
    %cst_18 = arith.constant dense<0.000000e+00> : vector<128xf32>
    %40 = vector.multi_reduction <add>, %39, %cst_18 [1] : vector<128x128xf32> to vector<128xf32>
    %41 = vector.shape_cast %40 : vector<128xf32> to vector<128x1xf32>
    %42 = tpu.reciprocal %41 {approx = true} : vector<128x1xf32> -> vector<128x1xf32>
    %43 = vector.broadcast %42 : vector<128x1xf32> to vector<128x128xf32>
    %44 = arith.mulf %39, %43 : vector<128x128xf32>
    %45 = arith.index_cast %c1_i32 : i32 to index
    %c0_19 = arith.constant 0 : index
    %c0_20 = arith.constant 0 : index
    %46 = vector.load %arg3[%45, %c0_19, %c0_20] : memref<8x32x32xbf16, #tpu.memory_space<vmem>>, vector<1x32x32xbf16>
    %47 = vector.shape_cast %46 : vector<1x32x32xbf16> to vector<32x32xbf16>
    %cst_21 = arith.constant dense<0.000000e+00> : vector<128x32xf32>
    %48 = tpu.matmul %0, %47, %cst_21 {dimension_numbers = #tpu.dot_dimension_numbers<[1], [0], [0], [1], [0, 0, 1, 1], [], []>} : vector<128x32xbf16>, vector<32x32xbf16>, vector<128x32xf32> -> vector<128x32xf32>
    %49 = arith.truncf %44 : vector<128x128xf32> to vector<128x128xbf16>
    %50 = arith.truncf %48 : vector<128x32xf32> to vector<128x32xbf16>
    %cst_22 = arith.constant dense<0.000000e+00> : vector<128x32xf32>
    %51 = tpu.matmul %49, %50, %cst_22 {dimension_numbers = #tpu.dot_dimension_numbers<[1], [0], [0], [1], [0, 0, 1, 1], [], []>} : vector<128x128xbf16>, vector<128x32xbf16>, vector<128x32xf32> -> vector<128x32xf32>
    %52 = arith.addf %27, %51 : vector<128x32xf32>
    %c2_i32 = arith.constant 2 : i32
    %53 = arith.index_cast %c2_i32 : i32 to index
    %c0_23 = arith.constant 0 : index
    %c0_24 = arith.constant 0 : index
    %54 = vector.load %arg2[%53, %c0_23, %c0_24] : memref<8x32x32xbf16, #tpu.memory_space<vmem>>, vector<1x32x32xbf16>
    %55 = vector.shape_cast %54 : vector<1x32x32xbf16> to vector<32x32xbf16>
    %cst_25 = arith.constant dense<0.000000e+00> : vector<128x32xf32>
    %56 = tpu.matmul %0, %55, %cst_25 {dimension_numbers = #tpu.dot_dimension_numbers<[1], [0], [0], [1], [0, 0, 1, 1], [], []>} : vector<128x32xbf16>, vector<32x32xbf16>, vector<128x32xf32> -> vector<128x32xf32>
    %57 = arith.truncf %56 : vector<128x32xf32> to vector<128x32xbf16>
    %cst_26 = arith.constant dense<0.000000e+00> : vector<128x128xf32>
    %58 = tpu.matmul %57, %0, %cst_26 {dimension_numbers = #tpu.dot_dimension_numbers<[1], [1], [0], [0], [0, 0, 1, 0], [], []>} : vector<128x32xbf16>, vector<128x32xbf16>, vector<128x128xf32> -> vector<128x128xf32>
    %59 = arith.addf %58, %1 : vector<128x128xf32>
    %cst_27 = arith.constant dense<0xFF800000> : vector<128xf32>
    %60 = vector.multi_reduction <maximumf>, %59, %cst_27 [1] : vector<128x128xf32> to vector<128xf32>
    %61 = vector.shape_cast %60 : vector<128xf32> to vector<128x1xf32>
    %62 = vector.broadcast %61 : vector<128x1xf32> to vector<128x128xf32>
    %63 = arith.subf %59, %62 : vector<128x128xf32>
    %64 = math.exp %63 : vector<128x128xf32>
    %cst_28 = arith.constant dense<0.000000e+00> : vector<128xf32>
    %65 = vector.multi_reduction <add>, %64, %cst_28 [1] : vector<128x128xf32> to vector<128xf32>
    %66 = vector.shape_cast %65 : vector<128xf32> to vector<128x1xf32>
    %67 = tpu.reciprocal %66 {approx = true} : vector<128x1xf32> -> vector<128x1xf32>
    %68 = vector.broadcast %67 : vector<128x1xf32> to vector<128x128xf32>
    %69 = arith.mulf %64, %68 : vector<128x128xf32>
    %70 = arith.index_cast %c2_i32 : i32 to index
    %c0_29 = arith.constant 0 : index
    %c0_30 = arith.constant 0 : index
    %71 = vector.load %arg3[%70, %c0_29, %c0_30] : memref<8x32x32xbf16, #tpu.memory_space<vmem>>, vector<1x32x32xbf16>
    %72 = vector.shape_cast %71 : vector<1x32x32xbf16> to vector<32x32xbf16>
    %cst_31 = arith.constant dense<0.000000e+00> : vector<128x32xf32>
    %73 = tpu.matmul %0, %72, %cst_31 {dimension_numbers = #tpu.dot_dimension_numbers<[1], [0], [0], [1], [0, 0, 1, 1], [], []>} : vector<128x32xbf16>, vector<32x32xbf16>, vector<128x32xf32> -> vector<128x32xf32>
    %74 = arith.truncf %69 : vector<128x128xf32> to vector<128x128xbf16>
    %75 = arith.truncf %73 : vector<128x32xf32> to vector<128x32xbf16>
    %cst_32 = arith.constant dense<0.000000e+00> : vector<128x32xf32>
    %76 = tpu.matmul %74, %75, %cst_32 {dimension_numbers = #tpu.dot_dimension_numbers<[1], [0], [0], [1], [0, 0, 1, 1], [], []>} : vector<128x128xbf16>, vector<128x32xbf16>, vector<128x32xf32> -> vector<128x32xf32>
    %77 = arith.addf %52, %76 : vector<128x32xf32>
    %c3_i32 = arith.constant 3 : i32
    %78 = arith.index_cast %c3_i32 : i32 to index
    %c0_33 = arith.constant 0 : index
    %c0_34 = arith.constant 0 : index
    %79 = vector.load %arg2[%78, %c0_33, %c0_34] : memref<8x32x32xbf16, #tpu.memory_space<vmem>>, vector<1x32x32xbf16>
    %80 = vector.shape_cast %79 : vector<1x32x32xbf16> to vector<32x32xbf16>
    %cst_35 = arith.constant dense<0.000000e+00> : vector<128x32xf32>
    %81 = tpu.matmul %0, %80, %cst_35 {dimension_numbers = #tpu.dot_dimension_numbers<[1], [0], [0], [1], [0, 0, 1, 1], [], []>} : vector<128x32xbf16>, vector<32x32xbf16>, vector<128x32xf32> -> vector<128x32xf32>
    %82 = arith.truncf %81 : vector<128x32xf32> to vector<128x32xbf16>
    %cst_36 = arith.constant dense<0.000000e+00> : vector<128x128xf32>
    %83 = tpu.matmul %82, %0, %cst_36 {dimension_numbers = #tpu.dot_dimension_numbers<[1], [1], [0], [0], [0, 0, 1, 0], [], []>} : vector<128x32xbf16>, vector<128x32xbf16>, vector<128x128xf32> -> vector<128x128xf32>
    %84 = arith.addf %83, %1 : vector<128x128xf32>
    %cst_37 = arith.constant dense<0xFF800000> : vector<128xf32>
    %85 = vector.multi_reduction <maximumf>, %84, %cst_37 [1] : vector<128x128xf32> to vector<128xf32>
    %86 = vector.shape_cast %85 : vector<128xf32> to vector<128x1xf32>
    %87 = vector.broadcast %86 : vector<128x1xf32> to vector<128x128xf32>
    %88 = arith.subf %84, %87 : vector<128x128xf32>
    %89 = math.exp %88 : vector<128x128xf32>
    %cst_38 = arith.constant dense<0.000000e+00> : vector<128xf32>
    %90 = vector.multi_reduction <add>, %89, %cst_38 [1] : vector<128x128xf32> to vector<128xf32>
    %91 = vector.shape_cast %90 : vector<128xf32> to vector<128x1xf32>
    %92 = tpu.reciprocal %91 {approx = true} : vector<128x1xf32> -> vector<128x1xf32>
    %93 = vector.broadcast %92 : vector<128x1xf32> to vector<128x128xf32>
    %94 = arith.mulf %89, %93 : vector<128x128xf32>
    %95 = arith.index_cast %c3_i32 : i32 to index
    %c0_39 = arith.constant 0 : index
    %c0_40 = arith.constant 0 : index
    %96 = vector.load %arg3[%95, %c0_39, %c0_40] : memref<8x32x32xbf16, #tpu.memory_space<vmem>>, vector<1x32x32xbf16>
    %97 = vector.shape_cast %96 : vector<1x32x32xbf16> to vector<32x32xbf16>
    %cst_41 = arith.constant dense<0.000000e+00> : vector<128x32xf32>
    %98 = tpu.matmul %0, %97, %cst_41 {dimension_numbers = #tpu.dot_dimension_numbers<[1], [0], [0], [1], [0, 0, 1, 1], [], []>} : vector<128x32xbf16>, vector<32x32xbf16>, vector<128x32xf32> -> vector<128x32xf32>
    %99 = arith.truncf %94 : vector<128x128xf32> to vector<128x128xbf16>
    %100 = arith.truncf %98 : vector<128x32xf32> to vector<128x32xbf16>
    %cst_42 = arith.constant dense<0.000000e+00> : vector<128x32xf32>
    %101 = tpu.matmul %99, %100, %cst_42 {dimension_numbers = #tpu.dot_dimension_numbers<[1], [0], [0], [1], [0, 0, 1, 1], [], []>} : vector<128x128xbf16>, vector<128x32xbf16>, vector<128x32xf32> -> vector<128x32xf32>
    %102 = arith.addf %77, %101 : vector<128x32xf32>
    %c4_i32 = arith.constant 4 : i32
    %103 = arith.index_cast %c4_i32 : i32 to index
    %c0_43 = arith.constant 0 : index
    %c0_44 = arith.constant 0 : index
    %104 = vector.load %arg2[%103, %c0_43, %c0_44] : memref<8x32x32xbf16, #tpu.memory_space<vmem>>, vector<1x32x32xbf16>
    %105 = vector.shape_cast %104 : vector<1x32x32xbf16> to vector<32x32xbf16>
    %cst_45 = arith.constant dense<0.000000e+00> : vector<128x32xf32>
    %106 = tpu.matmul %0, %105, %cst_45 {dimension_numbers = #tpu.dot_dimension_numbers<[1], [0], [0], [1], [0, 0, 1, 1], [], []>} : vector<128x32xbf16>, vector<32x32xbf16>, vector<128x32xf32> -> vector<128x32xf32>
    %107 = arith.truncf %106 : vector<128x32xf32> to vector<128x32xbf16>
    %cst_46 = arith.constant dense<0.000000e+00> : vector<128x128xf32>
    %108 = tpu.matmul %107, %0, %cst_46 {dimension_numbers = #tpu.dot_dimension_numbers<[1], [1], [0], [0], [0, 0, 1, 0], [], []>} : vector<128x32xbf16>, vector<128x32xbf16>, vector<128x128xf32> -> vector<128x128xf32>
    %109 = arith.addf %108, %1 : vector<128x128xf32>
    %cst_47 = arith.constant dense<0xFF800000> : vector<128xf32>
    %110 = vector.multi_reduction <maximumf>, %109, %cst_47 [1] : vector<128x128xf32> to vector<128xf32>
    %111 = vector.shape_cast %110 : vector<128xf32> to vector<128x1xf32>
    %112 = vector.broadcast %111 : vector<128x1xf32> to vector<128x128xf32>
    %113 = arith.subf %109, %112 : vector<128x128xf32>
    %114 = math.exp %113 : vector<128x128xf32>
    %cst_48 = arith.constant dense<0.000000e+00> : vector<128xf32>
    %115 = vector.multi_reduction <add>, %114, %cst_48 [1] : vector<128x128xf32> to vector<128xf32>
    %116 = vector.shape_cast %115 : vector<128xf32> to vector<128x1xf32>
    %117 = tpu.reciprocal %116 {approx = true} : vector<128x1xf32> -> vector<128x1xf32>
    %118 = vector.broadcast %117 : vector<128x1xf32> to vector<128x128xf32>
    %119 = arith.mulf %114, %118 : vector<128x128xf32>
    %120 = arith.index_cast %c4_i32 : i32 to index
    %c0_49 = arith.constant 0 : index
    %c0_50 = arith.constant 0 : index
    %121 = vector.load %arg3[%120, %c0_49, %c0_50] : memref<8x32x32xbf16, #tpu.memory_space<vmem>>, vector<1x32x32xbf16>
    %122 = vector.shape_cast %121 : vector<1x32x32xbf16> to vector<32x32xbf16>
    %cst_51 = arith.constant dense<0.000000e+00> : vector<128x32xf32>
    %123 = tpu.matmul %0, %122, %cst_51 {dimension_numbers = #tpu.dot_dimension_numbers<[1], [0], [0], [1], [0, 0, 1, 1], [], []>} : vector<128x32xbf16>, vector<32x32xbf16>, vector<128x32xf32> -> vector<128x32xf32>
    %124 = arith.truncf %119 : vector<128x128xf32> to vector<128x128xbf16>
    %125 = arith.truncf %123 : vector<128x32xf32> to vector<128x32xbf16>
    %cst_52 = arith.constant dense<0.000000e+00> : vector<128x32xf32>
    %126 = tpu.matmul %124, %125, %cst_52 {dimension_numbers = #tpu.dot_dimension_numbers<[1], [0], [0], [1], [0, 0, 1, 1], [], []>} : vector<128x128xbf16>, vector<128x32xbf16>, vector<128x32xf32> -> vector<128x32xf32>
    %127 = arith.addf %102, %126 : vector<128x32xf32>
    %c5_i32 = arith.constant 5 : i32
    %128 = arith.index_cast %c5_i32 : i32 to index
    %c0_53 = arith.constant 0 : index
    %c0_54 = arith.constant 0 : index
    %129 = vector.load %arg2[%128, %c0_53, %c0_54] : memref<8x32x32xbf16, #tpu.memory_space<vmem>>, vector<1x32x32xbf16>
    %130 = vector.shape_cast %129 : vector<1x32x32xbf16> to vector<32x32xbf16>
    %cst_55 = arith.constant dense<0.000000e+00> : vector<128x32xf32>
    %131 = tpu.matmul %0, %130, %cst_55 {dimension_numbers = #tpu.dot_dimension_numbers<[1], [0], [0], [1], [0, 0, 1, 1], [], []>} : vector<128x32xbf16>, vector<32x32xbf16>, vector<128x32xf32> -> vector<128x32xf32>
    %132 = arith.truncf %131 : vector<128x32xf32> to vector<128x32xbf16>
    %cst_56 = arith.constant dense<0.000000e+00> : vector<128x128xf32>
    %133 = tpu.matmul %132, %0, %cst_56 {dimension_numbers = #tpu.dot_dimension_numbers<[1], [1], [0], [0], [0, 0, 1, 0], [], []>} : vector<128x32xbf16>, vector<128x32xbf16>, vector<128x128xf32> -> vector<128x128xf32>
    %134 = arith.addf %133, %1 : vector<128x128xf32>
    %cst_57 = arith.constant dense<0xFF800000> : vector<128xf32>
    %135 = vector.multi_reduction <maximumf>, %134, %cst_57 [1] : vector<128x128xf32> to vector<128xf32>
    %136 = vector.shape_cast %135 : vector<128xf32> to vector<128x1xf32>
    %137 = vector.broadcast %136 : vector<128x1xf32> to vector<128x128xf32>
    %138 = arith.subf %134, %137 : vector<128x128xf32>
    %139 = math.exp %138 : vector<128x128xf32>
    %cst_58 = arith.constant dense<0.000000e+00> : vector<128xf32>
    %140 = vector.multi_reduction <add>, %139, %cst_58 [1] : vector<128x128xf32> to vector<128xf32>
    %141 = vector.shape_cast %140 : vector<128xf32> to vector<128x1xf32>
    %142 = tpu.reciprocal %141 {approx = true} : vector<128x1xf32> -> vector<128x1xf32>
    %143 = vector.broadcast %142 : vector<128x1xf32> to vector<128x128xf32>
    %144 = arith.mulf %139, %143 : vector<128x128xf32>
    %145 = arith.index_cast %c5_i32 : i32 to index
    %c0_59 = arith.constant 0 : index
    %c0_60 = arith.constant 0 : index
    %146 = vector.load %arg3[%145, %c0_59, %c0_60] : memref<8x32x32xbf16, #tpu.memory_space<vmem>>, vector<1x32x32xbf16>
    %147 = vector.shape_cast %146 : vector<1x32x32xbf16> to vector<32x32xbf16>
    %cst_61 = arith.constant dense<0.000000e+00> : vector<128x32xf32>
    %148 = tpu.matmul %0, %147, %cst_61 {dimension_numbers = #tpu.dot_dimension_numbers<[1], [0], [0], [1], [0, 0, 1, 1], [], []>} : vector<128x32xbf16>, vector<32x32xbf16>, vector<128x32xf32> -> vector<128x32xf32>
    %149 = arith.truncf %144 : vector<128x128xf32> to vector<128x128xbf16>
    %150 = arith.truncf %148 : vector<128x32xf32> to vector<128x32xbf16>
    %cst_62 = arith.constant dense<0.000000e+00> : vector<128x32xf32>
    %151 = tpu.matmul %149, %150, %cst_62 {dimension_numbers = #tpu.dot_dimension_numbers<[1], [0], [0], [1], [0, 0, 1, 1], [], []>} : vector<128x128xbf16>, vector<128x32xbf16>, vector<128x32xf32> -> vector<128x32xf32>
    %152 = arith.addf %127, %151 : vector<128x32xf32>
    %c6_i32 = arith.constant 6 : i32
    %153 = arith.index_cast %c6_i32 : i32 to index
    %c0_63 = arith.constant 0 : index
    %c0_64 = arith.constant 0 : index
    %154 = vector.load %arg2[%153, %c0_63, %c0_64] : memref<8x32x32xbf16, #tpu.memory_space<vmem>>, vector<1x32x32xbf16>
    %155 = vector.shape_cast %154 : vector<1x32x32xbf16> to vector<32x32xbf16>
    %cst_65 = arith.constant dense<0.000000e+00> : vector<128x32xf32>
    %156 = tpu.matmul %0, %155, %cst_65 {dimension_numbers = #tpu.dot_dimension_numbers<[1], [0], [0], [1], [0, 0, 1, 1], [], []>} : vector<128x32xbf16>, vector<32x32xbf16>, vector<128x32xf32> -> vector<128x32xf32>
    %157 = arith.truncf %156 : vector<128x32xf32> to vector<128x32xbf16>
    %cst_66 = arith.constant dense<0.000000e+00> : vector<128x128xf32>
    %158 = tpu.matmul %157, %0, %cst_66 {dimension_numbers = #tpu.dot_dimension_numbers<[1], [1], [0], [0], [0, 0, 1, 0], [], []>} : vector<128x32xbf16>, vector<128x32xbf16>, vector<128x128xf32> -> vector<128x128xf32>
    %159 = arith.addf %158, %1 : vector<128x128xf32>
    %cst_67 = arith.constant dense<0xFF800000> : vector<128xf32>
    %160 = vector.multi_reduction <maximumf>, %159, %cst_67 [1] : vector<128x128xf32> to vector<128xf32>
    %161 = vector.shape_cast %160 : vector<128xf32> to vector<128x1xf32>
    %162 = vector.broadcast %161 : vector<128x1xf32> to vector<128x128xf32>
    %163 = arith.subf %159, %162 : vector<128x128xf32>
    %164 = math.exp %163 : vector<128x128xf32>
    %cst_68 = arith.constant dense<0.000000e+00> : vector<128xf32>
    %165 = vector.multi_reduction <add>, %164, %cst_68 [1] : vector<128x128xf32> to vector<128xf32>
    %166 = vector.shape_cast %165 : vector<128xf32> to vector<128x1xf32>
    %167 = tpu.reciprocal %166 {approx = true} : vector<128x1xf32> -> vector<128x1xf32>
    %168 = vector.broadcast %167 : vector<128x1xf32> to vector<128x128xf32>
    %169 = arith.mulf %164, %168 : vector<128x128xf32>
    %170 = arith.index_cast %c6_i32 : i32 to index
    %c0_69 = arith.constant 0 : index
    %c0_70 = arith.constant 0 : index
    %171 = vector.load %arg3[%170, %c0_69, %c0_70] : memref<8x32x32xbf16, #tpu.memory_space<vmem>>, vector<1x32x32xbf16>
    %172 = vector.shape_cast %171 : vector<1x32x32xbf16> to vector<32x32xbf16>
    %cst_71 = arith.constant dense<0.000000e+00> : vector<128x32xf32>
    %173 = tpu.matmul %0, %172, %cst_71 {dimension_numbers = #tpu.dot_dimension_numbers<[1], [0], [0], [1], [0, 0, 1, 1], [], []>} : vector<128x32xbf16>, vector<32x32xbf16>, vector<128x32xf32> -> vector<128x32xf32>
    %174 = arith.truncf %169 : vector<128x128xf32> to vector<128x128xbf16>
    %175 = arith.truncf %173 : vector<128x32xf32> to vector<128x32xbf16>
    %cst_72 = arith.constant dense<0.000000e+00> : vector<128x32xf32>
    %176 = tpu.matmul %174, %175, %cst_72 {dimension_numbers = #tpu.dot_dimension_numbers<[1], [0], [0], [1], [0, 0, 1, 1], [], []>} : vector<128x128xbf16>, vector<128x32xbf16>, vector<128x32xf32> -> vector<128x32xf32>
    %177 = arith.addf %152, %176 : vector<128x32xf32>
    %c7_i32 = arith.constant 7 : i32
    %178 = arith.index_cast %c7_i32 : i32 to index
    %c0_73 = arith.constant 0 : index
    %c0_74 = arith.constant 0 : index
    %179 = vector.load %arg2[%178, %c0_73, %c0_74] : memref<8x32x32xbf16, #tpu.memory_space<vmem>>, vector<1x32x32xbf16>
    %180 = vector.shape_cast %179 : vector<1x32x32xbf16> to vector<32x32xbf16>
    %cst_75 = arith.constant dense<0.000000e+00> : vector<128x32xf32>
    %181 = tpu.matmul %0, %180, %cst_75 {dimension_numbers = #tpu.dot_dimension_numbers<[1], [0], [0], [1], [0, 0, 1, 1], [], []>} : vector<128x32xbf16>, vector<32x32xbf16>, vector<128x32xf32> -> vector<128x32xf32>
    %182 = arith.truncf %181 : vector<128x32xf32> to vector<128x32xbf16>
    %cst_76 = arith.constant dense<0.000000e+00> : vector<128x128xf32>
    %183 = tpu.matmul %182, %0, %cst_76 {dimension_numbers = #tpu.dot_dimension_numbers<[1], [1], [0], [0], [0, 0, 1, 0], [], []>} : vector<128x32xbf16>, vector<128x32xbf16>, vector<128x128xf32> -> vector<128x128xf32>
    %184 = arith.addf %183, %1 : vector<128x128xf32>
    %cst_77 = arith.constant dense<0xFF800000> : vector<128xf32>
    %185 = vector.multi_reduction <maximumf>, %184, %cst_77 [1] : vector<128x128xf32> to vector<128xf32>
    %186 = vector.shape_cast %185 : vector<128xf32> to vector<128x1xf32>
    %187 = vector.broadcast %186 : vector<128x1xf32> to vector<128x128xf32>
    %188 = arith.subf %184, %187 : vector<128x128xf32>
    %189 = math.exp %188 : vector<128x128xf32>
    %cst_78 = arith.constant dense<0.000000e+00> : vector<128xf32>
    %190 = vector.multi_reduction <add>, %189, %cst_78 [1] : vector<128x128xf32> to vector<128xf32>
    %191 = vector.shape_cast %190 : vector<128xf32> to vector<128x1xf32>
    %192 = tpu.reciprocal %191 {approx = true} : vector<128x1xf32> -> vector<128x1xf32>
    %193 = vector.broadcast %192 : vector<128x1xf32> to vector<128x128xf32>
    %194 = arith.mulf %189, %193 : vector<128x128xf32>
    %195 = arith.index_cast %c7_i32 : i32 to index
    %c0_79 = arith.constant 0 : index
    %c0_80 = arith.constant 0 : index
    %196 = vector.load %arg3[%195, %c0_79, %c0_80] : memref<8x32x32xbf16, #tpu.memory_space<vmem>>, vector<1x32x32xbf16>
    %197 = vector.shape_cast %196 : vector<1x32x32xbf16> to vector<32x32xbf16>
    %cst_81 = arith.constant dense<0.000000e+00> : vector<128x32xf32>
    %198 = tpu.matmul %0, %197, %cst_81 {dimension_numbers = #tpu.dot_dimension_numbers<[1], [0], [0], [1], [0, 0, 1, 1], [], []>} : vector<128x32xbf16>, vector<32x32xbf16>, vector<128x32xf32> -> vector<128x32xf32>
    %199 = arith.truncf %194 : vector<128x128xf32> to vector<128x128xbf16>
    %200 = arith.truncf %198 : vector<128x32xf32> to vector<128x32xbf16>
    %cst_82 = arith.constant dense<0.000000e+00> : vector<128x32xf32>
    %201 = tpu.matmul %199, %200, %cst_82 {dimension_numbers = #tpu.dot_dimension_numbers<[1], [0], [0], [1], [0, 0, 1, 1], [], []>} : vector<128x128xbf16>, vector<128x32xbf16>, vector<128x32xf32> -> vector<128x32xf32>
    %202 = arith.addf %177, %201 : vector<128x32xf32>
    %c8_i32 = arith.constant 8 : i32
    %c0_83 = arith.constant 0 : index
    %c0_84 = arith.constant 0 : index
    %203 = vector.load %arg5[%c0_83, %c0_84] : memref<1x32xf32, #tpu.memory_space<vmem>>, vector<1x32xf32>
    %204 = vector.broadcast %203 : vector<1x32xf32> to vector<128x32xf32>
    %205 = arith.addf %202, %204 : vector<128x32xf32>
    %c0_85 = arith.constant 0 : index
    %c0_86 = arith.constant 0 : index
    %206 = vector.load %arg6[%c0_85, %c0_86] : memref<128x32xf32, #tpu.memory_space<vmem>>, vector<128x32xf32>
    tpu.vector_store %arg6[%c0_85, %c0_86], %205 {strides = array<i32>} : memref<128x32xf32, #tpu.memory_space<vmem>>, vector<128x32xf32>,
    return
  }
  func.func @transform_0(%arg0: i32) -> (i32, i32) {
    %c0_i32 = arith.constant 0 : i32
    %c0_i32_0 = arith.constant 0 : i32
    return %arg0, %c0_i32 : i32, i32
  }
  func.func @transform_1(%arg0: i32) -> (i32, i32, i32) {
    %c0_i32 = arith.constant 0 : i32
    %c0_i32_0 = arith.constant 0 : i32
    %c0_i32_1 = arith.constant 0 : i32
    %c0_i32_2 = arith.constant 0 : i32
    return %c0_i32, %c0_i32_0, %c0_i32_1 : i32, i32, i32
  }
  func.func @transform_2(%arg0: i32) -> (i32, i32, i32) {
    %c0_i32 = arith.constant 0 : i32
    %c0_i32_0 = arith.constant 0 : i32
    %c0_i32_1 = arith.constant 0 : i32
    %c0_i32_2 = arith.constant 0 : i32
    return %c0_i32, %c0_i32_0, %c0_i32_1 : i32, i32, i32
  }
  func.func @transform_3(%arg0: i32) -> (i32, i32) {
    %c0_i32 = arith.constant 0 : i32
    %c0_i32_0 = arith.constant 0 : i32
    %c0_i32_1 = arith.constant 0 : i32
    return %c0_i32, %c0_i32_0 : i32, i32
  }
  func.func @transform_4(%arg0: i32) -> (i32, i32) {
    %c0_i32 = arith.constant 0 : i32
    %c0_i32_0 = arith.constant 0 : i32
    %c0_i32_1 = arith.constant 0 : i32
    return %c0_i32, %c0_i32_0 : i32, i32
  }
  func.func @transform_5(%arg0: i32) -> (i32, i32) {
    %c0_i32 = arith.constant 0 : i32
    %c0_i32_0 = arith.constant 0 : i32
    return %arg0, %c0_i32 : i32, i32
  }
}

</mosaic_0001>

<bundles_post_ra>
// kernel: tpu_custom_call.1
= control target key start
LH: loop header
LB: loop body
LE: loop exit
PB: predicated region body
PF: predicated region fallthrough
CT: control target
= control target key end

     0   :  { %10 = vsyncpa [#allocation3], 0  ;;  %s10057_s0 = inlined_call_operand.vmem [shape: bf16[128,32], index: 0, kind: input, shape index: {}]   ;;  %s10058_s1 = inlined_call_operand.hbm [shape: bf16[8,32,32], index: 1, kind: input, shape index: {}]   ;;  %s10059_s2 = inlined_call_operand.hbm [shape: bf16[8,32,32], index: 2, kind: input, shape index: {}]   ;;  %s10060_s3 = inlined_call_operand.hbm [shape: f32[128,128], index: 3, kind: input, shape index: {}]   ;;  %s10061_s4 = inlined_call_operand.vmem [shape: f32[1,32], index: 4, kind: input, shape index: {}]   ;;  %s10062_s5 = inlined_call_operand.vmem [shape: f32[128,32], index: 5, kind: output, shape index: {}]  }
   0x1   :  { %11 = vsyncpa [#allocation5], 0  ;;  %s7568_s18 = smov [#allocation4]   ;;  %s7569_s20 = smov [#allocation2]  }
   0x2   :  { %s31_s19 = sshll.u32 %s7568_s18, 4  ;;  %s19_s21 = sshll.u32 %s7569_s20, 4  ;;  %s32_s19 = int_to_ptr.vmem [resolvable:$true] %s31_s19  ;;  %s7605_s21 = int_to_ptr.vmem [resolvable:$true] %s19_s21 }
   0x3   :  { %s7498_s24 = scalar_lea.hbm %s10059_s2, 2048 }
   0x4   :  { %p7499_p0 = scmp.ne.s32.totalorder %s10059_s2, %s7498_s24  ;;  %p7502_p1 = scmp.lt.u32.totalorder %s7498_s24, %s10059_s2 }
   0x6   :  { %p7504_p2 = pnand %p7502_p1, %p7499_p0 }
   0x8   :  { %7507 = shalt.err (!%p7504_p2)
}
   0x9   :  { %s7508_s29 = scalar_lea.vmem %s32_s19, 2048  ;;  %p7513_p4 = scmp.lt.s32.totalorder %s32_s19, %s32_s19 }
   0xa   :  { %p7509_p3 = scmp.ne.s32.totalorder %s32_s19, %s7508_s29  ;;  %p7514_p5 = scmp.lt.s32.totalorder %s7508_s29, %s7508_s29 }
   0xc   :  { %p7515_p6 = por %p7514_p5, %p7513_p4 }
   0xe   :  { %p7516_p7 = pnand %p7515_p6, %p7509_p3 }
  0x10   :  { %7519 = shalt.err (!%p7516_p7)
}
  0x11   :  { %s7570_s30 = smov 64   ;;  %s7571_s6 = smov 4  }
  0x12   :  { %37 = dma.hbm_to_vmem [thread:$0]  %s10059_s2, 2048, %s32_s19, [#allocation5], %s7570_s30, %s7570_s30, %s7571_s6  }
  0x13   :  { %s7520_s11 = scalar_lea.hbm %s10058_s1, 2048 }
  0x14   :  { %p7521_p8 = scmp.ne.s32.totalorder %s10058_s1, %s7520_s11  ;;  %p7524_p9 = scmp.lt.u32.totalorder %s7520_s11, %s10058_s1 }
  0x16   :  { %p7526_p10 = pnand %p7524_p9, %p7521_p8 }
  0x18   :  { %7529 = shalt.err (!%p7526_p10)
}
  0x19   :  { %s7530_s16 = scalar_lea.vmem %s7605_s21, 2048  ;;  %p7535_p12 = scmp.lt.s32.totalorder %s7605_s21, %s7605_s21 }
  0x1a   :  { %p7531_p11 = scmp.ne.s32.totalorder %s7605_s21, %s7530_s16  ;;  %p7536_p13 = scmp.lt.s32.totalorder %s7530_s16, %s7530_s16 }
  0x1c   :  { %p7537_p0 = por %p7536_p13, %p7535_p12 }
  0x1e   :  { %p7538_p1 = pnand %p7537_p0, %p7531_p11 }
  0x20   :  { %7541 = shalt.err (!%p7538_p1)
}
  0x21   :  { %25 = dma.hbm_to_vmem [thread:$0]  %s10058_s1, 2048, %s7605_s21, [#allocation3], %s7570_s30, %s7570_s30, %s7571_s6  }
  0x22   :  { %s7572_s18 = smov [#allocation6]   ;;  %s7542_s23 = scalar_lea.hbm %s10060_s3, 2048 }
  0x23   :  { %s43_s19 = sshll.u32 %s7572_s18, 4  ;;  %p7543_p2 = scmp.ne.s32.totalorder %s10060_s3, %s7542_s23  ;;  %s44_s19 = int_to_ptr.vmem [resolvable:$true] %s43_s19 }
  0x24   :  { %p7546_p3 = scmp.lt.u32.totalorder %s7542_s23, %s10060_s3 }
  0x26   :  { %p7548_p4 = pnand %p7546_p3, %p7543_p2 }
  0x28   :  { %7551 = shalt.err (!%p7548_p4)
}
  0x29   :  { %s7552_s28 = scalar_lea.vmem %s44_s19, 2048  ;;  %p7557_p6 = scmp.lt.s32.totalorder %s44_s19, %s44_s19 }
  0x2a   :  { %p7553_p5 = scmp.ne.s32.totalorder %s44_s19, %s7552_s28  ;;  %p7558_p7 = scmp.lt.s32.totalorder %s7552_s28, %s7552_s28 }
  0x2c   :  { %p7559_p8 = por %p7558_p7, %p7557_p6 }
  0x2e   :  { %p7560_p9 = pnand %p7559_p8, %p7553_p5 }
  0x30   :  { %7563 = shalt.err (!%p7560_p9)
}
  0x31   :  { %s7573_s1 = smov 128   ;;  %s7574_s21 = smov 8  }
  0x32   :  { %49 = dma.hbm_to_vmem [thread:$0]  %s10060_s3, 2048, %s44_s19, [#allocation5], %s7573_s1, %s7573_s1, %s7574_s21  }
  0x33   :  { %7564 = dma.done.wait [#allocation3], 2048  }
  0x34   :  { %7565 = vsyncadd [#allocation3], 4294965248 }
  0x35   :  { %7566 = dma.done.wait [#allocation5], 4096  }
  0x36   :  { %7567 = vsyncadd [#allocation5], 4294963200  ;;  %v6874_v0 = vld [vmem:[#allocation2] sm:$0xff]   ;;  %v6876_v2 = vld [vmem:[#allocation2 + $0x8] sm:$0xff]   ;;  %vm150_vm0 = vcmask 261120  }
  0x37   :  { %v6875_v1 = vld [vmem:[#allocation4] sm:$0xff]   ;;  %5859 = vmatprep.subr.bf16.mxu1 %v6874_v0  ;;  %v6877_v3 = vld [vmem:[#allocation4 + $0x8] sm:$0xff]   ;;  %v7665_v6 = vld [vmem:[%s10057_s0 + $0x10] sm:$0xff]  }
  0x38   :  { %5911 = vmatprep.subr.bf16.mxu0 %v6875_v1  ;;  %5860 = vmatpush3.bf16.msra.mxu1 %v6874_v0  ;;  %v7651_v4 = vld [vmem:[%s10057_s0] sm:$0xff]   ;;  %v7660_v5 = vld [vmem:[%s10057_s0 + $0x8] sm:$0xff]   ;;  %v6886_v7 = vld [vmem:[#allocation2 + $0x10] sm:$0xff]   ;;  %v7697_v14 = vsel %vm150_vm0, %v7665_v6, 0 }
  0x39   :  { %5912 = vmatpush3.bf16.msra.mxu0 %v6875_v1  ;;  %5861 = vmatprep.subr.bf16.mxu1 %v6876_v2  ;;  %v7680_v8 = vld [vmem:[%s10057_s0 + $0x18] sm:$0xff]   ;;  %v7684_v10 = vsel %vm150_vm0, %v7651_v4, 0  ;;  %v7689_v11 = vld [vmem:[%s10057_s0 + $0x20] sm:$0xff]   ;;  %v7693_v12 = vsel %vm150_vm0, %v7660_v5, 0  ;;  %v6888_v13 = vld [vmem:[#allocation4 + $0x10] sm:$0xff]   ;;  %10106 = vst [vmem:[#allocation11_spill] sm:$0xff] %v7697_v14 }
  0x3a   :  { %5913 = vmatprep.subr.bf16.mxu0 %v6877_v3  ;;  %5863 = vmatprep.mubr.msk.bf16.mxu1 %vm150_vm0, %v7651_v4  ;;  %v6887_v9 = vld [vmem:[#allocation2 + $0x18] sm:$0xff]   ;;  %10104 = vst [vmem:[#allocation9_spill] sm:$0xff] %v7684_v10  ;;  %10105 = vst [vmem:[#allocation10_spill] sm:$0xff] %v7693_v12  ;;  %v7713_v15 = vld [vmem:[%s10057_s0 + $0x28] sm:$0xff]   ;;  %v7747_v18 = vsel %vm150_vm0, %v7680_v8, 0  ;;  %v7758_v20 = vsel %vm150_vm0, %v7689_v11, 0 }
  0x3b   :  { %5915 = vmatprep.mubr.msk.bf16.mxu0 %vm150_vm0, %v7651_v4  ;;  %v7718_v16 = vld [vmem:[%s10057_s0 + $0x30] sm:$0xff]   ;;  %v7734_v17 = vld [vmem:[%s10057_s0 + $0x38] sm:$0xff]   ;;  %10107 = vst [vmem:[#allocation12_spill] sm:$0xff] %v7747_v18  ;;  %10108 = vst [vmem:[#allocation13_spill] sm:$0xff] %v7758_v20  ;;  %v7769_v21 = vsel %vm150_vm0, %v7713_v15, 0 }
  0x3c   :  { %5862 = vmatpush3.bf16.msra.mxu1 %v6876_v2  ;;  %v6889_v19 = vld [vmem:[#allocation4 + $0x18] sm:$0xff]   ;;  %10109 = vst [vmem:[#allocation14_spill] sm:$0xff] %v7769_v21  ;;  %v7780_v22 = vsel %vm150_vm0, %v7718_v16, 0  ;;  %v7791_v23 = vsel %vm150_vm0, %v7734_v17, 0 }
  0x3d   :  { %5914 = vmatpush3.bf16.msra.mxu0 %v6877_v3  ;;  %6803 = vmatprep.subr.msk.bf16.mxu1 %vm150_vm0, %v7651_v4  ;;  %10110 = vst [vmem:[#allocation15_spill] sm:$0xff] %v7780_v22  ;;  %10111 = vst [vmem:[#allocation16_spill] sm:$0xff] %v7791_v23 }
  0x3e   :  { %5931 = vmatprep.subr.bf16.mxu0 %v6886_v7 }
  0x3f   :  { %5864 = vmatmul.mubr.msk.bf16.vlgmr.msra.gmra.mrb[0].mxu1 %vm150_vm0, %v7660_v5 }
  0x40   :  { %5916 = vmatmul.mubr.msk.bf16.vlgmr.msra.gmra.mrb[0].mxu0 %vm150_vm0, %v7660_v5  ;;  %5867 = vmatprep.mubr.msk.bf16.mxu1 %vm150_vm0, %v7665_v6 }
  0x41   :  { %5919 = vmatprep.mubr.msk.bf16.mxu0 %vm150_vm0, %v7665_v6  ;;  %5932 = vmatpush3.bf16.msra.mxu0 %v6886_v7 }
  0x42   :  { %5933 = vmatprep.subr.bf16.mxu0 %v6887_v9 }
  0x45   :  { %5880 = vmatpush3.bf16.xpose.msra.mxu1 %v7684_v10  ;;  %5934 = vmatpush3.bf16.msra.mxu0 %v6887_v9 }
  0x46   :  { %6804 = vmatprep.subr.msk.bf16.mxu1 %vm150_vm0, %v7660_v5  ;;  %5983 = vmatprep.subr.bf16.mxu0 %v6888_v13 }
  0x47   :  { %5868 = vmatmul.mubr.msk.bf16.gmra.mrb[4].mxu1 %vm150_vm0, %v7680_v8 }
  0x48   :  { %5920 = vmatmul.mubr.msk.bf16.gmra.mrb[4].mxu0 %vm150_vm0, %v7680_v8  ;;  %5871 = vmatprep.mubr.msk.bf16.mxu1 %vm150_vm0, %v7689_v11 }
  0x49   :  { %5923 = vmatprep.mubr.msk.bf16.mxu0 %vm150_vm0, %v7689_v11 }
  0x4d   :  { %5882 = vmatpush3.bf16.xpose.msra.mxu1 %v7693_v12 }
  0x4e   :  { %6805 = vmatprep.subr.msk.bf16.mxu1 %vm150_vm0, %v7665_v6 }
  0x4f   :  { %5872 = vmatmul.mubr.msk.bf16.gmra.mrb[8].mxu1 %vm150_vm0, %v7713_v15 }
  0x50   :  { %5924 = vmatmul.mubr.msk.bf16.gmra.mrb[8].mxu0 %vm150_vm0, %v7713_v15  ;;  %5875 = vmatprep.mubr.msk.bf16.mxu1 %vm150_vm0, %v7718_v16 }
  0x51   :  { %5927 = vmatprep.mubr.msk.bf16.mxu0 %vm150_vm0, %v7718_v16 }
  0x55   :  { %5884 = vmatpush3.bf16.xpose.msra.mxu1 %v7697_v14 }
  0x56   :  { %6806 = vmatprep.subr.msk.bf16.mxu1 %vm150_vm0, %v7680_v8 }
  0x57   :  { %5876 = vmatmul.mubr.msk.bf16.gmra.mrb[12].mxu1 %vm150_vm0, %v7734_v17 }
  0x58   :  { %5928 = vmatmul.mubr.msk.bf16.gmra.mrb[12].mxu0 %vm150_vm0, %v7734_v17 }
  0x59   :  { %5935 = vmatprep.mubr.msk.bf16.mxu0 %vm150_vm0, %v7651_v4 }
  0x5d   :  { %5886 = vmatpush3.bf16.xpose.msra.mxu1 %v7747_v18 }
  0x5e   :  { %6807 = vmatprep.subr.msk.bf16.mxu1 %vm150_vm0, %v7689_v11 }
  0x60   :  { %5936 = vmatmul.mubr.msk.bf16.vlgmr.msra.gmra.mrb[16].mxu0 %vm150_vm0, %v7660_v5 }
  0x61   :  { %5939 = vmatprep.mubr.msk.bf16.mxu0 %vm150_vm0, %v7665_v6  ;;  %5984 = vmatpush3.bf16.msra.mxu0 %v6888_v13 }
  0x62   :  { %5985 = vmatprep.subr.bf16.mxu0 %v6889_v19 }
  0x65   :  { %5986 = vmatpush3.bf16.msra.mxu0 %v6889_v19  ;;  %5888 = vmatpush3.bf16.xpose.msra.mxu1 %v7758_v20 }
  0x66   :  { %6808 = vmatprep.subr.msk.bf16.mxu1 %vm150_vm0, %v7713_v15 }
  0x68   :  { %5940 = vmatmul.mubr.msk.bf16.gmra.mrb[20].mxu0 %vm150_vm0, %v7680_v8 }
  0x69   :  { %5943 = vmatprep.mubr.msk.bf16.mxu0 %vm150_vm0, %v7689_v11 }
  0x6d   :  { %5890 = vmatpush3.bf16.xpose.msra.mxu1 %v7769_v21 }
  0x6e   :  { %6809 = vmatprep.subr.msk.bf16.mxu1 %vm150_vm0, %v7718_v16 }
  0x70   :  { %5944 = vmatmul.mubr.msk.bf16.gmra.mrb[24].mxu0 %vm150_vm0, %v7713_v15 }
  0x71   :  { %5947 = vmatprep.mubr.msk.bf16.mxu0 %vm150_vm0, %v7718_v16 }
  0x75   :  { %5892 = vmatpush3.bf16.xpose.msra.mxu1 %v7780_v22 }
  0x76   :  { %6810 = vmatprep.subr.msk.bf16.mxu1 %vm150_vm0, %v7734_v17 }
  0x78   :  { %5948 = vmatmul.mubr.msk.bf16.gmra.mrb[28].mxu0 %vm150_vm0, %v7734_v17 }
  0x79   :  { %5987 = vmatprep.mubr.msk.bf16.mxu0 %vm150_vm0, %v7651_v4 }
  0x7d   :  { %5894 = vmatpush3.bf16.xpose.msra.mxu1 %v7791_v23 }
  0x7e   :  { %6811 = vmatprep.subr.msk.bf16.mxu1 %vm150_vm0, %v7651_v4 }
  0x80   :  { %5988 = vmatmul.mubr.msk.bf16.vlgmr.msra.gmra.mrb[32].mxu0 %vm150_vm0, %v7660_v5 }
  0x81   :  { %5991 = vmatprep.mubr.msk.bf16.mxu0 %vm150_vm0, %v7665_v6 }
  0x88   :  { %5992 = vmatmul.mubr.msk.bf16.gmra.mrb[36].mxu0 %vm150_vm0, %v7680_v8 }
  0x89   :  { %5995 = vmatprep.mubr.msk.bf16.mxu0 %vm150_vm0, %v7689_v11 }
  0x90   :  { %5996 = vmatmul.mubr.msk.bf16.gmra.mrb[40].mxu0 %vm150_vm0, %v7713_v15 }
  0x91   :  { %5999 = vmatprep.mubr.msk.bf16.mxu0 %vm150_vm0, %v7718_v16 }
  0x98   :  { %6000 = vmatmul.mubr.msk.bf16.gmra.mrb[44].mxu0 %vm150_vm0, %v7734_v17 }
 0x112   :  { %v5865_v24 = vpop.f32.mrb[0].mxu1 }
 0x113   :  { %v209_v25 = vpop.f32.mrb[1].mxu1  ;;  %v5917_v26 = vpop.f32.mrb[0].mxu0 }
 0x114   :  { %v5866_v27 = vpop.f32.mrb[2].mxu1  ;;  %v595_v28 = vpop.f32.mrb[1].mxu0 }
 0x115   :  { %v273_v29 = vpack.c.bf16 %v5866_v27, %v5865_v24  ;;  %v212_v30 = vpop.f32.mrb[3].mxu1  ;;  %v5918_v31 = vpop.f32.mrb[2].mxu0 }
 0x116   :  { %v272_v32 = vpack.c.bf16 %v212_v30, %v209_v25  ;;  %v7810_v33 = vpack.c.bf16 %v5918_v31, %v5917_v26  ;;  %v598_v34 = vpop.f32.mrb[3].mxu0 }
 0x117   :  { %v7812_v35 = vpack.c.bf16 %v598_v34, %v595_v28 }
 0x118   :  { %5895 = vmatprep.mubr.msk.bf16.mxu1 %vm150_vm0, %v272_v32 }
 0x119   :  { %5896 = vmatmul.mubr.msk.bf16.vlgmr.msra.gmra.mrb[16].mxu1 %vm150_vm0, %v273_v29 }
 0x11a   :  { %5952 = vmatpush3.bf16.xpose.msra.mxu1 %v7684_v10  ;;  %v5869_v36 = vpop.f32.mrb[4].mxu1 }
 0x11b   :  { %6812 = vmatprep.subr.msk.bf16.mxu1 %vm150_vm0, %v7660_v5  ;;  %v225_v37 = vpop.f32.mrb[5].mxu1  ;;  %v5921_v38 = vpop.f32.mrb[4].mxu0 }
 0x11c   :  { %v5870_v39 = vpop.f32.mrb[6].mxu1  ;;  %v611_v40 = vpop.f32.mrb[5].mxu0 }
 0x11d   :  { %v275_v41 = vpack.c.bf16 %v5870_v39, %v5869_v36  ;;  %v228_v42 = vpop.f32.mrb[7].mxu1  ;;  %v5922_v43 = vpop.f32.mrb[6].mxu0 }
 0x11e   :  { %v274_v44 = vpack.c.bf16 %v228_v42, %v225_v37  ;;  %v7819_v45 = vpack.c.bf16 %v5922_v43, %v5921_v38  ;;  %v614_v46 = vpop.f32.mrb[7].mxu0 }
 0x11f   :  { %v7821_v47 = vpack.c.bf16 %v614_v46, %v611_v40 }
 0x120   :  { %10112 = vst [vmem:[#allocation17_spill] sm:$0xff] %v7819_v45  ;;  %5899 = vmatprep.mubr.msk.bf16.mxu1 %vm150_vm0, %v274_v44 }
 0x121   :  { %10113 = vst [vmem:[#allocation18_spill] sm:$0xff] %v7821_v47  ;;  %5900 = vmatmul.mubr.msk.bf16.gmra.mrb[20].mxu1 %vm150_vm0, %v275_v41 }
 0x122   :  { %5954 = vmatpush3.bf16.xpose.msra.mxu1 %v7693_v12  ;;  %v5873_v48 = vpop.f32.mrb[8].mxu1 }
 0x123   :  { %6813 = vmatprep.subr.msk.bf16.mxu1 %vm150_vm0, %v7665_v6  ;;  %v5925_v49 = vpop.f32.mrb[8].mxu0  ;;  %v241_v50 = vpop.f32.mrb[9].mxu1 }
 0x124   :  { %v627_v51 = vpop.f32.mrb[9].mxu0  ;;  %v5874_v52 = vpop.f32.mrb[10].mxu1 }
 0x125   :  { %v277_v53 = vpack.c.bf16 %v5874_v52, %v5873_v48  ;;  %v5926_v54 = vpop.f32.mrb[10].mxu0  ;;  %v244_v55 = vpop.f32.mrb[11].mxu1  ;;  %v6890_v52 = vld [vmem:[#allocation2 + $0x20] sm:$0xff]  }
 0x126   :  { %v7828_v56 = vpack.c.bf16 %v5926_v54, %v5925_v49  ;;  %v276_v57 = vpack.c.bf16 %v244_v55, %v241_v50  ;;  %v630_v58 = vpop.f32.mrb[11].mxu0 }
 0x127   :  { %v7830_v59 = vpack.c.bf16 %v630_v58, %v627_v51 }
 0x128   :  { %10114 = vst [vmem:[#allocation19_spill] sm:$0xff] %v7828_v56  ;;  %5903 = vmatprep.mubr.msk.bf16.mxu1 %vm150_vm0, %v276_v57 }
 0x129   :  { %10115 = vst [vmem:[#allocation20_spill] sm:$0xff] %v7830_v59  ;;  %5904 = vmatmul.mubr.msk.bf16.gmra.mrb[24].mxu1 %vm150_vm0, %v277_v53 }
 0x12a   :  { %5956 = vmatpush3.bf16.xpose.msra.mxu1 %v7697_v14  ;;  %v5877_v60 = vpop.f32.mrb[12].mxu1 }
 0x12b   :  { %6814 = vmatprep.subr.msk.bf16.mxu1 %vm150_vm0, %v7680_v8  ;;  %v5929_v61 = vpop.f32.mrb[12].mxu0  ;;  %v257_v62 = vpop.f32.mrb[13].mxu1 }
 0x12c   :  { %v643_v63 = vpop.f32.mrb[13].mxu0  ;;  %v5878_v0 = vpop.f32.mrb[14].mxu1 }
 0x12d   :  { %v5930_v1 = vpop.f32.mrb[14].mxu0  ;;  %v279_v2 = vpack.c.bf16 %v5878_v0, %v5877_v60  ;;  %v260_v3 = vpop.f32.mrb[15].mxu1 }
 0x12e   :  { %v7837_v7 = vpack.c.bf16 %v5930_v1, %v5929_v61  ;;  %v646_v9 = vpop.f32.mrb[15].mxu0  ;;  %v278_v13 = vpack.c.bf16 %v260_v3, %v257_v62  ;;  %v6891_v61 = vld [vmem:[#allocation2 + $0x28] sm:$0xff]  }
 0x12f   :  { %v7839_v19 = vpack.c.bf16 %v646_v9, %v643_v63 }
 0x130   :  { %10116 = vst [vmem:[#allocation21_spill] sm:$0xff] %v7837_v7  ;;  %5907 = vmatprep.mubr.msk.bf16.mxu1 %vm150_vm0, %v278_v13 }
 0x131   :  { %10117 = vst [vmem:[#allocation22_spill] sm:$0xff] %v7839_v19  ;;  %5908 = vmatmul.mubr.msk.bf16.gmra.mrb[28].mxu1 %vm150_vm0, %v279_v2 }
 0x132   :  { %5958 = vmatpush3.bf16.xpose.msra.mxu1 %v7747_v18 }
 0x133   :  { %6815 = vmatprep.subr.msk.bf16.mxu1 %vm150_vm0, %v7689_v11  ;;  %v5937_v24 = vpop.f32.mrb[16].mxu0 }
 0x134   :  { %v725_v25 = vpop.f32.mrb[17].mxu0 }
 0x135   :  { %v5938_v26 = vpop.f32.mrb[18].mxu0 }
 0x136   :  { %v789_v27 = vpack.c.bf16 %v5938_v26, %v5937_v24  ;;  %v728_v28 = vpop.f32.mrb[19].mxu0 }
 0x137   :  { %v788_v29 = vpack.c.bf16 %v728_v28, %v725_v25 }
 0x139   :  { %5967 = vmatprep.mubr.msk.bf16.mxu1 %vm150_vm0, %v788_v29 }
 0x13a   :  { %5960 = vmatpush3.bf16.xpose.msra.mxu1 %v7758_v20 }
 0x13b   :  { %6816 = vmatprep.subr.msk.bf16.mxu1 %vm150_vm0, %v7713_v15  ;;  %v5941_v30 = vpop.f32.mrb[20].mxu0 }
 0x13c   :  { %v741_v31 = vpop.f32.mrb[21].mxu0 }
 0x13d   :  { %v5942_v32 = vpop.f32.mrb[22].mxu0 }
 0x13e   :  { %v791_v34 = vpack.c.bf16 %v5942_v32, %v5941_v30  ;;  %v744_v36 = vpop.f32.mrb[23].mxu0 }
 0x13f   :  { %v790_v37 = vpack.c.bf16 %v744_v36, %v741_v31 }
 0x142   :  { %5962 = vmatpush3.bf16.xpose.msra.mxu1 %v7769_v21 }
 0x143   :  { %6817 = vmatprep.subr.msk.bf16.mxu1 %vm150_vm0, %v7718_v16  ;;  %v5945_v38 = vpop.f32.mrb[24].mxu0 }
 0x144   :  { %v757_v39 = vpop.f32.mrb[25].mxu0 }
 0x145   :  { %v5946_v40 = vpop.f32.mrb[26].mxu0 }
 0x146   :  { %v793_v41 = vpack.c.bf16 %v5946_v40, %v5945_v38  ;;  %v760_v42 = vpop.f32.mrb[27].mxu0 }
 0x147   :  { %v792_v43 = vpack.c.bf16 %v760_v42, %v757_v39 }
 0x14a   :  { %5964 = vmatpush3.bf16.xpose.msra.mxu1 %v7780_v22 }
 0x14b   :  { %v5949_v44 = vpop.f32.mrb[28].mxu0  ;;  %6818 = vmatprep.subr.msk.bf16.mxu1 %vm150_vm0, %v7734_v17 }
 0x14c   :  { %v773_v46 = vpop.f32.mrb[29].mxu0 }
 0x14d   :  { %v5950_v48 = vpop.f32.mrb[30].mxu0 }
 0x14e   :  { %v795_v49 = vpack.c.bf16 %v5950_v48, %v5949_v44  ;;  %v776_v50 = vpop.f32.mrb[31].mxu0 }
 0x14f   :  { %v794_v51 = vpack.c.bf16 %v776_v50, %v773_v46  ;;  %v7937_v46 = vld [vmem:[#allocation6 + $0x10] sm:$0xff] }
 0x152   :  { %5966 = vmatpush3.bf16.xpose.msra.mxu1 %v7791_v23 }
 0x153   :  { %v5989_v53 = vpop.f32.mrb[32].mxu0  ;;  %6067 = vmatprep.subr.bf16.mxu1 %v6890_v52 }
 0x154   :  { %v1112_v54 = vpop.f32.mrb[33].mxu0 }
 0x155   :  { %v5990_v55 = vpop.f32.mrb[34].mxu0 }
 0x156   :  { %v1184_v57 = vpack.c.bf16 %v5990_v55, %v5989_v53  ;;  %v1115_v58 = vpop.f32.mrb[35].mxu0  ;;  %v7948_v55 = vld [vmem:[#allocation6 + $0x18] sm:$0xff] }
 0x157   :  { %v1183_v60 = vpack.c.bf16 %v1115_v58, %v1112_v54 }
 0x159   :  { %5968 = vmatmul.mubr.msk.bf16.vlgmr.msra.gmra.mrb[32].mxu1 %vm150_vm0, %v789_v27  ;;  %6003 = vmatprep.subr.bf16.mxu0 %v1183_v60 }
 0x15a   :  { %6004 = vmatpush3.bf16.msra.mxu0 %v1183_v60  ;;  %5971 = vmatprep.mubr.msk.bf16.mxu1 %vm150_vm0, %v790_v37 }
 0x15b   :  { %v5993_v62 = vpop.f32.mrb[36].mxu0  ;;  %6005 = vmatprep.subr.bf16.mxu0 %v1184_v57  ;;  %6068 = vmatpush3.bf16.msra.mxu1 %v6890_v52 }
 0x15c   :  { %v1128_v63 = vpop.f32.mrb[37].mxu0  ;;  %6069 = vmatprep.subr.bf16.mxu1 %v6891_v61 }
 0x15d   :  { %v5994_v0 = vpop.f32.mrb[38].mxu0 }
 0x15e   :  { %v1186_v1 = vpack.c.bf16 %v5994_v0, %v5993_v62  ;;  %v1131_v2 = vpop.f32.mrb[39].mxu0  ;;  %6006 = vmatpush3.bf16.msra.mxu0 %v1184_v57  ;;  %v7951_v57 = vld [vmem:[#allocation6 + $0x8] sm:$0xff]  ;;  %v7961_v62 = vld [vmem:[#allocation6 + $0x20] sm:$0xff] }
 0x15f   :  { %v1185_v3 = vpack.c.bf16 %v1131_v2, %v1128_v63  ;;  %6070 = vmatpush3.bf16.msra.mxu1 %v6891_v61  ;;  %v7966_v2 = vld [vmem:[#allocation6 + $0x28] sm:$0xff] }
 0x160   :  { %6819 = vmatprep.subr.msk.bf16.mxu1 %vm150_vm0, %v7651_v4 }
 0x161   :  { %5972 = vmatmul.mubr.msk.bf16.gmra.mrb[36].mxu1 %vm150_vm0, %v791_v34  ;;  %6007 = vmatprep.subr.bf16.mxu0 %v1185_v3 }
 0x162   :  { %6008 = vmatpush3.bf16.msra.mxu0 %v1185_v3  ;;  %5975 = vmatprep.mubr.msk.bf16.mxu1 %vm150_vm0, %v792_v43 }
 0x163   :  { %v5997_v9 = vpop.f32.mrb[40].mxu0  ;;  %6009 = vmatprep.subr.bf16.mxu0 %v1186_v1 }
 0x164   :  { %v1144_v13 = vpop.f32.mrb[41].mxu0 }
 0x165   :  { %v5998_v24 = vpop.f32.mrb[42].mxu0 }
 0x166   :  { %v1188_v25 = vpack.c.bf16 %v5998_v24, %v5997_v9  ;;  %v1147_v26 = vpop.f32.mrb[43].mxu0  ;;  %6010 = vmatpush3.bf16.msra.mxu0 %v1186_v1 }
 0x167   :  { %v1187_v27 = vpack.c.bf16 %v1147_v26, %v1144_v13  ;;  %v7972_v13 = vld [vmem:[#allocation6 + $0x30] sm:$0xff] }
 0x169   :  { %5976 = vmatmul.mubr.msk.bf16.gmra.mrb[40].mxu1 %vm150_vm0, %v793_v41  ;;  %6011 = vmatprep.subr.bf16.mxu0 %v1187_v27 }
 0x16a   :  { %6012 = vmatpush3.bf16.msra.mxu0 %v1187_v27  ;;  %5979 = vmatprep.mubr.msk.bf16.mxu1 %vm150_vm0, %v794_v51 }
 0x16b   :  { %v6001_v28 = vpop.f32.mrb[44].mxu0  ;;  %6013 = vmatprep.subr.bf16.mxu0 %v1188_v25 }
 0x16c   :  { %v1160_v29 = vpop.f32.mrb[45].mxu0 }
 0x16d   :  { %v6002_v30 = vpop.f32.mrb[46].mxu0 }
 0x16e   :  { %v1190_v31 = vpack.c.bf16 %v6002_v30, %v6001_v28  ;;  %v1163_v32 = vpop.f32.mrb[47].mxu0  ;;  %6014 = vmatpush3.bf16.msra.mxu0 %v1188_v25  ;;  %v7978_v25 = vld [vmem:[#allocation6 + $0x38] sm:$0xff]  ;;  %v7984_v28 = vld [vmem:[#allocation6 + $0x40] sm:$0xff] }
 0x16f   :  { %v1189_v34 = vpack.c.bf16 %v1163_v32, %v1160_v29  ;;  %v7990_v32 = vld [vmem:[#allocation6 + $0x48] sm:$0xff] }
 0x171   :  { %5980 = vmatmul.mubr.msk.bf16.gmra.mrb[44].mxu1 %vm150_vm0, %v795_v49  ;;  %6015 = vmatprep.subr.bf16.mxu0 %v1189_v34  ;;  %v7939_v49 = vld [vmem:[#allocation6] sm:$0xff] }
 0x172   :  { %6016 = vmatpush3.bf16.msra.mxu0 %v1189_v34  ;;  %6071 = vmatprep.mubr.msk.bf16.mxu1 %vm150_vm0, %v7651_v4 }
 0x173   :  { %6017 = vmatprep.subr.bf16.mxu0 %v1190_v31 }
 0x176   :  { %6018 = vmatpush3.bf16.msra.mxu0 %v1190_v31 }
 0x177   :  { %6035 = vmatprep.subr.bf16.mxu0 %v7812_v35 }
 0x179   :  { %6072 = vmatmul.mubr.msk.bf16.vlgmr.msra.gmra.mrb[48].mxu1 %vm150_vm0, %v7660_v5 }
 0x17a   :  { %6075 = vmatprep.mubr.msk.bf16.mxu1 %vm150_vm0, %v7665_v6  ;;  %6088 = vmatpush3.bf16.xpose.msra.mxu1 %v7684_v10 }
 0x17b   :  { %6820 = vmatprep.subr.msk.bf16.mxu1 %vm150_vm0, %v7660_v5 }
 0x181   :  { %6076 = vmatmul.mubr.msk.bf16.gmra.mrb[52].mxu1 %vm150_vm0, %v7680_v8 }
 0x182   :  { %6079 = vmatprep.mubr.msk.bf16.mxu1 %vm150_vm0, %v7689_v11  ;;  %6090 = vmatpush3.bf16.xpose.msra.mxu1 %v7693_v12 }
 0x183   :  { %6821 = vmatprep.subr.msk.bf16.mxu1 %vm150_vm0, %v7665_v6 }
 0x189   :  { %6080 = vmatmul.mubr.msk.bf16.gmra.mrb[56].mxu1 %vm150_vm0, %v7713_v15 }
 0x18a   :  { %6083 = vmatprep.mubr.msk.bf16.mxu1 %vm150_vm0, %v7718_v16  ;;  %6092 = vmatpush3.bf16.xpose.msra.mxu1 %v7697_v14 }
 0x18b   :  { %6822 = vmatprep.subr.msk.bf16.mxu1 %vm150_vm0, %v7680_v8 }
 0x191   :  { %6084 = vmatmul.mubr.msk.bf16.gmra.mrb[60].mxu1 %vm150_vm0, %v7734_v17 }
 0x192   :  { %6094 = vmatpush3.bf16.xpose.msra.mxu1 %v7747_v18 }
 0x193   :  { %6823 = vmatprep.subr.msk.bf16.mxu1 %vm150_vm0, %v7689_v11 }
 0x19a   :  { %6096 = vmatpush3.bf16.xpose.msra.mxu1 %v7758_v20 }
 0x19b   :  { %6824 = vmatprep.subr.msk.bf16.mxu1 %vm150_vm0, %v7713_v15 }
 0x1a2   :  { %6098 = vmatpush3.bf16.xpose.msra.mxu1 %v7769_v21 }
 0x1a3   :  { %6825 = vmatprep.subr.msk.bf16.mxu1 %vm150_vm0, %v7718_v16 }
 0x1aa   :  { %6100 = vmatpush3.bf16.xpose.msra.mxu1 %v7780_v22 }
 0x1ab   :  { %6826 = vmatprep.subr.msk.bf16.mxu1 %vm150_vm0, %v7734_v17 }
 0x1b2   :  { %6102 = vmatpush3.bf16.xpose.msra.mxu1 %v7791_v23 }
 0x1ec   :  { %v7905_v5 = vpop.f32.mrb[16].mxu1 }
 0x1ed   :  { %v7907_v6 = vpop.f32.mrb[17].mxu1 }
 0x1ee   :  { %v7909_v8 = vpop.f32.mrb[18].mxu1 }
 0x1ef   :  { %v7911_v11 = vpop.f32.mrb[19].mxu1 }
 0x1f0   :  { %v8039_v7 = vadd.f32 %v7911_v11, %v7951_v57 }
 0x1f4   :  { %v7913_v15 = vpop.f32.mrb[20].mxu1 }
 0x1f5   :  { %v7915_v36 = vpop.f32.mrb[21].mxu1 }
 0x1f6   :  { %v7917_v16 = vpop.f32.mrb[22].mxu1 }
 0x1f7   :  { %v7919_v37 = vpop.f32.mrb[23].mxu1 }
 0x1f8   :  { %v8061_v11 = vadd.f32 %v7919_v37, %v7966_v2 }
 0x1fc   :  { %v7921_v38 = vpop.f32.mrb[24].mxu1 }
 0x1fd   :  { %v7923_v17 = vpop.f32.mrb[25].mxu1 }
 0x1fe   :  { %v7925_v39 = vpop.f32.mrb[26].mxu1 }
 0x1ff   :  { %v7927_v40 = vpop.f32.mrb[27].mxu1 }
 0x204   :  { %v7929_v41 = vpop.f32.mrb[28].mxu1 }
 0x205   :  { %v7931_v42 = vpop.f32.mrb[29].mxu1 }
 0x206   :  { %v7933_v43 = vpop.f32.mrb[30].mxu1 }
 0x207   :  { %v7935_v44 = vpop.f32.mrb[31].mxu1 }
 0x22c   :  { %v5969_v48 = vpop.f32.mrb[32].mxu1 }
 0x22d   :  { %v7942_v50 = vadd.f32 %v5969_v48, %v7937_v46  ;;  %v854_v51 = vpop.f32.mrb[33].mxu1 }
 0x22e   :  { %v7945_v52 = vadd.f32 %v854_v51, %v7939_v49  ;;  %v5970_v53 = vpop.f32.mrb[34].mxu1  ;;  %v7996_v51 = vld [vmem:[#allocation6 + $0x50] sm:$0xff] }
 0x22f   :  { %921 = vmax.xlane.f32.xlu1 %v7942_v50  ;;  %v857_v54 = vpop.f32.mrb[35].mxu1  ;;  %v7954_v58 = vadd.f32 %v5970_v53, %v7948_v55 }
 0x230   :  { %917 = vmax.xlane.f32.xlu0 %v7945_v52  ;;  %v7957_v60 = vadd.f32 %v857_v54, %v7951_v57  ;;  %v8002_v54 = vld [vmem:[#allocation6 + $0x58] sm:$0xff] }
 0x233   :  { %923 = vmax.xlane.f32.xlu1 %v7954_v58 }
 0x234   :  { %v5973_v61 = vpop.f32.mrb[36].mxu1  ;;  %919 = vmax.xlane.f32.xlu0 %v7957_v60 }
 0x235   :  { %v870_v63 = vpop.f32.mrb[37].mxu1  ;;  %v7975_v24 = vadd.f32 %v5973_v61, %v7972_v13 }
 0x236   :  { %v7964_v0 = vadd.f32 %v870_v63, %v7961_v62  ;;  %v5974_v1 = vpop.f32.mrb[38].mxu1 }
 0x237   :  { %v873_v3 = vpop.f32.mrb[39].mxu1  ;;  %v7981_v26 = vadd.f32 %v5974_v1, %v7978_v25  ;;  %v8008_v1 = vld [vmem:[#allocation6 + $0x60] sm:$0xff] }
 0x238   :  { %v7969_v9 = vadd.f32 %v873_v3, %v7966_v2  ;;  %925 = vmax.xlane.f32.xlu0 %v7964_v0 }
 0x23a   :  { %927 = vmax.xlane.f32.xlu1 %v7969_v9 }
 0x23c   :  { %v5977_v27 = vpop.f32.mrb[40].mxu1  ;;  %929 = vmax.xlane.f32.xlu0 %v7975_v24 }
 0x23d   :  { %v886_v29 = vpop.f32.mrb[41].mxu1  ;;  %v7999_v53 = vadd.f32 %v5977_v27, %v7996_v51  ;;  %v8014_v27 = vld [vmem:[#allocation6 + $0x68] sm:$0xff] }
 0x23e   :  { %v7987_v30 = vadd.f32 %v886_v29, %v7984_v28  ;;  %v5978_v31 = vpop.f32.mrb[42].mxu1  ;;  %931 = vmax.xlane.f32.xlu1 %v7981_v26 }
 0x23f   :  { %v889_v34 = vpop.f32.mrb[43].mxu1  ;;  %v8005_v61 = vadd.f32 %v5978_v31, %v8002_v54  ;;  %v8020_v31 = vld [vmem:[#allocation6 + $0x70] sm:$0xff] }
 0x240   :  { %v7993_v48 = vadd.f32 %v889_v34, %v7990_v32  ;;  %933 = vmax.xlane.f32.xlu0 %v7987_v30 }
 0x242   :  { %935 = vmax.xlane.f32.xlu1 %v7993_v48 }
 0x244   :  { %v5981_v63 = vpop.f32.mrb[44].mxu1  ;;  %937 = vmax.xlane.f32.xlu0 %v7999_v53 }
 0x245   :  { %v902_v3 = vpop.f32.mrb[45].mxu1  ;;  %v8023_v21 = vadd.f32 %v5981_v63, %v8020_v31 }
 0x246   :  { %v8011_v29 = vadd.f32 %v902_v3, %v8008_v1  ;;  %v5982_v34 = vpop.f32.mrb[46].mxu1  ;;  %939 = vmax.xlane.f32.xlu1 %v8005_v61  ;;  %v8026_v3 = vld [vmem:[#allocation6 + $0x78] sm:$0xff] }
 0x247   :  { %v905_v23 = vpop.f32.mrb[47].mxu1  ;;  %v8029_v20 = vadd.f32 %v5982_v34, %v8026_v3  ;;  %v8044_v34 = vadd.f32 %v7905_v5, %v7937_v46 }
 0x248   :  { %v8017_v22 = vadd.f32 %v905_v23, %v8014_v27  ;;  %941 = vmax.xlane.f32.xlu0 %v8011_v29  ;;  %v8034_v23 = vadd.f32 %v7907_v6, %v7939_v49 }
 0x24a   :  { %943 = vmax.xlane.f32.xlu1 %v8017_v22 }
 0x24c   :  { %v6073_v18 = vpop.f32.mrb[48].mxu1  ;;  %945 = vmax.xlane.f32.xlu0 %v8023_v21 }
 0x24d   :  { %v1436_v14 = vpop.f32.mrb[49].mxu1 }
 0x24e   :  { %v6074_v12 = vpop.f32.mrb[50].mxu1  ;;  %947 = vmax.xlane.f32.xlu1 %v8029_v20 }
 0x24f   :  { %v1500_v63 = vpack.c.bf16 %v6074_v12, %v6073_v18  ;;  %v1439_v10 = vpop.f32.mrb[51].mxu1  ;;  %v8051_v12 = vadd.f32 %v7909_v8, %v7948_v55  ;;  %v8066_v8 = vadd.f32 %v7913_v15, %v7972_v13 }
 0x250   :  { %v1499_v19 = vpack.c.bf16 %v1439_v10, %v1436_v14  ;;  %401 = vmax.xlane.f32.xlu0 %v8034_v23  ;;  %v8056_v14 = vadd.f32 %v7915_v36, %v7961_v62  ;;  %v8073_v36 = vadd.f32 %v7917_v16, %v7978_v25  ;;  %v8088_v16 = vadd.f32 %v7921_v38, %v7996_v51 }
 0x252   :  { %6103 = vmatprep.mubr.msk.bf16.mxu1 %vm150_vm0, %v1499_v19  ;;  %403 = vmax.xlane.f32.xlu1 %v8039_v7 }
 0x253   :  { %6104 = vmatmul.mubr.msk.bf16.vlgmr.msra.gmra.mrb[64].mxu1 %vm150_vm0, %v1500_v63 }
 0x254   :  { %v6077_v18 = vpop.f32.mrb[52].mxu1  ;;  %405 = vmax.xlane.f32.xlu0 %v8044_v34 }
 0x255   :  { %v1452_v10 = vpop.f32.mrb[53].mxu1 }
 0x256   :  { %v6078_v5 = vpop.f32.mrb[54].mxu1  ;;  %407 = vmax.xlane.f32.xlu1 %v8051_v12 }
 0x257   :  { %v1502_v19 = vpack.c.bf16 %v6078_v5, %v6077_v18  ;;  %v1455_v6 = vpop.f32.mrb[55].mxu1 }
 0x258   :  { %v1501_v63 = vpack.c.bf16 %v1455_v6, %v1452_v10  ;;  %409 = vmax.xlane.f32.xlu0 %v8056_v14  ;;  %v8078_v10 = vadd.f32 %v7923_v17, %v7984_v28  ;;  %v8095_v17 = vadd.f32 %v7925_v39, %v8002_v54  ;;  %v8110_v39 = vadd.f32 %v7929_v41, %v8020_v31 }
 0x25a   :  { %6107 = vmatprep.mubr.msk.bf16.mxu1 %vm150_vm0, %v1501_v63  ;;  %411 = vmax.xlane.f32.xlu1 %v8061_v11 }
 0x25b   :  { %6108 = vmatmul.mubr.msk.bf16.gmra.mrb[68].mxu1 %vm150_vm0, %v1502_v19  ;;  %v8083_v19 = vadd.f32 %v7927_v40, %v7990_v32 }
 0x25c   :  { %v6081_v18 = vpop.f32.mrb[56].mxu1  ;;  %413 = vmax.xlane.f32.xlu0 %v8066_v8 }
 0x25d   :  { %v1468_v37 = vpop.f32.mrb[57].mxu1 }
 0x25e   :  { %v6082_v15 = vpop.f32.mrb[58].mxu1  ;;  %415 = vmax.xlane.f32.xlu1 %v8073_v36 }
 0x25f   :  { %v1504_v5 = vpack.c.bf16 %v6082_v15, %v6081_v18  ;;  %v1471_v6 = vpop.f32.mrb[59].mxu1 }
 0x260   :  { %v1503_v63 = vpack.c.bf16 %v1471_v6, %v1468_v37  ;;  %417 = vmax.xlane.f32.xlu0 %v8078_v10  ;;  %v8100_v37 = vadd.f32 %v7931_v42, %v8008_v1  ;;  %v8117_v42 = vadd.f32 %v7933_v43, %v8026_v3 }
 0x262   :  { %6111 = vmatprep.mubr.msk.bf16.mxu1 %vm150_vm0, %v1503_v63  ;;  %419 = vmax.xlane.f32.xlu1 %v8083_v19 }
 0x263   :  { %6112 = vmatmul.mubr.msk.bf16.gmra.mrb[72].mxu1 %vm150_vm0, %v1504_v5  ;;  %v8105_v5 = vadd.f32 %v7935_v44, %v8014_v27 }
 0x264   :  { %v6085_v18 = vpop.f32.mrb[60].mxu1  ;;  %421 = vmax.xlane.f32.xlu0 %v8088_v16 }
 0x265   :  { %v1484_v40 = vpop.f32.mrb[61].mxu1 }
 0x266   :  { %v6086_v38 = vpop.f32.mrb[62].mxu1  ;;  %423 = vmax.xlane.f32.xlu1 %v8095_v17 }
 0x267   :  { %v1506_v15 = vpack.c.bf16 %v6086_v38, %v6085_v18  ;;  %v1487_v6 = vpop.f32.mrb[63].mxu1 }
 0x268   :  { %v1505_v63 = vpack.c.bf16 %v1487_v6, %v1484_v40  ;;  %425 = vmax.xlane.f32.xlu0 %v8100_v37 }
 0x26a   :  { %6115 = vmatprep.mubr.msk.bf16.mxu1 %vm150_vm0, %v1505_v63  ;;  %427 = vmax.xlane.f32.xlu1 %v8105_v5 }
 0x26b   :  { %6116 = vmatmul.mubr.msk.bf16.gmra.mrb[76].mxu1 %vm150_vm0, %v1506_v15 }
 0x26c   :  { %429 = vmax.xlane.f32.xlu0 %v8110_v39  ;;  %6175 = vmatprep.mubr.msk.bf16.mxu1 %vm150_vm0, %v7651_v4 }
 0x26e   :  { %431 = vmax.xlane.f32.xlu1 %v8117_v42 }
 0x2bc   :  { %v922_v44 = vpop.xlane.xlu1 %921 }
 0x2bd   :  { %v951_v41 = vsub.f32 %v7942_v50, %v922_v44  ;;  %v918_v18 = vpop.xlane.xlu0 %917 }
 0x2be   :  { %v949_v40 = vsub.f32 %v7945_v52, %v918_v18 }
 0x2bf   :  { %v969_v15 = vmul.f32 1.442695, %v951_v41 }
 0x2c0   :  { %v965_v38 = vmul.f32 1.442695, %v949_v40  ;;  %v924_v6 = vpop.xlane.xlu1 %923 }
 0x2c1   :  { %v952_v63 = vsub.f32 %v7954_v58, %v924_v6  ;;  %v920_v43 = vpop.xlane.xlu0 %919 }
 0x2c2   :  { %6914 = vpow2.f32 %v965_v38  ;;  %v950_v56 = vsub.f32 %v7957_v60, %v920_v43 }
 0x2c3   :  { %6916 = vpow2.f32 %v969_v15  ;;  %v971_v4 = vmul.f32 1.442695, %v952_v63 }
 0x2c4   :  { %v967_v59 = vmul.f32 1.442695, %v950_v56 }
 0x2c5   :  { %v926_v45 = vpop.xlane.xlu0 %925 }
 0x2c6   :  { %6918 = vpow2.f32 %v967_v59  ;;  %v953_v47 = vsub.f32 %v7964_v0, %v926_v45 }
 0x2c7   :  { %v928_v50 = vpop.xlane.xlu1 %927  ;;  %6920 = vpow2.f32 %v971_v4 }
 0x2c8   :  { %v973_v44 = vmul.f32 1.442695, %v953_v47  ;;  %v954_v52 = vsub.f32 %v7969_v9, %v928_v50 }
 0x2c9   :  { %v930_v18 = vpop.xlane.xlu0 %929 }
 0x2ca   :  { %6922 = vpow2.f32 %v973_v44  ;;  %v975_v41 = vmul.f32 1.442695, %v954_v52  ;;  %v955_v58 = vsub.f32 %v7975_v24, %v930_v18 }
 0x2cb   :  { %v932_v40 = vpop.xlane.xlu1 %931 }
 0x2cc   :  { %v8130_v38 = vpop.eup %6914  ;;  %v977_v56 = vmul.f32 1.442695, %v955_v58  ;;  %v956_v60 = vsub.f32 %v7981_v26, %v932_v40  ;;  %6924 = vpow2.f32 %v975_v41 }
 0x2cd   :  { %v934_v59 = vpop.xlane.xlu0 %933  ;;  %997 = vadd.xlane.f32.xlu0 %v8130_v38  ;;  %v8135_v0 = vpop.eup %6916 }
 0x2ce   :  { %6926 = vpow2.f32 %v977_v56  ;;  %v979_v45 = vmul.f32 1.442695, %v956_v60  ;;  %v957_v47 = vsub.f32 %v7987_v30, %v934_v59 }
 0x2cf   :  { %v936_v9 = vpop.xlane.xlu1 %935 }
 0x2d0   :  { %v8137_v6 = vpop.eup %6918  ;;  %v981_v24 = vmul.f32 1.442695, %v957_v47  ;;  %v958_v15 = vsub.f32 %v7993_v48, %v936_v9  ;;  %6928 = vpow2.f32 %v979_v45 }
 0x2d1   :  { %v938_v63 = vpop.xlane.xlu0 %937  ;;  %999 = vadd.xlane.f32.xlu1 %v8137_v6  ;;  %1001 = vadd.xlane.f32.xlu0 %v8135_v0  ;;  %v8143_v4 = vpop.eup %6920 }
 0x2d2   :  { %6930 = vpow2.f32 %v981_v24  ;;  %v983_v26 = vmul.f32 1.442695, %v958_v15  ;;  %v959_v43 = vsub.f32 %v7999_v53, %v938_v63 }
 0x2d3   :  { %v940_v30 = vpop.xlane.xlu1 %939 }
 0x2d4   :  { %v8145_v50 = vpop.eup %6922  ;;  %v985_v44 = vmul.f32 1.442695, %v959_v43  ;;  %v960_v52 = vsub.f32 %v8005_v61, %v940_v30  ;;  %6932 = vpow2.f32 %v983_v26 }
 0x2d5   :  { %v942_v48 = vpop.xlane.xlu0 %941  ;;  %1003 = vadd.xlane.f32.xlu1 %v8143_v4  ;;  %1005 = vadd.xlane.f32.xlu0 %v8145_v50 }
 0x2d6   :  { %6934 = vpow2.f32 %v985_v44  ;;  %v987_v18 = vmul.f32 1.442695, %v960_v52  ;;  %v961_v41 = vsub.f32 %v8011_v29, %v942_v48  ;;  %v8151_v58 = vpop.eup %6924 }
 0x2d7   :  { %v944_v53 = vpop.xlane.xlu1 %943 }
 0x2d8   :  { %v8153_v40 = vpop.eup %6926  ;;  %v989_v56 = vmul.f32 1.442695, %v961_v41  ;;  %v962_v60 = vsub.f32 %v8017_v22, %v944_v53  ;;  %6936 = vpow2.f32 %v987_v18 }
 0x2d9   :  { %v946_v61 = vpop.xlane.xlu0 %945  ;;  %1007 = vadd.xlane.f32.xlu1 %v8151_v58  ;;  %1009 = vadd.xlane.f32.xlu0 %v8153_v40 }
 0x2da   :  { %6938 = vpow2.f32 %v989_v56  ;;  %v991_v59 = vmul.f32 1.442695, %v962_v60  ;;  %v963_v45 = vsub.f32 %v8023_v21, %v946_v61  ;;  %v8159_v47 = vpop.eup %6928 }
 0x2db   :  { %v948_v29 = vpop.xlane.xlu1 %947 }
 0x2dc   :  { %v8161_v9 = vpop.eup %6930  ;;  %v993_v24 = vmul.f32 1.442695, %v963_v45  ;;  %v964_v15 = vsub.f32 %v8029_v20, %v948_v29  ;;  %6940 = vpow2.f32 %v991_v59 }
 0x2dd   :  { %1011 = vadd.xlane.f32.xlu1 %v8159_v47  ;;  %1013 = vadd.xlane.f32.xlu0 %v8161_v9  ;;  %v402_v22 = vpop.xlane.xlu0 %401 }
 0x2de   :  { %6942 = vpow2.f32 %v993_v24  ;;  %v995_v63 = vmul.f32 1.442695, %v964_v15  ;;  %v433_v26 = vsub.f32 %v8034_v23, %v402_v22  ;;  %v8167_v43 = vpop.eup %6932 }
 0x2df   :  { %v404_v21 = vpop.xlane.xlu1 %403 }
 0x2e0   :  { %v8169_v30 = vpop.eup %6934  ;;  %v449_v44 = vmul.f32 1.442695, %v433_v26  ;;  %v434_v52 = vsub.f32 %v8039_v7, %v404_v21  ;;  %6944 = vpow2.f32 %v995_v63 }
 0x2e1   :  { %1015 = vadd.xlane.f32.xlu1 %v8167_v43  ;;  %1017 = vadd.xlane.f32.xlu0 %v8169_v30  ;;  %v406_v20 = vpop.xlane.xlu0 %405 }
 0x2e2   :  { %6946 = vpow2.f32 %v449_v44  ;;  %v451_v48 = vmul.f32 1.442695, %v434_v52  ;;  %v435_v18 = vsub.f32 %v8044_v34, %v406_v20  ;;  %v8175_v41 = vpop.eup %6936 }
 0x2e3   :  { %v408_v23 = vpop.xlane.xlu1 %407 }
 0x2e4   :  { %v8177_v53 = vpop.eup %6938  ;;  %v453_v56 = vmul.f32 1.442695, %v435_v18  ;;  %v436_v60 = vsub.f32 %v8051_v12, %v408_v23  ;;  %6948 = vpow2.f32 %v451_v48 }
 0x2e5   :  { %1019 = vadd.xlane.f32.xlu1 %v8175_v41  ;;  %1021 = vadd.xlane.f32.xlu0 %v8177_v53  ;;  %v410_v7 = vpop.xlane.xlu0 %409 }
 0x2e6   :  { %6950 = vpow2.f32 %v453_v56  ;;  %v455_v61 = vmul.f32 1.442695, %v436_v60  ;;  %v437_v59 = vsub.f32 %v8056_v14, %v410_v7  ;;  %v8183_v45 = vpop.eup %6940 }
 0x2e7   :  { %v412_v34 = vpop.xlane.xlu1 %411 }
 0x2e8   :  { %v8185_v29 = vpop.eup %6942  ;;  %v457_v24 = vmul.f32 1.442695, %v437_v59  ;;  %v438_v15 = vsub.f32 %v8061_v11, %v412_v34  ;;  %6952 = vpow2.f32 %v455_v61 }
 0x2e9   :  { %1023 = vadd.xlane.f32.xlu1 %v8183_v45  ;;  %1025 = vadd.xlane.f32.xlu0 %v8185_v29  ;;  %v414_v12 = vpop.xlane.xlu0 %413 }
 0x2ea   :  { %6954 = vpow2.f32 %v457_v24  ;;  %v459_v22 = vmul.f32 1.442695, %v438_v15  ;;  %v439_v63 = vsub.f32 %v8066_v8, %v414_v12  ;;  %v8191_v26 = vpop.eup %6944 }
 0x2eb   :  { %v416_v14 = vpop.xlane.xlu1 %415 }
 0x2ec   :  { %v8193_v21 = vpop.eup %6946  ;;  %v461_v44 = vmul.f32 1.442695, %v439_v63  ;;  %v440_v52 = vsub.f32 %v8073_v36, %v416_v14  ;;  %6956 = vpow2.f32 %v459_v22 }
 0x2ed   :  { %1027 = vadd.xlane.f32.xlu1 %v8191_v26  ;;  %481 = vadd.xlane.f32.xlu0 %v8193_v21  ;;  %v418_v11 = vpop.xlane.xlu0 %417 }
 0x2ee   :  { %6958 = vpow2.f32 %v461_v44  ;;  %v463_v20 = vmul.f32 1.442695, %v440_v52  ;;  %v441_v48 = vsub.f32 %v8078_v10, %v418_v11  ;;  %v8199_v18 = vpop.eup %6948 }
 0x2ef   :  { %v420_v8 = vpop.xlane.xlu1 %419 }
 0x2f0   :  { %v8201_v23 = vpop.eup %6950  ;;  %v465_v56 = vmul.f32 1.442695, %v441_v48  ;;  %v442_v60 = vsub.f32 %v8083_v19, %v420_v8  ;;  %6960 = vpow2.f32 %v463_v20 }
 0x2f1   :  { %483 = vadd.xlane.f32.xlu1 %v8199_v18  ;;  %485 = vadd.xlane.f32.xlu0 %v8201_v23  ;;  %v422_v36 = vpop.xlane.xlu0 %421 }
 0x2f2   :  { %6962 = vpow2.f32 %v465_v56  ;;  %v467_v7 = vmul.f32 1.442695, %v442_v60  ;;  %v443_v61 = vsub.f32 %v8088_v16, %v422_v36  ;;  %v8207_v59 = vpop.eup %6952 }
 0x2f3   :  { %v424_v10 = vpop.xlane.xlu1 %423 }
 0x2f4   :  { %v8209_v34 = vpop.eup %6954  ;;  %v469_v24 = vmul.f32 1.442695, %v443_v61  ;;  %v444_v15 = vsub.f32 %v8095_v17, %v424_v10  ;;  %6964 = vpow2.f32 %v467_v7 }
 0x2f5   :  { %487 = vadd.xlane.f32.xlu1 %v8207_v59  ;;  %489 = vadd.xlane.f32.xlu0 %v8209_v34  ;;  %v426_v19 = vpop.xlane.xlu0 %425 }
 0x2f6   :  { %6966 = vpow2.f32 %v469_v24  ;;  %v471_v12 = vmul.f32 1.442695, %v444_v15  ;;  %v445_v22 = vsub.f32 %v8100_v37, %v426_v19  ;;  %v8215_v63 = vpop.eup %6956 }
 0x2f7   :  { %v428_v16 = vpop.xlane.xlu1 %427 }
 0x2f8   :  { %v8217_v14 = vpop.eup %6958  ;;  %v473_v44 = vmul.f32 1.442695, %v445_v22  ;;  %v446_v52 = vsub.f32 %v8105_v5, %v428_v16  ;;  %6968 = vpow2.f32 %v471_v12 }
 0x2f9   :  { %491 = vadd.xlane.f32.xlu1 %v8215_v63  ;;  %493 = vadd.xlane.f32.xlu0 %v8217_v14  ;;  %v430_v17 = vpop.xlane.xlu0 %429 }
 0x2fa   :  { %6970 = vpow2.f32 %v473_v44  ;;  %v475_v11 = vmul.f32 1.442695, %v446_v52  ;;  %v447_v20 = vsub.f32 %v8110_v39, %v430_v17  ;;  %v8223_v48 = vpop.eup %6960 }
 0x2fb   :  { %v432_v37 = vpop.xlane.xlu1 %431 }
 0x2fc   :  { %v8225_v8 = vpop.eup %6962  ;;  %v477_v56 = vmul.f32 1.442695, %v447_v20  ;;  %v448_v60 = vsub.f32 %v8117_v42, %v432_v37  ;;  %6972 = vpow2.f32 %v475_v11 }
 0x2fd   :  { %495 = vadd.xlane.f32.xlu1 %v8223_v48  ;;  %497 = vadd.xlane.f32.xlu0 %v8225_v8 }
 0x2fe   :  { %6974 = vpow2.f32 %v477_v56  ;;  %v479_v5 = vmul.f32 1.442695, %v448_v60  ;;  %v8230_v36 = vpop.eup %6964 }
 0x300   :  { %v8232_v7 = vpop.eup %6966  ;;  %6976 = vpow2.f32 %v479_v5 }
 0x301   :  { %499 = vadd.xlane.f32.xlu1 %v8230_v36  ;;  %501 = vadd.xlane.f32.xlu0 %v8232_v7 }
 0x302   :  { %v8236_v39 = vpop.eup %6968 }
 0x304   :  { %v8238_v61 = vpop.eup %6970 }
 0x305   :  { %503 = vadd.xlane.f32.xlu1 %v8236_v39  ;;  %505 = vadd.xlane.f32.xlu0 %v8238_v61 }
 0x306   :  { %v8242_v42 = vpop.eup %6972 }
 0x308   :  { %v8244_v10 = vpop.eup %6974 }
 0x309   :  { %507 = vadd.xlane.f32.xlu1 %v8242_v42  ;;  %509 = vadd.xlane.f32.xlu0 %v8244_v10 }
 0x30a   :  { %v8248_v24 = vpop.eup %6976 }
 0x30d   :  { %511 = vadd.xlane.f32.xlu1 %v8248_v24 }
 0x326   :  { %v6105_v15 = vpop.f32.mrb[64].mxu1 }
 0x327   :  { %v1565_v19 = vpop.f32.mrb[65].mxu1  ;;  %v8255_v44 = vadd.f32 %v6105_v15, %v7937_v46 }
 0x328   :  { %v8252_v12 = vadd.f32 %v1565_v19, %v7939_v49  ;;  %v6106_v22 = vpop.f32.mrb[66].mxu1 }
 0x329   :  { %v1568_v16 = vpop.f32.mrb[67].mxu1  ;;  %v8262_v17 = vadd.f32 %v6106_v22, %v7948_v55 }
 0x32a   :  { %v8258_v52 = vadd.f32 %v1568_v16, %v7951_v57  ;;  %1628 = vmax.xlane.f32.xlu0 %v8252_v12 }
 0x32c   :  { %1630 = vmax.xlane.f32.xlu1 %v8258_v52 }
 0x32e   :  { %v6109_v11 = vpop.f32.mrb[68].mxu1  ;;  %1632 = vmax.xlane.f32.xlu0 %v8255_v44 }
 0x32f   :  { %v1581_v49 = vpop.f32.mrb[69].mxu1  ;;  %v8271_v57 = vadd.f32 %v6109_v11, %v7972_v13 }
 0x330   :  { %v8267_v20 = vadd.f32 %v1581_v49, %v7961_v62  ;;  %v6110_v37 = vpop.f32.mrb[70].mxu1  ;;  %1634 = vmax.xlane.f32.xlu1 %v8262_v17 }
 0x331   :  { %v1584_v46 = vpop.f32.mrb[71].mxu1  ;;  %v8278_v55 = vadd.f32 %v6110_v37, %v7978_v25 }
 0x332   :  { %v8274_v56 = vadd.f32 %v1584_v46, %v7966_v2  ;;  %1636 = vmax.xlane.f32.xlu0 %v8267_v20 }
 0x334   :  { %1638 = vmax.xlane.f32.xlu1 %v8274_v56 }
 0x336   :  { %v6113_v60 = vpop.f32.mrb[72].mxu1  ;;  %1640 = vmax.xlane.f32.xlu0 %v8271_v57 }
 0x337   :  { %v1597_v62 = vpop.f32.mrb[73].mxu1  ;;  %v8287_v2 = vadd.f32 %v6113_v60, %v7996_v51  ;;  %v6894_v60 = vld [vmem:[#allocation2 + $0x30] sm:$0xff]  }
 0x338   :  { %v8283_v5 = vadd.f32 %v1597_v62, %v7984_v28  ;;  %v6114_v15 = vpop.f32.mrb[74].mxu1  ;;  %1642 = vmax.xlane.f32.xlu1 %v8278_v55  ;;  %v6895_v62 = vld [vmem:[#allocation2 + $0x38] sm:$0xff]   ;;  %6171 = vmatprep.subr.bf16.mxu1 %v6894_v60 }
 0x339   :  { %v1600_v13 = vpop.f32.mrb[75].mxu1  ;;  %v8294_v25 = vadd.f32 %v6114_v15, %v8002_v54  ;;  %6172 = vmatpush3.bf16.msra.mxu1 %v6894_v60 }
 0x33a   :  { %v8290_v19 = vadd.f32 %v1600_v13, %v7990_v32  ;;  %1644 = vmax.xlane.f32.xlu0 %v8283_v5  ;;  %6173 = vmatprep.subr.bf16.mxu1 %v6895_v62 }
 0x33c   :  { %1646 = vmax.xlane.f32.xlu1 %v8290_v19 }
 0x33d   :  { %6174 = vmatpush3.bf16.msra.mxu1 %v6895_v62 }
 0x33e   :  { %v6117_v22 = vpop.f32.mrb[76].mxu1  ;;  %1648 = vmax.xlane.f32.xlu0 %v8287_v2 }
 0x33f   :  { %v1613_v28 = vpop.f32.mrb[77].mxu1  ;;  %v8303_v32 = vadd.f32 %v6117_v22, %v8020_v31 }
 0x340   :  { %v8299_v16 = vadd.f32 %v1613_v28, %v8008_v1  ;;  %v6118_v11 = vpop.f32.mrb[78].mxu1  ;;  %1650 = vmax.xlane.f32.xlu1 %v8294_v25 }
 0x341   :  { %v1616_v51 = vpop.f32.mrb[79].mxu1  ;;  %v8310_v54 = vadd.f32 %v6118_v11, %v8026_v3 }
 0x342   :  { %v8306_v49 = vadd.f32 %v1616_v51, %v8014_v27  ;;  %1652 = vmax.xlane.f32.xlu0 %v8299_v16 }
 0x343   :  { %10118 = vst [vmem:[#allocation23_spill] sm:$0xff] %v8310_v54 }
 0x344   :  { %1654 = vmax.xlane.f32.xlu1 %v8306_v49 }
 0x346   :  { %1656 = vmax.xlane.f32.xlu0 %v8303_v32 }
 0x348   :  { %1658 = vmax.xlane.f32.xlu1 %v8310_v54 }
 0x35a   :  { %v998_v1 = vpop.xlane.xlu0 %997 }
 0x35b   :  { %6978 = vrcp.f32 %v998_v1 }
 0x35e   :  { %v1000_v37 = vpop.xlane.xlu1 %999  ;;  %v1002_v46 = vpop.xlane.xlu0 %1001 }
 0x35f   :  { %6980 = vrcp.f32 %v1000_v37 }
 0x360   :  { %6982 = vrcp.f32 %v1002_v46 }
 0x362   :  { %v1004_v31 = vpop.xlane.xlu1 %1003  ;;  %v1006_v27 = vpop.xlane.xlu0 %1005 }
 0x363   :  { %6984 = vrcp.f32 %v1004_v31 }
 0x364   :  { %6986 = vrcp.f32 %v1006_v27 }
 0x365   :  { %v6979_v13 = vpop.eup %6978 }
 0x366   :  { %v1008_v3 = vpop.xlane.xlu1 %1007  ;;  %v1010_v15 = vpop.xlane.xlu0 %1009  ;;  %v1045_v51 = vmul.f32 %v6979_v13, %v8130_v38  ;;  %v8322_v38 = vld [vmem:[%s10057_s0 + $0x8] sm:$0xff]  }
 0x367   :  { %6988 = vrcp.f32 %v1008_v3  ;;  %6176 = vmatmul.mubr.msk.bf16.vlgmr.msra.gmra.mrb[80].mxu1 %vm150_vm0, %v8322_v38 }
 0x368   :  { %6990 = vrcp.f32 %v1010_v15 }
 0x369   :  { %v6981_v22 = vpop.eup %6980 }
 0x36a   :  { %v1012_v28 = vpop.xlane.xlu1 %1011  ;;  %v1014_v11 = vpop.xlane.xlu0 %1013  ;;  %v1046_v1 = vmul.f32 %v6981_v22, %v8137_v6 }
 0x36b   :  { %v6983_v37 = vpop.eup %6982  ;;  %6992 = vrcp.f32 %v1012_v28 }
 0x36c   :  { %v1175_v46 = vpack.c.bf16 %v1046_v1, %v1045_v51  ;;  %6994 = vrcp.f32 %v1014_v11  ;;  %v1047_v27 = vmul.f32 %v6983_v37, %v8135_v0  ;;  %v8329_v0 = vld [vmem:[%s10057_s0 + $0x10] sm:$0xff]  }
 0x36d   :  { %v6985_v31 = vpop.eup %6984  ;;  %6179 = vmatprep.mubr.msk.bf16.mxu1 %vm150_vm0, %v8329_v0 }
 0x36e   :  { %v1048_v3 = vmul.f32 %v6985_v31, %v8143_v4  ;;  %v1016_v60 = vpop.xlane.xlu1 %1015  ;;  %6019 = vmatprep.mubr.bf16.mxu0 %v1175_v46  ;;  %v1018_v15 = vpop.xlane.xlu0 %1017 }
 0x36f   :  { %v6987_v54 = vpop.eup %6986  ;;  %6996 = vrcp.f32 %v1016_v60 }
 0x370   :  { %v1176_v6 = vpack.c.bf16 %v1048_v3, %v1047_v27  ;;  %6998 = vrcp.f32 %v1018_v15  ;;  %v1049_v22 = vmul.f32 %v6987_v54, %v8145_v50  ;;  %v10119_v50 = vld [vmem:[#allocation18_spill] sm:$0xff] }
 0x371   :  { %v6989_v4 = vpop.eup %6988 }
 0x372   :  { %v1020_v62 = vpop.xlane.xlu1 %1019  ;;  %6020 = vmatmul.mubr.bf16.vlgmr.msra.gmra.mrb[48].mxu0 %v1176_v6  ;;  %v1022_v13 = vpop.xlane.xlu0 %1021  ;;  %v1050_v28 = vmul.f32 %v6989_v4, %v8151_v58  ;;  %v10120_v4 = vld [vmem:[#allocation17_spill] sm:$0xff] }
 0x373   :  { %v6991_v11 = vpop.eup %6990  ;;  %7000 = vrcp.f32 %v1020_v62  ;;  %6036 = vmatpush3.bf16.msra.mxu0 %v7812_v35  ;;  %v8343_v35 = vld [vmem:[%s10057_s0 + $0x18] sm:$0xff]  }
 0x374   :  { %6037 = vmatprep.subr.bf16.mxu0 %v7810_v33  ;;  %v1177_v51 = vpack.c.bf16 %v1050_v28, %v1049_v22  ;;  %7002 = vrcp.f32 %v1022_v13  ;;  %v1051_v31 = vmul.f32 %v6991_v11, %v8153_v40  ;;  %6180 = vmatmul.mubr.msk.bf16.gmra.mrb[84].mxu1 %vm150_vm0, %v8343_v35  ;;  %v8351_v40 = vld [vmem:[%s10057_s0 + $0x20] sm:$0xff]  }
 0x375   :  { %v6993_v1 = vpop.eup %6992  ;;  %6183 = vmatprep.mubr.msk.bf16.mxu1 %vm150_vm0, %v8351_v40 }
 0x376   :  { %v1024_v37 = vpop.xlane.xlu1 %1023  ;;  %6023 = vmatprep.mubr.bf16.mxu0 %v1177_v51  ;;  %v1026_v46 = vpop.xlane.xlu0 %1025  ;;  %v1052_v27 = vmul.f32 %v6993_v1, %v8159_v47 }
 0x377   :  { %v6995_v3 = vpop.eup %6994  ;;  %7004 = vrcp.f32 %v1024_v37  ;;  %6038 = vmatpush3.bf16.msra.mxu0 %v7810_v33 }
 0x378   :  { %6039 = vmatprep.subr.bf16.mxu0 %v10119_v50  ;;  %v1178_v58 = vpack.c.bf16 %v1052_v27, %v1051_v31  ;;  %7006 = vrcp.f32 %v1026_v46  ;;  %v1053_v60 = vmul.f32 %v6995_v3, %v8161_v9  ;;  %v8365_v9 = vld [vmem:[%s10057_s0 + $0x28] sm:$0xff]  }
 0x379   :  { %v6997_v33 = vpop.eup %6996 }
 0x37a   :  { %v1028_v47 = vpop.xlane.xlu1 %1027  ;;  %6024 = vmatmul.mubr.bf16.gmra.mrb[52].mxu0 %v1178_v58  ;;  %v482_v54 = vpop.xlane.xlu0 %481  ;;  %v1054_v15 = vmul.f32 %v6997_v33, %v8167_v43  ;;  %v10121_v43 = vld [vmem:[#allocation20_spill] sm:$0xff]  ;;  %v10122_v58 = vld [vmem:[#allocation19_spill] sm:$0xff] }
 0x37b   :  { %v6999_v6 = vpop.eup %6998  ;;  %7008 = vrcp.f32 %v1028_v47  ;;  %6040 = vmatpush3.bf16.msra.mxu0 %v10119_v50 }
 0x37c   :  { %6041 = vmatprep.subr.bf16.mxu0 %v10120_v4  ;;  %v1179_v62 = vpack.c.bf16 %v1054_v15, %v1053_v60  ;;  %7010 = vrcp.f32 %v482_v54  ;;  %v1055_v11 = vmul.f32 %v6999_v6, %v8169_v30  ;;  %6184 = vmatmul.mubr.msk.bf16.gmra.mrb[88].mxu1 %vm150_vm0, %v8365_v9  ;;  %v8373_v30 = vld [vmem:[%s10057_s0 + $0x30] sm:$0xff]  }
 0x37d   :  { %v7001_v13 = vpop.eup %7000  ;;  %6187 = vmatprep.mubr.msk.bf16.mxu1 %vm150_vm0, %v8373_v30 }
 0x37e   :  { %v484_v22 = vpop.xlane.xlu1 %483  ;;  %6027 = vmatprep.mubr.bf16.mxu0 %v1179_v62  ;;  %v486_v28 = vpop.xlane.xlu0 %485  ;;  %v1056_v51 = vmul.f32 %v7001_v13, %v8175_v41 }
 0x37f   :  { %v7003_v1 = vpop.eup %7002  ;;  %7012 = vrcp.f32 %v484_v22  ;;  %6042 = vmatpush3.bf16.msra.mxu0 %v10120_v4 }
 0x380   :  { %6043 = vmatprep.subr.bf16.mxu0 %v10121_v43  ;;  %v1180_v37 = vpack.c.bf16 %v1056_v51, %v1055_v11  ;;  %7014 = vrcp.f32 %v486_v28  ;;  %v1057_v27 = vmul.f32 %v7003_v1, %v8177_v53  ;;  %v8387_v53 = vld [vmem:[%s10057_s0 + $0x38] sm:$0xff]   ;;  %v10124_v1 = vld [vmem:[#allocation21_spill] sm:$0xff] }
 0x381   :  { %v7005_v41 = vpop.eup %7004 }
 0x382   :  { %v488_v46 = vpop.xlane.xlu1 %487  ;;  %6028 = vmatmul.mubr.bf16.gmra.mrb[56].mxu0 %v1180_v37  ;;  %v490_v31 = vpop.xlane.xlu0 %489  ;;  %v1058_v3 = vmul.f32 %v7005_v41, %v8183_v45  ;;  %v10123_v45 = vld [vmem:[#allocation22_spill] sm:$0xff]  ;;  %v6892_v37 = vld [vmem:[#allocation4 + $0x20] sm:$0xff]  }
 0x383   :  { %v7007_v50 = vpop.eup %7006  ;;  %7016 = vrcp.f32 %v488_v46  ;;  %6044 = vmatpush3.bf16.msra.mxu0 %v10121_v43 }
 0x384   :  { %6045 = vmatprep.subr.bf16.mxu0 %v10122_v58  ;;  %v1181_v33 = vpack.c.bf16 %v1058_v3, %v1057_v27  ;;  %7018 = vrcp.f32 %v490_v31  ;;  %v1059_v15 = vmul.f32 %v7007_v50, %v8185_v29  ;;  %6188 = vmatmul.mubr.msk.bf16.gmra.mrb[92].mxu1 %vm150_vm0, %v8387_v53  ;;  %v8395_v29 = vld [vmem:[%s10057_s0] sm:$0xff]   ;;  %v6893_v50 = vld [vmem:[#allocation4 + $0x28] sm:$0xff]  }
 0x385   :  { %v7009_v47 = vpop.eup %7008  ;;  %6227 = vmatprep.mubr.msk.bf16.mxu1 %vm150_vm0, %v8395_v29 }
 0x386   :  { %v492_v54 = vpop.xlane.xlu1 %491  ;;  %6031 = vmatprep.mubr.bf16.mxu0 %v1181_v33  ;;  %v494_v60 = vpop.xlane.xlu0 %493  ;;  %v1060_v6 = vmul.f32 %v7009_v47, %v8191_v26 }
 0x387   :  { %v7011_v4 = vpop.eup %7010  ;;  %7020 = vrcp.f32 %v492_v54  ;;  %6046 = vmatpush3.bf16.msra.mxu0 %v10122_v58 }
 0x388   :  { %6047 = vmatprep.subr.bf16.mxu0 %v10123_v45  ;;  %v1182_v62 = vpack.c.bf16 %v1060_v6, %v1059_v15  ;;  %7022 = vrcp.f32 %v494_v60  ;;  %v529_v28 = vmul.f32 %v7011_v4, %v8193_v21 }
 0x389   :  { %v7013_v26 = vpop.eup %7012 }
 0x38a   :  { %v496_v13 = vpop.xlane.xlu1 %495  ;;  %6032 = vmatmul.mubr.bf16.gmra.mrb[60].mxu0 %v1182_v62  ;;  %v498_v22 = vpop.xlane.xlu0 %497  ;;  %v530_v11 = vmul.f32 %v7013_v26, %v8199_v18 }
 0x38b   :  { %v7015_v51 = vpop.eup %7014  ;;  %7024 = vrcp.f32 %v496_v13  ;;  %6048 = vmatpush3.bf16.msra.mxu0 %v10123_v45 }
 0x38c   :  { %6049 = vmatprep.subr.bf16.mxu0 %v10124_v1  ;;  %v658_v43 = vpack.c.bf16 %v530_v11, %v529_v28  ;;  %7026 = vrcp.f32 %v498_v22  ;;  %v531_v46 = vmul.f32 %v7015_v51, %v8201_v23 }
 0x38d   :  { %v7017_v41 = vpop.eup %7016 }
 0x38e   :  { %v532_v31 = vmul.f32 %v7017_v41, %v8207_v59  ;;  %v500_v27 = vpop.xlane.xlu1 %499  ;;  %6051 = vmatprep.mubr.bf16.mxu0 %v658_v43  ;;  %v502_v3 = vpop.xlane.xlu0 %501 }
 0x38f   :  { %v7019_v21 = vpop.eup %7018  ;;  %7028 = vrcp.f32 %v500_v27  ;;  %6050 = vmatpush3.bf16.msra.mxu0 %v10124_v1 }
 0x390   :  { %6119 = vmatprep.subr.bf16.mxu0 %v6892_v37  ;;  %v659_v18 = vpack.c.bf16 %v532_v31, %v531_v46  ;;  %7030 = vrcp.f32 %v502_v3  ;;  %v533_v54 = vmul.f32 %v7019_v21, %v8209_v34 }
 0x391   :  { %v7021_v58 = vpop.eup %7020 }
 0x392   :  { %v504_v33 = vpop.xlane.xlu1 %503  ;;  %6052 = vmatmul.mubr.bf16.vlgmr.msra.gmra.mrb[48].mxu0 %v659_v18  ;;  %v506_v47 = vpop.xlane.xlu0 %505  ;;  %v534_v23 = vmul.f32 %v7021_v58, %v8215_v63 }
 0x393   :  { %v7023_v59 = vpop.eup %7022  ;;  %7032 = vrcp.f32 %v504_v33  ;;  %6120 = vmatpush3.bf16.msra.mxu0 %v6892_v37 }
 0x394   :  { %v660_v60 = vpack.c.bf16 %v534_v23, %v533_v54  ;;  %6121 = vmatprep.subr.bf16.mxu0 %v6893_v50  ;;  %7034 = vrcp.f32 %v506_v47  ;;  %v535_v45 = vmul.f32 %v7023_v59, %v8217_v14 }
 0x395   :  { %v7025_v15 = vpop.eup %7024 }
 0x396   :  { %v508_v6 = vpop.xlane.xlu1 %507  ;;  %6055 = vmatprep.mubr.bf16.mxu0 %v660_v60  ;;  %v510_v4 = vpop.xlane.xlu0 %509  ;;  %v536_v62 = vmul.f32 %v7025_v15, %v8223_v48 }
 0x397   :  { %v7027_v26 = vpop.eup %7026  ;;  %7036 = vrcp.f32 %v508_v6  ;;  %6122 = vmatpush3.bf16.msra.mxu0 %v6893_v50 }
 0x398   :  { %v661_v34 = vpack.c.bf16 %v536_v62, %v535_v45  ;;  %7038 = vrcp.f32 %v510_v4  ;;  %v537_v22 = vmul.f32 %v7027_v26, %v8225_v8 }
 0x399   :  { %v7029_v13 = vpop.eup %7028 }
 0x39a   :  { %v512_v63 = vpop.xlane.xlu1 %511  ;;  %6056 = vmatmul.mubr.bf16.gmra.mrb[52].mxu0 %v661_v34  ;;  %v538_v28 = vmul.f32 %v7029_v13, %v8230_v36  ;;  %v7031_v11 = vpop.eup %7030 }
 0x39b   :  { %7040 = vrcp.f32 %v512_v63  ;;  %v539_v14 = vmul.f32 %v7031_v11, %v8232_v7 }
 0x39c   :  { %v662_v51 = vpack.c.bf16 %v538_v28, %v537_v22 }
 0x39d   :  { %v7033_v1 = vpop.eup %7032 }
 0x39e   :  { %6059 = vmatprep.mubr.bf16.mxu0 %v662_v51  ;;  %v540_v48 = vmul.f32 %v7033_v1, %v8236_v39  ;;  %v7035_v43 = vpop.eup %7034 }
 0x39f   :  { %v541_v46 = vmul.f32 %v7035_v43, %v8238_v61 }
 0x3a0   :  { %v663_v37 = vpack.c.bf16 %v540_v48, %v539_v14 }
 0x3a1   :  { %v7037_v41 = vpop.eup %7036 }
 0x3a2   :  { %6060 = vmatmul.mubr.bf16.gmra.mrb[56].mxu0 %v663_v37  ;;  %v542_v31 = vmul.f32 %v7037_v41, %v8242_v42  ;;  %v7039_v8 = vpop.eup %7038 }
 0x3a3   :  { %v543_v3 = vmul.f32 %v7039_v8, %v8244_v10 }
 0x3a4   :  { %v664_v27 = vpack.c.bf16 %v542_v31, %v541_v46 }
 0x3a5   :  { %v7041_v36 = vpop.eup %7040 }
 0x3a6   :  { %6063 = vmatprep.mubr.bf16.mxu0 %v664_v27  ;;  %v544_v21 = vmul.f32 %v7041_v36, %v8248_v24 }
 0x3a8   :  { %v665_v18 = vpack.c.bf16 %v544_v21, %v543_v3 }
 0x3aa   :  { %6064 = vmatmul.mubr.bf16.gmra.mrb[60].mxu0 %v665_v18 }
 0x3ab   :  { %6123 = vmatprep.mubr.msk.bf16.mxu0 %vm150_vm0, %v8395_v29 }
 0x3b2   :  { %6124 = vmatmul.mubr.msk.bf16.vlgmr.msra.gmra.mrb[64].mxu0 %vm150_vm0, %v8322_v38 }
 0x3b3   :  { %6127 = vmatprep.mubr.msk.bf16.mxu0 %vm150_vm0, %v8329_v0 }
 0x3b7   :  { %v1629_v7 = vpop.xlane.xlu0 %1628 }
 0x3b8   :  { %v1660_v39 = vsub.f32 %v8252_v12, %v1629_v7 }
 0x3b9   :  { %v1631_v61 = vpop.xlane.xlu1 %1630 }
 0x3ba   :  { %v1676_v42 = vmul.f32 1.442695, %v1660_v39  ;;  %v1661_v10 = vsub.f32 %v8258_v52, %v1631_v61  ;;  %6128 = vmatmul.mubr.msk.bf16.gmra.mrb[68].mxu0 %vm150_vm0, %v8343_v35  ;;  %v10125_v39 = vld [vmem:[#allocation23_spill] sm:$0xff] }
 0x3bb   :  { %v1633_v24 = vpop.xlane.xlu0 %1632  ;;  %6131 = vmatprep.mubr.msk.bf16.mxu0 %vm150_vm0, %v8351_v40 }
 0x3bc   :  { %7042 = vpow2.f32 %v1676_v42  ;;  %v1678_v50 = vmul.f32 1.442695, %v1661_v10  ;;  %v1662_v58 = vsub.f32 %v8255_v44, %v1633_v24 }
 0x3bd   :  { %v1635_v33 = vpop.xlane.xlu1 %1634 }
 0x3be   :  { %7044 = vpow2.f32 %v1678_v50  ;;  %v1680_v47 = vmul.f32 1.442695, %v1662_v58  ;;  %v1663_v12 = vsub.f32 %v8262_v17, %v1635_v33 }
 0x3bf   :  { %v1637_v54 = vpop.xlane.xlu0 %1636 }
 0x3c0   :  { %7046 = vpow2.f32 %v1680_v47  ;;  %v1682_v23 = vmul.f32 1.442695, %v1663_v12  ;;  %v1664_v52 = vsub.f32 %v8267_v20, %v1637_v54  ;;  %v6896_v47 = vld [vmem:[#allocation4 + $0x30] sm:$0xff]   ;;  %v6897_v12 = vld [vmem:[#allocation4 + $0x38] sm:$0xff]   ;;  %v6898_v54 = vld [vmem:[#allocation2 + $0x40] sm:$0xff]  }
 0x3c1   :  { %v1639_v59 = vpop.xlane.xlu1 %1638  ;;  %6223 = vmatprep.subr.bf16.mxu1 %v6896_v47 }
 0x3c2   :  { %7048 = vpow2.f32 %v1682_v23  ;;  %v1684_v60 = vmul.f32 1.442695, %v1664_v52  ;;  %v1665_v15 = vsub.f32 %v8274_v56, %v1639_v59  ;;  %6132 = vmatmul.mubr.msk.bf16.gmra.mrb[72].mxu0 %vm150_vm0, %v8365_v9  ;;  %6224 = vmatpush3.bf16.msra.mxu1 %v6896_v47  ;;  %v6899_v23 = vld [vmem:[#allocation2 + $0x48] sm:$0xff]  }
 0x3c3   :  { %v1641_v6 = vpop.xlane.xlu0 %1640  ;;  %6135 = vmatprep.mubr.msk.bf16.mxu0 %vm150_vm0, %v8373_v30  ;;  %6225 = vmatprep.subr.bf16.mxu1 %v6897_v12 }
 0x3c4   :  { %7050 = vpow2.f32 %v1684_v60  ;;  %v1686_v44 = vmul.f32 1.442695, %v1665_v15  ;;  %v1666_v17 = vsub.f32 %v8271_v57, %v1641_v6  ;;  %v10126_v60 = vld [vmem:[#allocation9_spill] sm:$0xff] }
 0x3c5   :  { %v1643_v4 = vpop.xlane.xlu1 %1642 }
 0x3c6   :  { %v8439_v45 = vpop.eup %7042  ;;  %7052 = vpow2.f32 %v1686_v44  ;;  %v1688_v20 = vmul.f32 1.442695, %v1666_v17  ;;  %v1667_v62 = vsub.f32 %v8278_v55, %v1643_v4  ;;  %6226 = vmatpush3.bf16.msra.mxu1 %v6897_v12 }
 0x3c7   :  { %1708 = vadd.xlane.f32.xlu0 %v8439_v45  ;;  %v1645_v56 = vpop.xlane.xlu0 %1644  ;;  %6275 = vmatprep.subr.bf16.mxu1 %v6898_v54 }
 0x3c8   :  { %v8443_v26 = vpop.eup %7044  ;;  %7054 = vpow2.f32 %v1688_v20  ;;  %v1690_v34 = vmul.f32 1.442695, %v1667_v62  ;;  %v1668_v13 = vsub.f32 %v8283_v5, %v1645_v56  ;;  %v10127_v62 = vld [vmem:[#allocation10_spill] sm:$0xff] }
 0x3c9   :  { %1710 = vadd.xlane.f32.xlu1 %v8443_v26  ;;  %v1647_v63 = vpop.xlane.xlu1 %1646  ;;  %6228 = vmatmul.mubr.msk.bf16.vlgmr.msra.gmra.mrb[96].mxu1 %vm150_vm0, %v8322_v38 }
 0x3ca   :  { %v8447_v57 = vpop.eup %7046  ;;  %7056 = vpow2.f32 %v1690_v34  ;;  %v1692_v22 = vmul.f32 1.442695, %v1668_v13  ;;  %v1669_v28 = vsub.f32 %v8290_v19, %v1647_v63  ;;  %6136 = vmatmul.mubr.msk.bf16.gmra.mrb[76].mxu0 %vm150_vm0, %v8387_v53  ;;  %6231 = vmatprep.mubr.msk.bf16.mxu1 %vm150_vm0, %v8329_v0 }
 0x3cb   :  { %1712 = vadd.xlane.f32.xlu0 %v8447_v57  ;;  %v1649_v55 = vpop.xlane.xlu0 %1648  ;;  %6276 = vmatpush3.bf16.msra.mxu1 %v6898_v54 }
 0x3cc   :  { %v8453_v11 = vpop.eup %7048  ;;  %7058 = vpow2.f32 %v1692_v22  ;;  %v1694_v51 = vmul.f32 1.442695, %v1669_v28  ;;  %v1670_v5 = vsub.f32 %v8287_v2, %v1649_v55  ;;  %6277 = vmatprep.subr.bf16.mxu1 %v6899_v23  ;;  %v10128_v28 = vld [vmem:[#allocation11_spill] sm:$0xff] }
 0x3cd   :  { %1714 = vadd.xlane.f32.xlu1 %v8453_v11  ;;  %v1651_v1 = vpop.xlane.xlu1 %1650 }
 0x3ce   :  { %v8457_v14 = vpop.eup %7050  ;;  %7060 = vpow2.f32 %v1694_v51  ;;  %v1696_v48 = vmul.f32 1.442695, %v1670_v5  ;;  %v1671_v19 = vsub.f32 %v8294_v25, %v1651_v1 }
 0x3cf   :  { %1716 = vadd.xlane.f32.xlu0 %v8457_v14  ;;  %v1653_v43 = vpop.xlane.xlu0 %1652  ;;  %6278 = vmatpush3.bf16.msra.mxu1 %v6899_v23 }
 0x3d0   :  { %v8461_v37 = vpop.eup %7052  ;;  %7062 = vpow2.f32 %v1696_v48  ;;  %v1698_v41 = vmul.f32 1.442695, %v1671_v19  ;;  %v1672_v46 = vsub.f32 %v8299_v16, %v1653_v43  ;;  %6835 = vmatprep.subr.msk.bf16.mxu1 %vm150_vm0, %v8395_v29  ;;  %v10129_v43 = vld [vmem:[#allocation12_spill] sm:$0xff] }
 0x3d1   :  { %1718 = vadd.xlane.f32.xlu1 %v8461_v37  ;;  %v1655_v2 = vpop.xlane.xlu1 %1654  ;;  %6232 = vmatmul.mubr.msk.bf16.gmra.mrb[100].mxu1 %vm150_vm0, %v8343_v35 }
 0x3d2   :  { %v8465_v31 = vpop.eup %7054  ;;  %7064 = vpow2.f32 %v1698_v41  ;;  %v1700_v8 = vmul.f32 1.442695, %v1672_v46  ;;  %v1673_v27 = vsub.f32 %v8306_v49, %v1655_v2  ;;  %6235 = vmatprep.mubr.msk.bf16.mxu1 %vm150_vm0, %v8351_v40 }
 0x3d3   :  { %1720 = vadd.xlane.f32.xlu0 %v8465_v31  ;;  %v1657_v25 = vpop.xlane.xlu0 %1656 }
 0x3d4   :  { %v8469_v36 = vpop.eup %7056  ;;  %7066 = vpow2.f32 %v1700_v8  ;;  %v1702_v3 = vmul.f32 1.442695, %v1673_v27  ;;  %v1674_v21 = vsub.f32 %v8303_v32, %v1657_v25 }
 0x3d5   :  { %1722 = vadd.xlane.f32.xlu1 %v8469_v36  ;;  %v1659_v16 = vpop.xlane.xlu1 %1658 }
 0x3d6   :  { %v8473_v18 = vpop.eup %7058  ;;  %7068 = vpow2.f32 %v1702_v3  ;;  %v1704_v7 = vmul.f32 1.442695, %v1674_v21  ;;  %v1675_v61 = vsub.f32 %v10125_v39, %v1659_v16  ;;  %v10132_v3 = vld [vmem:[#allocation13_spill] sm:$0xff] }
 0x3d7   :  { %1724 = vadd.xlane.f32.xlu0 %v8473_v18 }
 0x3d8   :  { %v8477_v49 = vpop.eup %7060  ;;  %7070 = vpow2.f32 %v1704_v7  ;;  %v1706_v42 = vmul.f32 1.442695, %v1675_v61  ;;  %v10134_v61 = vld [vmem:[#allocation14_spill] sm:$0xff] }
 0x3d9   :  { %1726 = vadd.xlane.f32.xlu1 %v8477_v49  ;;  %6236 = vmatmul.mubr.msk.bf16.gmra.mrb[104].mxu1 %vm150_vm0, %v8365_v9 }
 0x3da   :  { %v8480_v10 = vpop.eup %7062  ;;  %7072 = vpow2.f32 %v1706_v42  ;;  %6239 = vmatprep.mubr.msk.bf16.mxu1 %vm150_vm0, %v8373_v30 }
 0x3db   :  { %1728 = vadd.xlane.f32.xlu0 %v8480_v10 }
 0x3dc   :  { %v8483_v32 = vpop.eup %7064 }
 0x3dd   :  { %1730 = vadd.xlane.f32.xlu1 %v8483_v32 }
 0x3de   :  { %v8486_v24 = vpop.eup %7066 }
 0x3df   :  { %1732 = vadd.xlane.f32.xlu0 %v8486_v24 }
 0x3e0   :  { %v8489_v50 = vpop.eup %7068 }
 0x3e1   :  { %1734 = vadd.xlane.f32.xlu1 %v8489_v50  ;;  %6240 = vmatmul.mubr.msk.bf16.gmra.mrb[108].mxu1 %vm150_vm0, %v8387_v53 }
 0x3e2   :  { %v8492_v58 = vpop.eup %7070  ;;  %6279 = vmatprep.mubr.msk.bf16.mxu1 %vm150_vm0, %v8395_v29 }
 0x3e3   :  { %1736 = vadd.xlane.f32.xlu0 %v8492_v58 }
 0x3e4   :  { %v8495_v33 = vpop.eup %7072 }
 0x3e5   :  { %1738 = vadd.xlane.f32.xlu1 %v8495_v33 }
 0x3e9   :  { %6280 = vmatmul.mubr.msk.bf16.vlgmr.msra.gmra.mrb[112].mxu1 %vm150_vm0, %v8322_v38 }
 0x3ea   :  { %6283 = vmatprep.mubr.msk.bf16.mxu1 %vm150_vm0, %v8329_v0  ;;  %6296 = vmatpush3.bf16.xpose.msra.mxu1 %v10126_v60 }
 0x3eb   :  { %6836 = vmatprep.subr.msk.bf16.mxu1 %vm150_vm0, %v8322_v38 }
 0x3f1   :  { %6284 = vmatmul.mubr.msk.bf16.gmra.mrb[116].mxu1 %vm150_vm0, %v8343_v35 }
 0x3f2   :  { %6287 = vmatprep.mubr.msk.bf16.mxu1 %vm150_vm0, %v8351_v40  ;;  %6298 = vmatpush3.bf16.xpose.msra.mxu1 %v10127_v62 }
 0x3f3   :  { %6837 = vmatprep.subr.msk.bf16.mxu1 %vm150_vm0, %v8329_v0 }
 0x3f9   :  { %6288 = vmatmul.mubr.msk.bf16.gmra.mrb[120].mxu1 %vm150_vm0, %v8365_v9 }
 0x3fa   :  { %6291 = vmatprep.mubr.msk.bf16.mxu1 %vm150_vm0, %v8373_v30  ;;  %6300 = vmatpush3.bf16.xpose.msra.mxu1 %v10128_v28 }
 0x3fb   :  { %6838 = vmatprep.subr.msk.bf16.mxu1 %vm150_vm0, %v8343_v35 }
 0x401   :  { %6292 = vmatmul.mubr.msk.bf16.gmra.mrb[124].mxu1 %vm150_vm0, %v8387_v53 }
 0x402   :  { %6302 = vmatpush3.bf16.xpose.msra.mxu1 %v10129_v43 }
 0x403   :  { %6839 = vmatprep.subr.msk.bf16.mxu1 %vm150_vm0, %v8351_v40 }
 0x40a   :  { %6304 = vmatpush3.bf16.xpose.msra.mxu1 %v10132_v3 }
 0x40b   :  { %6840 = vmatprep.subr.msk.bf16.mxu1 %vm150_vm0, %v8365_v9 }
 0x412   :  { %6306 = vmatpush3.bf16.xpose.msra.mxu1 %v10134_v61 }
 0x413   :  { %6841 = vmatprep.subr.msk.bf16.mxu1 %vm150_vm0, %v8373_v30 }
 0x43a   :  { %v8527_v44 = vpop.f32.mrb[80].mxu1 }
 0x43b   :  { %v8531_v20 = vpop.f32.mrb[81].mxu1 }
 0x43c   :  { %v8534_v56 = vpop.f32.mrb[82].mxu1 }
 0x43d   :  { %v8542_v63 = vpop.f32.mrb[83].mxu1 }
 0x454   :  { %v1709_v52 = vpop.xlane.xlu0 %1708 }
 0x455   :  { %7074 = vrcp.f32 %v1709_v52 }
 0x456   :  { %v1711_v59 = vpop.xlane.xlu1 %1710 }
 0x457   :  { %7076 = vrcp.f32 %v1711_v59 }
 0x45a   :  { %v1715_v54 = vpop.xlane.xlu1 %1714 }
 0x45b   :  { %7078 = vrcp.f32 %v1715_v54 }
 0x45f   :  { %v7075_v15 = vpop.eup %7074 }
 0x460   :  { %v1756_v17 = vmul.f32 %v7075_v15, %v8439_v45  ;;  %v1713_v15 = vpop.xlane.xlu0 %1712 }
 0x461   :  { %v7077_v6 = vpop.eup %7076 }
 0x462   :  { %v1757_v4 = vmul.f32 %v7077_v6, %v8443_v26  ;;  %v8548_v26 = vpop.f32.mrb[84].mxu1  ;;  %v10135_v6 = vld [vmem:[#allocation15_spill] sm:$0xff] }
 0x463   :  { %v8550_v22 = vpop.f32.mrb[85].mxu1  ;;  %6308 = vmatpush3.bf16.xpose.msra.mxu1 %v10135_v6 }
 0x464   :  { %v1886_v34 = vpack.c.bf16 %v1757_v4, %v1756_v17  ;;  %v8553_v55 = vpop.f32.mrb[86].mxu1  ;;  %6842 = vmatprep.subr.msk.bf16.mxu1 %vm150_vm0, %v8387_v53  ;;  %v1719_v4 = vpop.xlane.xlu1 %1718 }
 0x465   :  { %v8561_v5 = vpop.f32.mrb[87].mxu1  ;;  %v1717_v39 = vpop.xlane.xlu0 %1716  ;;  %7080 = vrcp.f32 %v1719_v4 }
 0x466   :  { %6155 = vmatprep.mubr.bf16.mxu0 %v1886_v34  ;;  %v8565_v48 = vpop.f32.mrb[88].mxu1  ;;  %7082 = vrcp.f32 %v1713_v15 }
 0x467   :  { %v8567_v19 = vpop.f32.mrb[89].mxu1  ;;  %7084 = vrcp.f32 %v1717_v39 }
 0x468   :  { %v8570_v41 = vpop.f32.mrb[90].mxu1 }
 0x469   :  { %v8576_v2 = vpop.f32.mrb[91].mxu1  ;;  %v1721_v51 = vpop.xlane.xlu0 %1720 }
 0x46a   :  { %v8580_v27 = vpop.f32.mrb[92].mxu1 }
 0x46b   :  { %10130 = vst [vmem:[#allocation18_spill] sm:$0xff] %v8580_v27  ;;  %v8582_v25 = vpop.f32.mrb[93].mxu1 }
 0x46c   :  { %10131 = vst [vmem:[#allocation17_spill] sm:$0xff] %v8582_v25  ;;  %v8585_v21 = vpop.f32.mrb[94].mxu1 }
 0x46d   :  { %10133 = vst [vmem:[#allocation20_spill] sm:$0xff] %v8585_v21  ;;  %v8591_v7 = vpop.f32.mrb[95].mxu1 }
 0x485   :  { %v6125_v42 = vpop.f32.mrb[64].mxu0 }
 0x486   :  { %v1823_v47 = vpop.f32.mrb[65].mxu0 }
 0x487   :  { %v6126_v12 = vpop.f32.mrb[66].mxu0 }
 0x488   :  { %v1895_v23 = vpack.c.bf16 %v6126_v12, %v6125_v42  ;;  %v1826_v52 = vpop.f32.mrb[67].mxu0  ;;  %v10136_v12 = vld [vmem:[#allocation16_spill] sm:$0xff] }
 0x489   :  { %v1894_v59 = vpack.c.bf16 %v1826_v52, %v1823_v47  ;;  %6310 = vmatpush3.bf16.xpose.msra.mxu1 %v10136_v12  ;;  %v1723_v47 = vpop.xlane.xlu1 %1722 }
 0x48a   :  { %7086 = vrcp.f32 %v1723_v47 }
 0x48b   :  { %6139 = vmatprep.subr.bf16.mxu0 %v1894_v59 }
 0x48c   :  { %6140 = vmatpush3.bf16.msra.mxu0 %v1894_v59 }
 0x48d   :  { %v6129_v17 = vpop.f32.mrb[68].mxu0  ;;  %6141 = vmatprep.subr.bf16.mxu0 %v1895_v23 }
 0x48e   :  { %v1839_v34 = vpop.f32.mrb[69].mxu0 }
 0x48f   :  { %v6130_v16 = vpop.f32.mrb[70].mxu0 }
 0x490   :  { %v1897_v46 = vpack.c.bf16 %v6130_v16, %v6129_v17  ;;  %v1842_v8 = vpop.f32.mrb[71].mxu0  ;;  %6142 = vmatpush3.bf16.msra.mxu0 %v1895_v23  ;;  %v1727_v16 = vpop.xlane.xlu1 %1726 }
 0x491   :  { %v1896_v42 = vpack.c.bf16 %v1842_v8, %v1839_v34  ;;  %v1725_v8 = vpop.xlane.xlu0 %1724  ;;  %7088 = vrcp.f32 %v1727_v16 }
 0x492   :  { %7090 = vrcp.f32 %v1721_v51 }
 0x493   :  { %6143 = vmatprep.subr.bf16.mxu0 %v1896_v42  ;;  %7092 = vrcp.f32 %v1725_v8 }
 0x494   :  { %6144 = vmatpush3.bf16.msra.mxu0 %v1896_v42  ;;  %v1731_v42 = vpop.xlane.xlu1 %1730 }
 0x495   :  { %v6133_v52 = vpop.f32.mrb[72].mxu0  ;;  %6145 = vmatprep.subr.bf16.mxu0 %v1897_v46  ;;  %7094 = vrcp.f32 %v1731_v42 }
 0x496   :  { %v1855_v1 = vpop.f32.mrb[73].mxu0 }
 0x497   :  { %v6134_v59 = vpop.f32.mrb[74].mxu0 }
 0x498   :  { %v1899_v13 = vpack.c.bf16 %v6134_v59, %v6133_v52  ;;  %v1858_v45 = vpop.f32.mrb[75].mxu0  ;;  %6146 = vmatpush3.bf16.msra.mxu0 %v1897_v46  ;;  %v7079_v46 = vpop.eup %7078 }
 0x499   :  { %v1898_v27 = vpack.c.bf16 %v1858_v45, %v1855_v1  ;;  %v1729_v45 = vpop.xlane.xlu0 %1728  ;;  %v7081_v1 = vpop.eup %7080  ;;  %v1759_v15 = vmul.f32 %v7079_v46, %v8453_v11 }
 0x49a   :  { %v7083_v39 = vpop.eup %7082  ;;  %v1735_v4 = vpop.xlane.xlu1 %1734  ;;  %v1761_v47 = vmul.f32 %v7081_v1, %v8461_v37 }
 0x49b   :  { %6147 = vmatprep.subr.bf16.mxu0 %v1898_v27  ;;  %v1758_v52 = vmul.f32 %v7083_v39, %v8447_v57  ;;  %7096 = vrcp.f32 %v1735_v4 }
 0x49c   :  { %6148 = vmatpush3.bf16.msra.mxu0 %v1898_v27  ;;  %v7085_v27 = vpop.eup %7084  ;;  %7098 = vrcp.f32 %v1729_v45 }
 0x49d   :  { %v6137_v23 = vpop.f32.mrb[76].mxu0  ;;  %6149 = vmatprep.subr.bf16.mxu0 %v1899_v13  ;;  %v1760_v51 = vmul.f32 %v7085_v27, %v8457_v14  ;;  %v7087_v59 = vpop.eup %7086 }
 0x49e   :  { %v1871_v17 = vpop.f32.mrb[77].mxu0  ;;  %v7089_v11 = vpop.eup %7088 }
 0x49f   :  { %v6138_v34 = vpop.f32.mrb[78].mxu0  ;;  %v1888_v16 = vpack.c.bf16 %v1761_v47, %v1760_v51  ;;  %v7091_v8 = vpop.eup %7090 }
 0x4a0   :  { %v1901_v21 = vpack.c.bf16 %v6138_v34, %v6137_v23  ;;  %v1874_v25 = vpop.f32.mrb[79].mxu0  ;;  %6150 = vmatpush3.bf16.msra.mxu0 %v1899_v13  ;;  %v1733_v13 = vpop.xlane.xlu0 %1732  ;;  %v1763_v23 = vmul.f32 %v7087_v59, %v8469_v36 }
 0x4a1   :  { %v1900_v54 = vpack.c.bf16 %v1874_v25, %v1871_v17  ;;  %v1887_v25 = vpack.c.bf16 %v1759_v15, %v1758_v52  ;;  %7100 = vrcp.f32 %v1733_v13  ;;  %v7093_v37 = vpop.eup %7092  ;;  %v1739_v57 = vpop.xlane.xlu1 %1738  ;;  %v1762_v17 = vmul.f32 %v7091_v8, %v8465_v31 }
 0x4a2   :  { %7102 = vrcp.f32 %v1739_v57  ;;  %v1764_v34 = vmul.f32 %v7093_v37, %v8473_v18 }
 0x4a3   :  { %6151 = vmatprep.subr.bf16.mxu0 %v1900_v54  ;;  %v1889_v42 = vpack.c.bf16 %v1763_v23, %v1762_v17 }
 0x4a4   :  { %6152 = vmatpush3.bf16.msra.mxu0 %v1900_v54  ;;  %v1737_v14 = vpop.xlane.xlu0 %1736  ;;  %v7095_v54 = vpop.eup %7094 }
 0x4a5   :  { %6153 = vmatprep.subr.bf16.mxu0 %v1901_v21  ;;  %7104 = vrcp.f32 %v1737_v14  ;;  %v7097_v45 = vpop.eup %7096  ;;  %v1767_v1 = vmul.f32 %v7095_v54, %v8483_v32 }
 0x4a6   :  { %v7099_v36 = vpop.eup %7098  ;;  %v1769_v31 = vmul.f32 %v7097_v45, %v8489_v50 }
 0x4a7   :  { %v1766_v18 = vmul.f32 %v7099_v36, %v8480_v10 }
 0x4a8   :  { %6154 = vmatpush3.bf16.msra.mxu0 %v1901_v21  ;;  %v1765_v21 = vmul.f32 %v7089_v11, %v8477_v49 }
 0x4a9   :  { %6827 = vmatprep.subr.msk.bf16.mxu0 %vm150_vm0, %v8395_v29  ;;  %v1891_v27 = vpack.c.bf16 %v1767_v1, %v1766_v18 }
 0x4aa   :  { %v1890_v46 = vpack.c.bf16 %v1765_v21, %v1764_v34 }
 0x4ab   :  { %6156 = vmatmul.mubr.bf16.vlgmr.msra.gmra.mrb[48].mxu0 %v1887_v25  ;;  %v7101_v49 = vpop.eup %7100 }
 0x4ac   :  { %6159 = vmatprep.mubr.bf16.mxu0 %v1888_v16  ;;  %v1768_v39 = vmul.f32 %v7101_v49, %v8486_v24  ;;  %v7103_v15 = vpop.eup %7102  ;;  %v10137_v24 = vpack.c.bf16 %v8542_v63, %v8531_v20 }
 0x4ad   :  { %v1771_v47 = vmul.f32 %v7103_v15, %v8495_v33  ;;  %v10145_v33 = vld [vmem:[#allocation20_spill] sm:$0xff] }
 0x4ae   :  { %v1892_v4 = vpack.c.bf16 %v1769_v31, %v1768_v39 }
 0x4b1   :  { %6192 = vmatpush3.bf16.xpose.msra.mxu0 %v10126_v60 }
 0x4b2   :  { %6828 = vmatprep.subr.msk.bf16.mxu0 %vm150_vm0, %v8322_v38  ;;  %v7105_v38 = vpop.eup %7104 }
 0x4b3   :  { %6160 = vmatmul.mubr.bf16.gmra.mrb[52].mxu0 %v1889_v42  ;;  %v1770_v32 = vmul.f32 %v7105_v38, %v8492_v58  ;;  %v6229_v58 = vpop.f32.mrb[96].mxu1 }
 0x4b4   :  { %6163 = vmatprep.mubr.bf16.mxu0 %v1890_v46 }
 0x4b5   :  { %v1893_v10 = vpack.c.bf16 %v1771_v47, %v1770_v32 }
 0x4b9   :  { %6194 = vmatpush3.bf16.xpose.msra.mxu0 %v10127_v62 }
 0x4ba   :  { %6829 = vmatprep.subr.msk.bf16.mxu0 %vm150_vm0, %v8329_v0  ;;  %v10138_v0 = vpack.c.bf16 %v8534_v56, %v8527_v44  ;;  %v10146_v44 = vld [vmem:[#allocation18_spill] sm:$0xff]  ;;  %v2453_v56 = vpop.f32.mrb[97].mxu1 }
 0x4bb   :  { %6164 = vmatmul.mubr.bf16.gmra.mrb[56].mxu0 %v1891_v27  ;;  %v10147_v20 = vpack.c.bf16 %v10145_v33, %v10146_v44  ;;  %v6230_v63 = vpop.f32.mrb[98].mxu1  ;;  %v8687_v44 = vld [vmem:[#allocation6 + $0x8] sm:$0xff] }
 0x4bc   :  { %6167 = vmatprep.mubr.bf16.mxu0 %v1892_v4 }
 0x4c1   :  { %6196 = vmatpush3.bf16.xpose.msra.mxu0 %v10128_v28 }
 0x4c2   :  { %6830 = vmatprep.subr.msk.bf16.mxu0 %vm150_vm0, %v8343_v35  ;;  %v10139_v35 = vpack.c.bf16 %v8561_v5, %v8550_v22  ;;  %v2456_v22 = vpop.f32.mrb[99].mxu1 }
 0x4c3   :  { %6168 = vmatmul.mubr.bf16.gmra.mrb[60].mxu0 %v1893_v10  ;;  %v6233_v5 = vpop.f32.mrb[100].mxu1 }
 0x4c4   :  { %6207 = vmatprep.mubr.msk.bf16.mxu0 %vm150_vm0, %v10137_v24 }
 0x4c9   :  { %6198 = vmatpush3.bf16.xpose.msra.mxu0 %v10129_v43 }
 0x4ca   :  { %6831 = vmatprep.subr.msk.bf16.mxu0 %vm150_vm0, %v8351_v40  ;;  %v10140_v40 = vpack.c.bf16 %v8553_v55, %v8548_v26  ;;  %v2525_v26 = vpack.c.bf16 %v6230_v63, %v6229_v58  ;;  %v2524_v55 = vpack.c.bf16 %v2456_v22, %v2453_v56  ;;  %v8693_v56 = vld [vmem:[#allocation6 + $0x10] sm:$0xff]  ;;  %v8699_v63 = vld [vmem:[#allocation6 + $0x18] sm:$0xff] }
 0x4d1   :  { %6200 = vmatpush3.bf16.xpose.msra.mxu0 %v10132_v3 }
 0x4d2   :  { %6832 = vmatprep.subr.msk.bf16.mxu0 %vm150_vm0, %v8365_v9  ;;  %v10141_v9 = vpack.c.bf16 %v8576_v2, %v8567_v19 }
 0x4d9   :  { %6202 = vmatpush3.bf16.xpose.msra.mxu0 %v10134_v61 }
 0x4da   :  { %6833 = vmatprep.subr.msk.bf16.mxu0 %vm150_vm0, %v8373_v30  ;;  %v10142_v30 = vpack.c.bf16 %v8570_v41, %v8565_v48  ;;  %v2469_v48 = vpop.f32.mrb[101].mxu1 }
 0x4db   :  { %v6234_v19 = vpop.f32.mrb[102].mxu1 }
 0x4dc   :  { %v2527_v41 = vpack.c.bf16 %v6234_v19, %v6233_v5  ;;  %v2472_v2 = vpop.f32.mrb[103].mxu1  ;;  %v8705_v5 = vld [vmem:[#allocation6 + $0x20] sm:$0xff] }
 0x4dd   :  { %v6237_v52 = vpop.f32.mrb[104].mxu1 }
 0x4de   :  { %v2485_v13 = vpop.f32.mrb[105].mxu1 }
 0x4df   :  { %v6238_v51 = vpop.f32.mrb[106].mxu1 }
 0x4e0   :  { %v2529_v25 = vpack.c.bf16 %v6238_v51, %v6237_v52  ;;  %v2488_v59 = vpop.f32.mrb[107].mxu1  ;;  %v8717_v52 = vld [vmem:[#allocation6 + $0x30] sm:$0xff]  ;;  %v8723_v51 = vld [vmem:[#allocation6 + $0x38] sm:$0xff] }
 0x4e1   :  { %6204 = vmatpush3.bf16.xpose.msra.mxu0 %v10135_v6  ;;  %v2528_v16 = vpack.c.bf16 %v2488_v59, %v2485_v13  ;;  %v6241_v11 = vpop.f32.mrb[108].mxu1 }
 0x4e2   :  { %6834 = vmatprep.subr.msk.bf16.mxu0 %vm150_vm0, %v8387_v53  ;;  %v10143_v53 = vld [vmem:[#allocation17_spill] sm:$0xff]  ;;  %v2501_v8 = vpop.f32.mrb[109].mxu1 }
 0x4e3   :  { %v10144_v50 = vpack.c.bf16 %v8591_v7, %v10143_v53  ;;  %v2526_v7 = vpack.c.bf16 %v2472_v2, %v2469_v48  ;;  %v6242_v37 = vpop.f32.mrb[110].mxu1  ;;  %v8682_v53 = vld [vmem:[#allocation6] sm:$0xff]  ;;  %v8711_v2 = vld [vmem:[#allocation6 + $0x28] sm:$0xff] }
 0x4e4   :  { %v2531_v57 = vpack.c.bf16 %v6242_v37, %v6241_v11  ;;  %v2504_v23 = vpop.f32.mrb[111].mxu1  ;;  %v8729_v11 = vld [vmem:[#allocation6 + $0x40] sm:$0xff] }
 0x4e5   :  { %v2530_v21 = vpack.c.bf16 %v2504_v23, %v2501_v8  ;;  %v6281_v14 = vpop.f32.mrb[112].mxu1  ;;  %v8735_v23 = vld [vmem:[#allocation6 + $0x48] sm:$0xff] }
 0x4e6   :  { %v2696_v17 = vpop.f32.mrb[113].mxu1 }
 0x4e7   :  { %v6282_v34 = vpop.f32.mrb[114].mxu1 }
 0x4e8   :  { %v2760_v42 = vpack.c.bf16 %v6282_v34, %v6281_v14  ;;  %v2699_v54 = vpop.f32.mrb[115].mxu1  ;;  %v8741_v14 = vld [vmem:[#allocation6 + $0x50] sm:$0xff]  ;;  %v8747_v34 = vld [vmem:[#allocation6 + $0x58] sm:$0xff] }
 0x4e9   :  { %6206 = vmatpush3.bf16.xpose.msra.mxu0 %v10136_v12  ;;  %v2759_v46 = vpack.c.bf16 %v2699_v54, %v2696_v17  ;;  %v6285_v45 = vpop.f32.mrb[116].mxu1 }
 0x4ea   :  { %6243 = vmatprep.subr.bf16.mxu0 %v2524_v55  ;;  %v2712_v36 = vpop.f32.mrb[117].mxu1 }
 0x4eb   :  { %6311 = vmatprep.mubr.msk.bf16.mxu1 %vm150_vm0, %v2759_v46  ;;  %v6286_v49 = vpop.f32.mrb[118].mxu1 }
 0x4ec   :  { %6312 = vmatmul.mubr.msk.bf16.vlgmr.msra.gmra.mrb[128].mxu1 %vm150_vm0, %v2760_v42  ;;  %v2762_v1 = vpack.c.bf16 %v6286_v49, %v6285_v45  ;;  %v2715_v31 = vpop.f32.mrb[119].mxu1  ;;  %v8753_v45 = vld [vmem:[#allocation6 + $0x60] sm:$0xff] }
 0x4ed   :  { %v2761_v18 = vpack.c.bf16 %v2715_v31, %v2712_v36  ;;  %v6289_v39 = vpop.f32.mrb[120].mxu1  ;;  %v8759_v31 = vld [vmem:[#allocation6 + $0x68] sm:$0xff] }
 0x4ee   :  { %v2728_v27 = vpop.f32.mrb[121].mxu1 }
 0x4ef   :  { %6315 = vmatprep.mubr.msk.bf16.mxu1 %vm150_vm0, %v2761_v18  ;;  %v6290_v15 = vpop.f32.mrb[122].mxu1 }
 0x4f0   :  { %6208 = vmatmul.mubr.msk.bf16.vlgmr.msra.gmra.mrb[80].mxu0 %vm150_vm0, %v10138_v0  ;;  %v2764_v4 = vpack.c.bf16 %v6290_v15, %v6289_v39  ;;  %v2731_v38 = vpop.f32.mrb[123].mxu1  ;;  %v8765_v39 = vld [vmem:[#allocation6 + $0x70] sm:$0xff]  ;;  %v8771_v15 = vld [vmem:[#allocation6 + $0x78] sm:$0xff] }
 0x4f1   :  { %6211 = vmatprep.mubr.msk.bf16.mxu0 %vm150_vm0, %v10139_v35  ;;  %6244 = vmatpush3.bf16.msra.mxu0 %v2524_v55  ;;  %v2763_v47 = vpack.c.bf16 %v2731_v38, %v2728_v27  ;;  %v6293_v32 = vpop.f32.mrb[124].mxu1 }
 0x4f2   :  { %6245 = vmatprep.subr.bf16.mxu0 %v2525_v26  ;;  %v2744_v10 = vpop.f32.mrb[125].mxu1 }
 0x4f3   :  { %v6294_v24 = vpop.f32.mrb[126].mxu1 }
 0x4f4   :  { %6316 = vmatmul.mubr.msk.bf16.gmra.mrb[132].mxu1 %vm150_vm0, %v2762_v1  ;;  %v2766_v0 = vpack.c.bf16 %v6294_v24, %v6293_v32  ;;  %v2747_v35 = vpop.f32.mrb[127].mxu1 }
 0x4f5   :  { %6246 = vmatpush3.bf16.msra.mxu0 %v2525_v26  ;;  %6319 = vmatprep.mubr.msk.bf16.mxu1 %vm150_vm0, %v2763_v47 }
 0x4f6   :  { %6247 = vmatprep.subr.bf16.mxu0 %v2526_v7 }
 0x4f8   :  { %6212 = vmatmul.mubr.msk.bf16.gmra.mrb[84].mxu0 %vm150_vm0, %v10140_v40  ;;  %v2765_v40 = vpack.c.bf16 %v2747_v35, %v2744_v10 }
 0x4f9   :  { %6215 = vmatprep.mubr.msk.bf16.mxu0 %vm150_vm0, %v10141_v9  ;;  %6248 = vmatpush3.bf16.msra.mxu0 %v2526_v7 }
 0x4fa   :  { %6249 = vmatprep.subr.bf16.mxu0 %v2527_v41 }
 0x4fc   :  { %6320 = vmatmul.mubr.msk.bf16.gmra.mrb[136].mxu1 %vm150_vm0, %v2764_v4 }
 0x4fd   :  { %6250 = vmatpush3.bf16.msra.mxu0 %v2527_v41  ;;  %6323 = vmatprep.mubr.msk.bf16.mxu1 %vm150_vm0, %v2765_v40 }
 0x4fe   :  { %6251 = vmatprep.subr.bf16.mxu0 %v2528_v16 }
 0x500   :  { %6216 = vmatmul.mubr.msk.bf16.gmra.mrb[88].mxu0 %vm150_vm0, %v10142_v30 }
 0x501   :  { %6219 = vmatprep.mubr.msk.bf16.mxu0 %vm150_vm0, %v10144_v50  ;;  %6252 = vmatpush3.bf16.msra.mxu0 %v2528_v16 }
 0x502   :  { %6253 = vmatprep.subr.bf16.mxu0 %v2529_v25 }
 0x504   :  { %6324 = vmatmul.mubr.msk.bf16.gmra.mrb[140].mxu1 %vm150_vm0, %v2766_v0 }
 0x505   :  { %6254 = vmatpush3.bf16.msra.mxu0 %v2529_v25  ;;  %6383 = vmatprep.mubr.msk.bf16.mxu1 %vm150_vm0, %v8395_v29 }
 0x506   :  { %6255 = vmatprep.subr.bf16.mxu0 %v2530_v21 }
 0x508   :  { %6220 = vmatmul.mubr.msk.bf16.gmra.mrb[92].mxu0 %vm150_vm0, %v10147_v20 }
 0x509   :  { %6256 = vmatpush3.bf16.msra.mxu0 %v2530_v21 }
 0x50a   :  { %6257 = vmatprep.subr.bf16.mxu0 %v2531_v57 }
 0x50d   :  { %6258 = vmatpush3.bf16.msra.mxu0 %v2531_v57 }
 0x5bf   :  { %v8778_v38 = vpop.f32.mrb[128].mxu1 }
 0x5c0   :  { %v8780_v47 = vpop.f32.mrb[129].mxu1 }
 0x5c1   :  { %v8782_v32 = vpop.f32.mrb[130].mxu1 }
 0x5c2   :  { %v8784_v10 = vpop.f32.mrb[131].mxu1 }
 0x5c3   :  { %v6209_v9 = vpop.f32.mrb[80].mxu0 }
 0x5c4   :  { %v2195_v30 = vpop.f32.mrb[81].mxu0  ;;  %v8696_v29 = vadd.f32 %v8693_v56, %v6209_v9 }
 0x5c5   :  { %v8685_v50 = vadd.f32 %v8682_v53, %v2195_v30  ;;  %v6210_v58 = vpop.f32.mrb[82].mxu0 }
 0x5c6   :  { %v2198_v33 = vpop.f32.mrb[83].mxu0  ;;  %v8702_v26 = vadd.f32 %v8699_v63, %v6210_v58 }
 0x5c7   :  { %v8690_v20 = vadd.f32 %v8687_v44, %v2198_v33  ;;  %2258 = vmax.xlane.f32.xlu0 %v8685_v50  ;;  %v8786_v24 = vpop.f32.mrb[132].mxu1 }
 0x5c8   :  { %v8788_v0 = vpop.f32.mrb[133].mxu1 }
 0x5c9   :  { %2260 = vmax.xlane.f32.xlu1 %v8690_v20  ;;  %v8790_v35 = vpop.f32.mrb[134].mxu1 }
 0x5ca   :  { %v8792_v40 = vpop.f32.mrb[135].mxu1 }
 0x5cb   :  { %v6213_v22 = vpop.f32.mrb[84].mxu0  ;;  %2262 = vmax.xlane.f32.xlu0 %v8696_v29 }
 0x5cc   :  { %v2211_v55 = vpop.f32.mrb[85].mxu0  ;;  %v8720_v13 = vadd.f32 %v8717_v52, %v6213_v22 }
 0x5cd   :  { %v8708_v48 = vadd.f32 %v8705_v5, %v2211_v55  ;;  %v6214_v19 = vpop.f32.mrb[86].mxu0  ;;  %2264 = vmax.xlane.f32.xlu1 %v8702_v26 }
 0x5ce   :  { %v2214_v41 = vpop.f32.mrb[87].mxu0  ;;  %v8726_v25 = vadd.f32 %v8723_v51, %v6214_v19 }
 0x5cf   :  { %v8714_v7 = vadd.f32 %v8711_v2, %v2214_v41  ;;  %2266 = vmax.xlane.f32.xlu0 %v8708_v48  ;;  %v8794_v9 = vpop.f32.mrb[136].mxu1 }
 0x5d0   :  { %v8796_v30 = vpop.f32.mrb[137].mxu1 }
 0x5d1   :  { %2268 = vmax.xlane.f32.xlu1 %v8714_v7  ;;  %v8798_v58 = vpop.f32.mrb[138].mxu1 }
 0x5d2   :  { %v8800_v33 = vpop.f32.mrb[139].mxu1 }
 0x5d3   :  { %v6217_v59 = vpop.f32.mrb[88].mxu0  ;;  %2270 = vmax.xlane.f32.xlu0 %v8720_v13 }
 0x5d4   :  { %v2227_v16 = vpop.f32.mrb[89].mxu0  ;;  %v8744_v17 = vadd.f32 %v8741_v14, %v6217_v59 }
 0x5d5   :  { %v8732_v8 = vadd.f32 %v8729_v11, %v2227_v16  ;;  %v6218_v37 = vpop.f32.mrb[90].mxu0  ;;  %2272 = vmax.xlane.f32.xlu1 %v8726_v25 }
 0x5d6   :  { %v2230_v57 = vpop.f32.mrb[91].mxu0  ;;  %v8750_v42 = vadd.f32 %v8747_v34, %v6218_v37 }
 0x5d7   :  { %v8738_v21 = vadd.f32 %v8735_v23, %v2230_v57  ;;  %2274 = vmax.xlane.f32.xlu0 %v8732_v8  ;;  %v8802_v22 = vpop.f32.mrb[140].mxu1 }
 0x5d8   :  { %v8804_v55 = vpop.f32.mrb[141].mxu1 }
 0x5d9   :  { %2276 = vmax.xlane.f32.xlu1 %v8738_v21  ;;  %v8806_v19 = vpop.f32.mrb[142].mxu1 }
 0x5da   :  { %v8808_v41 = vpop.f32.mrb[143].mxu1 }
 0x5db   :  { %v6221_v54 = vpop.f32.mrb[92].mxu0  ;;  %2278 = vmax.xlane.f32.xlu0 %v8744_v17 }
 0x5dc   :  { %v2243_v46 = vpop.f32.mrb[93].mxu0  ;;  %v8768_v27 = vadd.f32 %v8765_v39, %v6221_v54 }
 0x5dd   :  { %v8756_v36 = vadd.f32 %v8753_v45, %v2243_v46  ;;  %v6222_v49 = vpop.f32.mrb[94].mxu0  ;;  %2280 = vmax.xlane.f32.xlu1 %v8750_v42 }
 0x5de   :  { %v2246_v1 = vpop.f32.mrb[95].mxu0  ;;  %v8774_v4 = vadd.f32 %v8771_v15, %v6222_v49 }
 0x5df   :  { %v8762_v18 = vadd.f32 %v8759_v31, %v2246_v1  ;;  %2282 = vmax.xlane.f32.xlu0 %v8756_v36 }
 0x5e1   :  { %2284 = vmax.xlane.f32.xlu1 %v8762_v18 }
 0x5e3   :  { %2286 = vmax.xlane.f32.xlu0 %v8768_v27 }
 0x5e5   :  { %2288 = vmax.xlane.f32.xlu1 %v8774_v4 }
 0x654   :  { %v2259_v59 = vpop.xlane.xlu0 %2258 }
 0x655   :  { %v2290_v16 = vsub.f32 %v8685_v50, %v2259_v59 }
 0x656   :  { %v2261_v37 = vpop.xlane.xlu1 %2260 }
 0x657   :  { %v2306_v57 = vmul.f32 1.442695, %v2290_v16  ;;  %v2291_v54 = vsub.f32 %v8690_v20, %v2261_v37 }
 0x658   :  { %v2263_v46 = vpop.xlane.xlu0 %2262 }
 0x659   :  { %7106 = vpow2.f32 %v2306_v57  ;;  %v2308_v49 = vmul.f32 1.442695, %v2291_v54  ;;  %v2292_v1 = vsub.f32 %v8696_v29, %v2263_v46 }
 0x65a   :  { %v2265_v12 = vpop.xlane.xlu1 %2264 }
 0x65b   :  { %7108 = vpow2.f32 %v2308_v49  ;;  %v2310_v6 = vmul.f32 1.442695, %v2292_v1  ;;  %v2293_v61 = vsub.f32 %v8702_v26, %v2265_v12 }
 0x65c   :  { %v2267_v3 = vpop.xlane.xlu0 %2266 }
 0x65d   :  { %7110 = vpow2.f32 %v2310_v6  ;;  %v2312_v43 = vmul.f32 1.442695, %v2293_v61  ;;  %v2294_v28 = vsub.f32 %v8708_v48, %v2267_v3 }
 0x65e   :  { %v2269_v50 = vpop.xlane.xlu1 %2268 }
 0x65f   :  { %7112 = vpow2.f32 %v2312_v43  ;;  %v2314_v59 = vmul.f32 1.442695, %v2294_v28  ;;  %v2295_v20 = vsub.f32 %v8714_v7, %v2269_v50 }
 0x660   :  { %v2271_v16 = vpop.xlane.xlu0 %2270 }
 0x661   :  { %7114 = vpow2.f32 %v2314_v59  ;;  %v2316_v37 = vmul.f32 1.442695, %v2295_v20  ;;  %v2296_v29 = vsub.f32 %v8720_v13, %v2271_v16 }
 0x662   :  { %v2273_v57 = vpop.xlane.xlu1 %2272 }
 0x663   :  { %v8817_v54 = vpop.eup %7106  ;;  %7116 = vpow2.f32 %v2316_v37  ;;  %v2318_v12 = vmul.f32 1.442695, %v2296_v29  ;;  %v2297_v6 = vsub.f32 %v8726_v25, %v2273_v57 }
 0x664   :  { %2338 = vadd.xlane.f32.xlu0 %v8817_v54  ;;  %v2275_v3 = vpop.xlane.xlu0 %2274 }
 0x665   :  { %v8821_v61 = vpop.eup %7108  ;;  %7118 = vpow2.f32 %v2318_v12  ;;  %v2320_v28 = vmul.f32 1.442695, %v2297_v6  ;;  %v2298_v43 = vsub.f32 %v8732_v8, %v2275_v3 }
 0x666   :  { %2340 = vadd.xlane.f32.xlu1 %v8821_v61  ;;  %v2277_v26 = vpop.xlane.xlu1 %2276 }
 0x667   :  { %v8825_v48 = vpop.eup %7110  ;;  %7120 = vpow2.f32 %v2320_v28  ;;  %v2322_v7 = vmul.f32 1.442695, %v2298_v43  ;;  %v2299_v13 = vsub.f32 %v8738_v21, %v2277_v26 }
 0x668   :  { %2342 = vadd.xlane.f32.xlu0 %v8825_v48  ;;  %v2279_v25 = vpop.xlane.xlu0 %2278 }
 0x669   :  { %v8829_v46 = vpop.eup %7112  ;;  %7122 = vpow2.f32 %v2322_v7  ;;  %v2324_v49 = vmul.f32 1.442695, %v2299_v13  ;;  %v2300_v1 = vsub.f32 %v8744_v17, %v2279_v25 }
 0x66a   :  { %2344 = vadd.xlane.f32.xlu1 %v8829_v46  ;;  %v2281_v8 = vpop.xlane.xlu1 %2280 }
 0x66b   :  { %v8833_v50 = vpop.eup %7114  ;;  %7124 = vpow2.f32 %v2324_v49  ;;  %v2326_v59 = vmul.f32 1.442695, %v2300_v1  ;;  %v2301_v20 = vsub.f32 %v8750_v42, %v2281_v8 }
 0x66c   :  { %2346 = vadd.xlane.f32.xlu0 %v8833_v50  ;;  %v2283_v21 = vpop.xlane.xlu0 %2282 }
 0x66d   :  { %v8837_v16 = vpop.eup %7116  ;;  %7126 = vpow2.f32 %v2326_v59  ;;  %v2328_v37 = vmul.f32 1.442695, %v2301_v20  ;;  %v2302_v29 = vsub.f32 %v8756_v36, %v2283_v21  ;;  %v8873_v59 = vadd.f32 %v8682_v53, %v8780_v47  ;;  %v8892_v53 = vld [vmem:[#allocation4 + $0x40] sm:$0xff]   ;;  %v6903_v47 = vld [vmem:[#allocation2 + $0x58] sm:$0xff]  }
 0x66e   :  { %2348 = vadd.xlane.f32.xlu1 %v8837_v16  ;;  %v2285_v17 = vpop.xlane.xlu1 %2284  ;;  %v8880_v21 = vadd.f32 %v8687_v44, %v8784_v10  ;;  %v8897_v44 = vadd.f32 %v8705_v5, %v8788_v0  ;;  %6327 = vmatprep.subr.bf16.mxu0 %v8892_v53  ;;  %v8918_v5 = vadd.f32 %v8729_v11, %v8796_v30  ;;  %v8988_v10 = vld [vmem:[%s10057_s0 + $0x28] sm:$0xff]   ;;  %v9002_v0 = vld [vmem:[%s10057_s0 + $0x38] sm:$0xff]  }
 0x66f   :  { %v8841_v57 = vpop.eup %7118  ;;  %7128 = vpow2.f32 %v2328_v37  ;;  %v2330_v12 = vmul.f32 1.442695, %v2302_v29  ;;  %v2303_v6 = vsub.f32 %v8762_v18, %v2285_v17  ;;  %v8884_v37 = vadd.f32 %v8693_v56, %v8778_v38 }
 0x670   :  { %2350 = vadd.xlane.f32.xlu0 %v8841_v57  ;;  %v2287_v42 = vpop.xlane.xlu0 %2286  ;;  %v8889_v29 = vadd.f32 %v8699_v63, %v8782_v32  ;;  %v8903_v56 = vadd.f32 %v8711_v2, %v8792_v40  ;;  %v8907_v63 = vadd.f32 %v8717_v52, %v8786_v24  ;;  %v8912_v38 = vadd.f32 %v8723_v51, %v8790_v35  ;;  %v8981_v32 = vld [vmem:[%s10057_s0 + $0x20] sm:$0xff]   ;;  %v8995_v24 = vld [vmem:[%s10057_s0 + $0x30] sm:$0xff]  }
 0x671   :  { %v8845_v3 = vpop.eup %7120  ;;  %7130 = vpow2.f32 %v2330_v12  ;;  %v2332_v28 = vmul.f32 1.442695, %v2303_v6  ;;  %v2304_v43 = vsub.f32 %v8768_v27, %v2287_v42  ;;  %v8923_v2 = vadd.f32 %v8735_v23, %v8800_v33  ;;  %v9009_v35 = vld [vmem:[%s10057_s0] sm:$0xff]  }
 0x672   :  { %2352 = vadd.xlane.f32.xlu1 %v8845_v3  ;;  %v2289_v36 = vpop.xlane.xlu1 %2288  ;;  %v8927_v52 = vadd.f32 %v8741_v14, %v8794_v9  ;;  %v8932_v51 = vadd.f32 %v8747_v34, %v8798_v58  ;;  %v8938_v11 = vadd.f32 %v8753_v45, %v8804_v55  ;;  %v8943_v23 = vadd.f32 %v8759_v31, %v8808_v41  ;;  %v6902_v45 = vld [vmem:[#allocation2 + $0x50] sm:$0xff]   ;;  %v8960_v31 = vld [vmem:[%s10057_s0 + $0x8] sm:$0xff]  }
 0x673   :  { %v8849_v26 = vpop.eup %7122  ;;  %7132 = vpow2.f32 %v2332_v28  ;;  %v2334_v7 = vmul.f32 1.442695, %v2304_v43  ;;  %v2305_v13 = vsub.f32 %v8774_v4, %v2289_v36  ;;  %v8947_v14 = vadd.f32 %v8765_v39, %v8802_v22  ;;  %6379 = vmatprep.subr.bf16.mxu1 %v6902_v45  ;;  %v8967_v39 = vld [vmem:[%s10057_s0 + $0x10] sm:$0xff]  }
 0x674   :  { %2354 = vadd.xlane.f32.xlu0 %v8849_v26  ;;  %v8952_v34 = vadd.f32 %v8771_v15, %v8806_v19  ;;  %6380 = vmatpush3.bf16.msra.mxu1 %v6902_v45  ;;  %v8974_v15 = vld [vmem:[%s10057_s0 + $0x18] sm:$0xff]  }
 0x675   :  { %v8853_v18 = vpop.eup %7124  ;;  %7134 = vpow2.f32 %v2334_v7  ;;  %v2336_v25 = vmul.f32 1.442695, %v2305_v13  ;;  %6381 = vmatprep.subr.bf16.mxu1 %v6903_v47 }
 0x676   :  { %2356 = vadd.xlane.f32.xlu1 %v8853_v18 }
 0x677   :  { %v8856_v49 = vpop.eup %7126  ;;  %7136 = vpow2.f32 %v2336_v25 }
 0x678   :  { %2358 = vadd.xlane.f32.xlu0 %v8856_v49  ;;  %6382 = vmatpush3.bf16.msra.mxu1 %v6903_v47 }
 0x679   :  { %v8859_v27 = vpop.eup %7128 }
 0x67a   :  { %2360 = vadd.xlane.f32.xlu1 %v8859_v27 }
 0x67b   :  { %v8862_v1 = vpop.eup %7130  ;;  %6384 = vmatmul.mubr.msk.bf16.vlgmr.msra.gmra.mrb[144].mxu1 %vm150_vm0, %v8960_v31 }
 0x67c   :  { %2362 = vadd.xlane.f32.xlu0 %v8862_v1  ;;  %6387 = vmatprep.mubr.msk.bf16.mxu1 %vm150_vm0, %v8967_v39 }
 0x67d   :  { %v8865_v4 = vpop.eup %7132 }
 0x67e   :  { %2364 = vadd.xlane.f32.xlu1 %v8865_v4 }
 0x67f   :  { %v8868_v8 = vpop.eup %7134 }
 0x680   :  { %2366 = vadd.xlane.f32.xlu0 %v8868_v8 }
 0x681   :  { %v8875_v20 = vpop.eup %7136 }
 0x682   :  { %2368 = vadd.xlane.f32.xlu1 %v8875_v20 }
 0x683   :  { %6388 = vmatmul.mubr.msk.bf16.gmra.mrb[148].mxu1 %vm150_vm0, %v8974_v15 }
 0x684   :  { %2888 = vmax.xlane.f32.xlu0 %v8873_v59  ;;  %6391 = vmatprep.mubr.msk.bf16.mxu1 %vm150_vm0, %v8981_v32 }
 0x686   :  { %2890 = vmax.xlane.f32.xlu1 %v8880_v21 }
 0x688   :  { %2892 = vmax.xlane.f32.xlu0 %v8884_v37 }
 0x68a   :  { %2894 = vmax.xlane.f32.xlu1 %v8889_v29 }
 0x68b   :  { %6392 = vmatmul.mubr.msk.bf16.gmra.mrb[152].mxu1 %vm150_vm0, %v8988_v10 }
 0x68c   :  { %2896 = vmax.xlane.f32.xlu0 %v8897_v44  ;;  %6395 = vmatprep.mubr.msk.bf16.mxu1 %vm150_vm0, %v8995_v24 }
 0x68e   :  { %2898 = vmax.xlane.f32.xlu1 %v8903_v56 }
 0x690   :  { %2900 = vmax.xlane.f32.xlu0 %v8907_v63 }
 0x692   :  { %2902 = vmax.xlane.f32.xlu1 %v8912_v38 }
 0x693   :  { %6396 = vmatmul.mubr.msk.bf16.gmra.mrb[156].mxu1 %vm150_vm0, %v9002_v0 }
 0x694   :  { %2904 = vmax.xlane.f32.xlu0 %v8918_v5  ;;  %6435 = vmatprep.mubr.msk.bf16.mxu1 %vm150_vm0, %v9009_v35 }
 0x696   :  { %2906 = vmax.xlane.f32.xlu1 %v8923_v2 }
 0x698   :  { %2908 = vmax.xlane.f32.xlu0 %v8927_v52 }
 0x69a   :  { %2910 = vmax.xlane.f32.xlu1 %v8932_v51 }
 0x69c   :  { %2912 = vmax.xlane.f32.xlu0 %v8938_v11 }
 0x69e   :  { %2914 = vmax.xlane.f32.xlu1 %v8943_v23 }
 0x6a0   :  { %2916 = vmax.xlane.f32.xlu0 %v8947_v14 }
 0x6a2   :  { %2918 = vmax.xlane.f32.xlu1 %v8952_v34 }
 0x6f1   :  { %v2339_v40 = vpop.xlane.xlu0 %2338 }
 0x6f2   :  { %7138 = vrcp.f32 %v2339_v40 }
 0x6f3   :  { %v2341_v9 = vpop.xlane.xlu1 %2340 }
 0x6f4   :  { %7140 = vrcp.f32 %v2341_v9  ;;  %v6901_v9 = vld [vmem:[#allocation4 + $0x48] sm:$0xff]  }
 0x6f5   :  { %v2343_v30 = vpop.xlane.xlu0 %2342 }
 0x6f6   :  { %7142 = vrcp.f32 %v2343_v30 }
 0x6f7   :  { %v2345_v58 = vpop.xlane.xlu1 %2344 }
 0x6f8   :  { %7144 = vrcp.f32 %v2345_v58 }
 0x6f9   :  { %v2347_v33 = vpop.xlane.xlu0 %2346 }
 0x6fa   :  { %7146 = vrcp.f32 %v2347_v33 }
 0x6fb   :  { %v2349_v22 = vpop.xlane.xlu1 %2348 }
 0x6fc   :  { %v7139_v55 = vpop.eup %7138  ;;  %7148 = vrcp.f32 %v2349_v22 }
 0x6fd   :  { %v2351_v19 = vpop.xlane.xlu0 %2350  ;;  %v2386_v12 = vmul.f32 %v7139_v55, %v8817_v54 }
 0x6fe   :  { %v7141_v41 = vpop.eup %7140  ;;  %7150 = vrcp.f32 %v2351_v19 }
 0x6ff   :  { %v2353_v17 = vpop.xlane.xlu1 %2352  ;;  %v2387_v6 = vmul.f32 %v7141_v41, %v8821_v61 }
 0x700   :  { %v7143_v42 = vpop.eup %7142  ;;  %7152 = vrcp.f32 %v2353_v17 }
 0x701   :  { %v2355_v28 = vpop.xlane.xlu0 %2354  ;;  %v2516_v43 = vpack.c.bf16 %v2387_v6, %v2386_v12  ;;  %v2388_v7 = vmul.f32 %v7143_v42, %v8825_v48 }
 0x702   :  { %v7145_v36 = vpop.eup %7144  ;;  %7154 = vrcp.f32 %v2355_v28 }
 0x703   :  { %v2389_v13 = vmul.f32 %v7145_v36, %v8829_v46  ;;  %v2357_v25 = vpop.xlane.xlu1 %2356  ;;  %6259 = vmatprep.mubr.bf16.mxu0 %v2516_v43 }
 0x704   :  { %v7147_v45 = vpop.eup %7146  ;;  %7156 = vrcp.f32 %v2357_v25 }
 0x705   :  { %v2359_v47 = vpop.xlane.xlu0 %2358  ;;  %v2517_v40 = vpack.c.bf16 %v2389_v13, %v2388_v7  ;;  %v2390_v30 = vmul.f32 %v7147_v45, %v8833_v50 }
 0x706   :  { %v7149_v54 = vpop.eup %7148  ;;  %7158 = vrcp.f32 %v2359_v47 }
 0x707   :  { %v2361_v61 = vpop.xlane.xlu1 %2360  ;;  %6260 = vmatmul.mubr.bf16.vlgmr.msra.gmra.mrb[48].mxu0 %v2517_v40  ;;  %v2391_v58 = vmul.f32 %v7149_v54, %v8837_v16 }
 0x708   :  { %v7151_v33 = vpop.eup %7150  ;;  %7160 = vrcp.f32 %v2361_v61  ;;  %6328 = vmatpush3.bf16.msra.mxu0 %v8892_v53 }
 0x709   :  { %v2363_v48 = vpop.xlane.xlu0 %2362  ;;  %v2518_v46 = vpack.c.bf16 %v2391_v58, %v2390_v30  ;;  %6329 = vmatprep.subr.bf16.mxu0 %v6901_v9  ;;  %v2392_v19 = vmul.f32 %v7151_v33, %v8841_v57 }
 0x70a   :  { %v7153_v22 = vpop.eup %7152  ;;  %7162 = vrcp.f32 %v2363_v48 }
 0x70b   :  { %v2365_v55 = vpop.xlane.xlu1 %2364  ;;  %6263 = vmatprep.mubr.bf16.mxu0 %v2518_v46  ;;  %v2393_v41 = vmul.f32 %v7153_v22, %v8845_v3 }
 0x70c   :  { %v7155_v17 = vpop.eup %7154  ;;  %7164 = vrcp.f32 %v2365_v55  ;;  %6330 = vmatpush3.bf16.msra.mxu0 %v6901_v9 }
 0x70d   :  { %v2367_v50 = vpop.xlane.xlu0 %2366  ;;  %v2519_v16 = vpack.c.bf16 %v2393_v41, %v2392_v19  ;;  %v2394_v53 = vmul.f32 %v7155_v17, %v8849_v26 }
 0x70e   :  { %v7157_v12 = vpop.eup %7156  ;;  %7166 = vrcp.f32 %v2367_v50 }
 0x70f   :  { %v2369_v6 = vpop.xlane.xlu1 %2368  ;;  %6264 = vmatmul.mubr.bf16.gmra.mrb[52].mxu0 %v2519_v16  ;;  %v2395_v42 = vmul.f32 %v7157_v12, %v8853_v18 }
 0x710   :  { %v7159_v28 = vpop.eup %7158  ;;  %7168 = vrcp.f32 %v2369_v6 }
 0x711   :  { %v2889_v43 = vpop.xlane.xlu0 %2888  ;;  %v2520_v36 = vpack.c.bf16 %v2395_v42, %v2394_v53  ;;  %v2396_v13 = vmul.f32 %v7159_v28, %v8856_v49 }
 0x712   :  { %v7161_v57 = vpop.eup %7160  ;;  %v2920_v3 = vsub.f32 %v8873_v59, %v2889_v43 }
 0x713   :  { %v2891_v7 = vpop.xlane.xlu1 %2890  ;;  %6267 = vmatprep.mubr.bf16.mxu0 %v2520_v36  ;;  %v2397_v25 = vmul.f32 %v7161_v57, %v8859_v27 }
 0x714   :  { %v7163_v45 = vpop.eup %7162  ;;  %v2936_v47 = vmul.f32 1.442695, %v2920_v3  ;;  %v2921_v40 = vsub.f32 %v8880_v21, %v2891_v7 }
 0x715   :  { %v2893_v26 = vpop.xlane.xlu0 %2892  ;;  %v2521_v9 = vpack.c.bf16 %v2397_v25, %v2396_v13  ;;  %v2398_v59 = vmul.f32 %v7163_v45, %v8862_v1 }
 0x716   :  { %v7165_v18 = vpop.eup %7164  ;;  %7170 = vpow2.f32 %v2936_v47  ;;  %v2938_v54 = vmul.f32 1.442695, %v2921_v40  ;;  %v2922_v61 = vsub.f32 %v8884_v37, %v2893_v26 }
 0x717   :  { %v2895_v30 = vpop.xlane.xlu1 %2894  ;;  %6268 = vmatmul.mubr.bf16.gmra.mrb[56].mxu0 %v2521_v9  ;;  %v2399_v58 = vmul.f32 %v7165_v18, %v8865_v4 }
 0x718   :  { %v7167_v49 = vpop.eup %7166  ;;  %7172 = vpow2.f32 %v2938_v54  ;;  %v2940_v27 = vmul.f32 1.442695, %v2922_v61  ;;  %v2923_v33 = vsub.f32 %v8889_v29, %v2895_v30 }
 0x719   :  { %v2897_v48 = vpop.xlane.xlu0 %2896  ;;  %v2522_v21 = vpack.c.bf16 %v2399_v58, %v2398_v59  ;;  %v2400_v37 = vmul.f32 %v7167_v49, %v8868_v8 }
 0x71a   :  { %v7169_v46 = vpop.eup %7168  ;;  %7174 = vpow2.f32 %v2940_v27  ;;  %v2942_v22 = vmul.f32 1.442695, %v2923_v33  ;;  %v2924_v55 = vsub.f32 %v8897_v44, %v2897_v48 }
 0x71b   :  { %v2899_v19 = vpop.xlane.xlu1 %2898  ;;  %6271 = vmatprep.mubr.bf16.mxu0 %v2522_v21  ;;  %v2401_v1 = vmul.f32 %v7169_v46, %v8875_v20 }
 0x71c   :  { %7176 = vpow2.f32 %v2942_v22  ;;  %v2944_v4 = vmul.f32 1.442695, %v2924_v55  ;;  %v2925_v41 = vsub.f32 %v8903_v56, %v2899_v19  ;;  %v6904_v55 = vld [vmem:[#allocation4 + $0x50] sm:$0xff]   ;;  %v6905_v19 = vld [vmem:[#allocation4 + $0x58] sm:$0xff]  }
 0x71d   :  { %v2901_v17 = vpop.xlane.xlu0 %2900  ;;  %v2523_v50 = vpack.c.bf16 %v2401_v1, %v2400_v37  ;;  %6431 = vmatprep.subr.bf16.mxu1 %v6904_v55 }
 0x71e   :  { %7178 = vpow2.f32 %v2944_v4  ;;  %v2946_v29 = vmul.f32 1.442695, %v2925_v41  ;;  %v2926_v16 = vsub.f32 %v8907_v63, %v2901_v17  ;;  %6432 = vmatpush3.bf16.msra.mxu1 %v6904_v55 }
 0x71f   :  { %v2903_v12 = vpop.xlane.xlu1 %2902  ;;  %6272 = vmatmul.mubr.bf16.gmra.mrb[60].mxu0 %v2523_v50  ;;  %6433 = vmatprep.subr.bf16.mxu1 %v6905_v19 }
 0x720   :  { %v9037_v6 = vpop.eup %7170  ;;  %7180 = vpow2.f32 %v2946_v29  ;;  %v2948_v44 = vmul.f32 1.442695, %v2926_v16  ;;  %v2927_v8 = vsub.f32 %v8912_v38, %v2903_v12  ;;  %6331 = vmatprep.mubr.msk.bf16.mxu0 %vm150_vm0, %v9009_v35  ;;  %v6906_v16 = vld [vmem:[#allocation2 + $0x60] sm:$0xff]   ;;  %v6907_v12 = vld [vmem:[#allocation2 + $0x68] sm:$0xff]  }
 0x721   :  { %2968 = vadd.xlane.f32.xlu0 %v9037_v6  ;;  %v2905_v20 = vpop.xlane.xlu0 %2904 }
 0x722   :  { %v9043_v56 = vpop.eup %7172  ;;  %7182 = vpow2.f32 %v2948_v44  ;;  %v2950_v53 = vmul.f32 1.442695, %v2927_v8  ;;  %v2928_v63 = vsub.f32 %v8918_v5, %v2905_v20  ;;  %6434 = vmatpush3.bf16.msra.mxu1 %v6905_v19 }
 0x723   :  { %2970 = vadd.xlane.f32.xlu1 %v9043_v56  ;;  %v2907_v42 = vpop.xlane.xlu1 %2906  ;;  %6483 = vmatprep.subr.bf16.mxu1 %v6906_v16 }
 0x724   :  { %v9047_v28 = vpop.eup %7174  ;;  %7184 = vpow2.f32 %v2950_v53  ;;  %v2952_v43 = vmul.f32 1.442695, %v2928_v63  ;;  %v2929_v38 = vsub.f32 %v8923_v2, %v2907_v42 }
 0x725   :  { %2972 = vadd.xlane.f32.xlu0 %v9047_v28  ;;  %v2909_v36 = vpop.xlane.xlu0 %2908  ;;  %6436 = vmatmul.mubr.msk.bf16.vlgmr.msra.gmra.mrb[160].mxu1 %vm150_vm0, %v8960_v31 }
 0x726   :  { %v9051_v57 = vpop.eup %7176  ;;  %7186 = vpow2.f32 %v2952_v43  ;;  %v2954_v3 = vmul.f32 1.442695, %v2929_v38  ;;  %v2930_v7 = vsub.f32 %v8927_v52, %v2909_v36  ;;  %6439 = vmatprep.mubr.msk.bf16.mxu1 %vm150_vm0, %v8967_v39  ;;  %6484 = vmatpush3.bf16.msra.mxu1 %v6906_v16  ;;  %v10148_v43 = vld [vmem:[#allocation11_spill] sm:$0xff] }
 0x727   :  { %2974 = vadd.xlane.f32.xlu1 %v9051_v57  ;;  %v2911_v5 = vpop.xlane.xlu1 %2910  ;;  %6332 = vmatmul.mubr.msk.bf16.vlgmr.msra.gmra.mrb[96].mxu0 %vm150_vm0, %v8960_v31 }
 0x728   :  { %v9057_v13 = vpop.eup %7178  ;;  %7188 = vpow2.f32 %v2954_v3  ;;  %v2956_v25 = vmul.f32 1.442695, %v2930_v7  ;;  %v2931_v2 = vsub.f32 %v8932_v51, %v2911_v5  ;;  %6335 = vmatprep.mubr.msk.bf16.mxu0 %vm150_vm0, %v8967_v39  ;;  %6485 = vmatprep.subr.bf16.mxu1 %v6907_v12 }
 0x729   :  { %2976 = vadd.xlane.f32.xlu0 %v9057_v13  ;;  %v2913_v45 = vpop.xlane.xlu0 %2912 }
 0x72a   :  { %v9063_v47 = vpop.eup %7180  ;;  %7190 = vpow2.f32 %v2956_v25  ;;  %v2958_v52 = vmul.f32 1.442695, %v2931_v2  ;;  %v2932_v40 = vsub.f32 %v8938_v11, %v2913_v45  ;;  %6486 = vmatpush3.bf16.msra.mxu1 %v6907_v12  ;;  %v10149_v2 = vld [vmem:[#allocation12_spill] sm:$0xff] }
 0x72b   :  { %2978 = vadd.xlane.f32.xlu1 %v9063_v47  ;;  %v2915_v26 = vpop.xlane.xlu1 %2914  ;;  %6851 = vmatprep.subr.msk.bf16.mxu1 %vm150_vm0, %v9009_v35 }
 0x72c   :  { %v9067_v9 = vpop.eup %7182  ;;  %7192 = vpow2.f32 %v2958_v52  ;;  %v2960_v18 = vmul.f32 1.442695, %v2932_v40  ;;  %v2933_v51 = vsub.f32 %v8943_v23, %v2915_v26 }
 0x72d   :  { %2980 = vadd.xlane.f32.xlu0 %v9067_v9  ;;  %v2917_v54 = vpop.xlane.xlu0 %2916  ;;  %6440 = vmatmul.mubr.msk.bf16.gmra.mrb[164].mxu1 %vm150_vm0, %v8974_v15 }
 0x72e   :  { %v9071_v61 = vpop.eup %7184  ;;  %7194 = vpow2.f32 %v2960_v18  ;;  %v2962_v30 = vmul.f32 1.442695, %v2933_v51  ;;  %v2934_v59 = vsub.f32 %v8947_v14, %v2917_v54  ;;  %6443 = vmatprep.mubr.msk.bf16.mxu1 %vm150_vm0, %v8981_v32  ;;  %v10152_v54 = vld [vmem:[#allocation13_spill] sm:$0xff] }
 0x72f   :  { %2982 = vadd.xlane.f32.xlu1 %v9071_v61  ;;  %v2919_v11 = vpop.xlane.xlu1 %2918  ;;  %6336 = vmatmul.mubr.msk.bf16.gmra.mrb[100].mxu0 %vm150_vm0, %v8974_v15 }
 0x730   :  { %v9077_v58 = vpop.eup %7186  ;;  %7196 = vpow2.f32 %v2962_v30  ;;  %v2964_v49 = vmul.f32 1.442695, %v2934_v59  ;;  %v2935_v23 = vsub.f32 %v8952_v34, %v2919_v11  ;;  %6339 = vmatprep.mubr.msk.bf16.mxu0 %vm150_vm0, %v8981_v32 }
 0x731   :  { %2984 = vadd.xlane.f32.xlu0 %v9077_v58 }
 0x732   :  { %v9083_v27 = vpop.eup %7188  ;;  %7198 = vpow2.f32 %v2964_v49  ;;  %v2966_v14 = vmul.f32 1.442695, %v2935_v23  ;;  %v10154_v23 = vld [vmem:[#allocation14_spill] sm:$0xff] }
 0x733   :  { %2986 = vadd.xlane.f32.xlu1 %v9083_v27 }
 0x734   :  { %v9086_v33 = vpop.eup %7190  ;;  %7200 = vpow2.f32 %v2966_v14 }
 0x735   :  { %2988 = vadd.xlane.f32.xlu0 %v9086_v33  ;;  %6444 = vmatmul.mubr.msk.bf16.gmra.mrb[168].mxu1 %vm150_vm0, %v8988_v10 }
 0x736   :  { %v9089_v48 = vpop.eup %7192  ;;  %6447 = vmatprep.mubr.msk.bf16.mxu1 %vm150_vm0, %v8995_v24 }
 0x737   :  { %2990 = vadd.xlane.f32.xlu1 %v9089_v48  ;;  %6340 = vmatmul.mubr.msk.bf16.gmra.mrb[104].mxu0 %vm150_vm0, %v8988_v10 }
 0x738   :  { %v9094_v34 = vpop.eup %7194  ;;  %6343 = vmatprep.mubr.msk.bf16.mxu0 %vm150_vm0, %v8995_v24 }
 0x739   :  { %2992 = vadd.xlane.f32.xlu0 %v9094_v34 }
 0x73a   :  { %v9099_v21 = vpop.eup %7196 }
 0x73b   :  { %2994 = vadd.xlane.f32.xlu1 %v9099_v21 }
 0x73c   :  { %v9102_v46 = vpop.eup %7198 }
 0x73d   :  { %2996 = vadd.xlane.f32.xlu0 %v9102_v46  ;;  %6448 = vmatmul.mubr.msk.bf16.gmra.mrb[172].mxu1 %vm150_vm0, %v9002_v0 }
 0x73e   :  { %v9105_v22 = vpop.eup %7200  ;;  %6487 = vmatprep.mubr.msk.bf16.mxu1 %vm150_vm0, %v9009_v35 }
 0x73f   :  { %2998 = vadd.xlane.f32.xlu1 %v9105_v22  ;;  %6344 = vmatmul.mubr.msk.bf16.gmra.mrb[108].mxu0 %vm150_vm0, %v9002_v0 }
 0x745   :  { %6488 = vmatmul.mubr.msk.bf16.vlgmr.msra.gmra.mrb[176].mxu1 %vm150_vm0, %v8960_v31 }
 0x746   :  { %6491 = vmatprep.mubr.msk.bf16.mxu1 %vm150_vm0, %v8967_v39  ;;  %6504 = vmatpush3.bf16.xpose.msra.mxu1 %v10126_v60 }
 0x747   :  { %6852 = vmatprep.subr.msk.bf16.mxu1 %vm150_vm0, %v8960_v31 }
 0x74d   :  { %6492 = vmatmul.mubr.msk.bf16.gmra.mrb[180].mxu1 %vm150_vm0, %v8974_v15 }
 0x74e   :  { %6495 = vmatprep.mubr.msk.bf16.mxu1 %vm150_vm0, %v8981_v32  ;;  %6506 = vmatpush3.bf16.xpose.msra.mxu1 %v10127_v62 }
 0x74f   :  { %6853 = vmatprep.subr.msk.bf16.mxu1 %vm150_vm0, %v8967_v39 }
 0x755   :  { %6496 = vmatmul.mubr.msk.bf16.gmra.mrb[184].mxu1 %vm150_vm0, %v8988_v10 }
 0x756   :  { %6499 = vmatprep.mubr.msk.bf16.mxu1 %vm150_vm0, %v8995_v24  ;;  %6508 = vmatpush3.bf16.xpose.msra.mxu1 %v10148_v43 }
 0x757   :  { %6854 = vmatprep.subr.msk.bf16.mxu1 %vm150_vm0, %v8974_v15 }
 0x75d   :  { %6500 = vmatmul.mubr.msk.bf16.gmra.mrb[188].mxu1 %vm150_vm0, %v9002_v0 }
 0x75e   :  { %6510 = vmatpush3.bf16.xpose.msra.mxu1 %v10149_v2 }
 0x75f   :  { %6855 = vmatprep.subr.msk.bf16.mxu1 %vm150_vm0, %v8981_v32 }
 0x766   :  { %6512 = vmatpush3.bf16.xpose.msra.mxu1 %v10152_v54 }
 0x767   :  { %6856 = vmatprep.subr.msk.bf16.mxu1 %vm150_vm0, %v8988_v10 }
 0x76e   :  { %6514 = vmatpush3.bf16.xpose.msra.mxu1 %v10154_v23 }
 0x76f   :  { %6857 = vmatprep.subr.msk.bf16.mxu1 %vm150_vm0, %v8995_v24 }
 0x7ae   :  { %v2969_v37 = vpop.xlane.xlu0 %2968 }
 0x7af   :  { %7202 = vrcp.f32 %v2969_v37 }
 0x7b0   :  { %v2971_v1 = vpop.xlane.xlu1 %2970 }
 0x7b1   :  { %7204 = vrcp.f32 %v2971_v1 }
 0x7b4   :  { %v2975_v37 = vpop.xlane.xlu1 %2974 }
 0x7b5   :  { %7206 = vrcp.f32 %v2975_v37 }
 0x7b8   :  { %v2979_v16 = vpop.xlane.xlu1 %2978 }
 0x7b9   :  { %v7203_v4 = vpop.eup %7202  ;;  %7208 = vrcp.f32 %v2979_v16 }
 0x7ba   :  { %v3016_v17 = vmul.f32 %v7203_v4, %v9037_v6  ;;  %v9141_v6 = vpop.f32.mrb[144].mxu1 }
 0x7bb   :  { %v7205_v41 = vpop.eup %7204  ;;  %v9143_v44 = vpop.f32.mrb[145].mxu1 }
 0x7bc   :  { %v3017_v50 = vmul.f32 %v7205_v41, %v9043_v56  ;;  %v9146_v8 = vpop.f32.mrb[146].mxu1 }
 0x7bd   :  { %v9154_v56 = vpop.f32.mrb[147].mxu1 }
 0x7be   :  { %v3146_v29 = vpack.c.bf16 %v3017_v50, %v3016_v17  ;;  %v9160_v63 = vpop.f32.mrb[148].mxu1  ;;  %v2973_v17 = vpop.xlane.xlu0 %2972  ;;  %v10155_v50 = vld [vmem:[#allocation15_spill] sm:$0xff] }
 0x7bf   :  { %v9162_v42 = vpop.f32.mrb[149].mxu1  ;;  %6516 = vmatpush3.bf16.xpose.msra.mxu1 %v10155_v50  ;;  %7210 = vrcp.f32 %v2973_v17 }
 0x7c0   :  { %6363 = vmatprep.mubr.bf16.mxu0 %v3146_v29  ;;  %v9165_v38 = vpop.f32.mrb[150].mxu1  ;;  %6858 = vmatprep.subr.msk.bf16.mxu1 %vm150_vm0, %v9002_v0 }
 0x7c1   :  { %v9173_v3 = vpop.f32.mrb[151].mxu1 }
 0x7c2   :  { %v9177_v5 = vpop.f32.mrb[152].mxu1  ;;  %v2977_v49 = vpop.xlane.xlu0 %2976 }
 0x7c3   :  { %v9179_v25 = vpop.f32.mrb[153].mxu1  ;;  %7212 = vrcp.f32 %v2977_v49 }
 0x7c4   :  { %v9182_v45 = vpop.f32.mrb[154].mxu1 }
 0x7c5   :  { %v9188_v40 = vpop.f32.mrb[155].mxu1 }
 0x7c6   :  { %v9192_v18 = vpop.f32.mrb[156].mxu1  ;;  %v2981_v36 = vpop.xlane.xlu0 %2980 }
 0x7c7   :  { %10150 = vst [vmem:[#allocation19_spill] sm:$0xff] %v9192_v18  ;;  %v9194_v51 = vpop.f32.mrb[157].mxu1 }
 0x7c8   :  { %10151 = vst [vmem:[#allocation22_spill] sm:$0xff] %v9194_v51  ;;  %v9197_v30 = vpop.f32.mrb[158].mxu1 }
 0x7c9   :  { %10153 = vst [vmem:[#allocation21_spill] sm:$0xff] %v9197_v30  ;;  %v9203_v11 = vpop.f32.mrb[159].mxu1 }
 0x7fa   :  { %v6333_v14 = vpop.f32.mrb[96].mxu0 }
 0x7fb   :  { %v3083_v55 = vpop.f32.mrb[97].mxu0 }
 0x7fc   :  { %v6334_v19 = vpop.f32.mrb[98].mxu0 }
 0x7fd   :  { %v3155_v1 = vpack.c.bf16 %v6334_v19, %v6333_v14  ;;  %v3086_v4 = vpop.f32.mrb[99].mxu0  ;;  %v10156_v19 = vld [vmem:[#allocation16_spill] sm:$0xff] }
 0x7fe   :  { %v3154_v41 = vpack.c.bf16 %v3086_v4, %v3083_v55  ;;  %6518 = vmatpush3.bf16.xpose.msra.mxu1 %v10156_v19  ;;  %v2983_v55 = vpop.xlane.xlu1 %2982 }
 0x7ff   :  { %7214 = vrcp.f32 %v2983_v55 }
 0x800   :  { %6347 = vmatprep.subr.bf16.mxu0 %v3154_v41 }
 0x801   :  { %6348 = vmatpush3.bf16.msra.mxu0 %v3154_v41 }
 0x802   :  { %v6337_v29 = vpop.f32.mrb[100].mxu0  ;;  %6349 = vmatprep.subr.bf16.mxu0 %v3155_v1 }
 0x803   :  { %v3099_v12 = vpop.f32.mrb[101].mxu0 }
 0x804   :  { %v6338_v59 = vpop.f32.mrb[102].mxu0 }
 0x805   :  { %v3157_v52 = vpack.c.bf16 %v6338_v59, %v6337_v29  ;;  %v3102_v26 = vpop.f32.mrb[103].mxu0  ;;  %6350 = vmatpush3.bf16.msra.mxu0 %v3155_v1  ;;  %v2987_v59 = vpop.xlane.xlu1 %2986 }
 0x806   :  { %v3156_v14 = vpack.c.bf16 %v3102_v26, %v3099_v12  ;;  %v2985_v26 = vpop.xlane.xlu0 %2984  ;;  %7216 = vrcp.f32 %v2987_v59 }
 0x807   :  { %7218 = vrcp.f32 %v2981_v36 }
 0x808   :  { %6351 = vmatprep.subr.bf16.mxu0 %v3156_v14  ;;  %7220 = vrcp.f32 %v2985_v26 }
 0x809   :  { %6352 = vmatpush3.bf16.msra.mxu0 %v3156_v14  ;;  %v2991_v14 = vpop.xlane.xlu1 %2990 }
 0x80a   :  { %v6341_v4 = vpop.f32.mrb[104].mxu0  ;;  %6353 = vmatprep.subr.bf16.mxu0 %v3157_v52  ;;  %7222 = vrcp.f32 %v2991_v14 }
 0x80b   :  { %v3115_v7 = vpop.f32.mrb[105].mxu0 }
 0x80c   :  { %v6342_v41 = vpop.f32.mrb[106].mxu0 }
 0x80d   :  { %v3159_v20 = vpack.c.bf16 %v6342_v41, %v6341_v4  ;;  %v3118_v53 = vpop.f32.mrb[107].mxu0  ;;  %6354 = vmatpush3.bf16.msra.mxu0 %v3157_v52  ;;  %v7207_v52 = vpop.eup %7206 }
 0x80e   :  { %v3158_v18 = vpack.c.bf16 %v3118_v53, %v3115_v7  ;;  %v2989_v53 = vpop.xlane.xlu0 %2988  ;;  %v7209_v7 = vpop.eup %7208  ;;  %v3019_v17 = vmul.f32 %v7207_v52, %v9051_v57 }
 0x80f   :  { %v7211_v49 = vpop.eup %7210  ;;  %v2995_v16 = vpop.xlane.xlu1 %2994  ;;  %v3021_v55 = vmul.f32 %v7209_v7, %v9063_v47 }
 0x810   :  { %6355 = vmatprep.subr.bf16.mxu0 %v3158_v18  ;;  %v3018_v4 = vmul.f32 %v7211_v49, %v9047_v28  ;;  %7224 = vrcp.f32 %v2995_v16 }
 0x811   :  { %6356 = vmatpush3.bf16.msra.mxu0 %v3158_v18  ;;  %v7213_v18 = vpop.eup %7212  ;;  %7226 = vrcp.f32 %v2989_v53 }
 0x812   :  { %v6345_v1 = vpop.f32.mrb[108].mxu0  ;;  %6357 = vmatprep.subr.bf16.mxu0 %v3159_v20  ;;  %v3020_v36 = vmul.f32 %v7213_v18, %v9057_v13  ;;  %v7215_v41 = vpop.eup %7214 }
 0x813   :  { %v3131_v29 = vpop.f32.mrb[109].mxu0  ;;  %v7217_v57 = vpop.eup %7216 }
 0x814   :  { %v6346_v12 = vpop.f32.mrb[110].mxu0  ;;  %v3148_v59 = vpack.c.bf16 %v3021_v55, %v3020_v36  ;;  %v7219_v26 = vpop.eup %7218 }
 0x815   :  { %v3161_v30 = vpack.c.bf16 %v6346_v12, %v6345_v1  ;;  %v3134_v51 = vpop.f32.mrb[111].mxu0  ;;  %6358 = vmatpush3.bf16.msra.mxu0 %v3159_v20  ;;  %v2993_v20 = vpop.xlane.xlu0 %2992  ;;  %v3023_v1 = vmul.f32 %v7215_v41, %v9071_v61 }
 0x816   :  { %v3160_v37 = vpack.c.bf16 %v3134_v51, %v3131_v29  ;;  %v3147_v51 = vpack.c.bf16 %v3019_v17, %v3018_v4  ;;  %7228 = vrcp.f32 %v2993_v20  ;;  %v7221_v47 = vpop.eup %7220  ;;  %v2999_v28 = vpop.xlane.xlu1 %2998  ;;  %v3022_v29 = vmul.f32 %v7219_v26, %v9067_v9 }
 0x817   :  { %7230 = vrcp.f32 %v2999_v28  ;;  %v3024_v12 = vmul.f32 %v7221_v47, %v9077_v58 }
 0x818   :  { %6359 = vmatprep.subr.bf16.mxu0 %v3160_v37  ;;  %v3149_v14 = vpack.c.bf16 %v3023_v1, %v3022_v29 }
 0x819   :  { %6360 = vmatpush3.bf16.msra.mxu0 %v3160_v37  ;;  %v2997_v13 = vpop.xlane.xlu0 %2996  ;;  %v7223_v37 = vpop.eup %7222 }
 0x81a   :  { %6361 = vmatprep.subr.bf16.mxu0 %v3161_v30  ;;  %7232 = vrcp.f32 %v2997_v13  ;;  %v7225_v53 = vpop.eup %7224  ;;  %v3027_v7 = vmul.f32 %v7223_v37, %v9089_v48 }
 0x81b   :  { %v7227_v61 = vpop.eup %7226  ;;  %v3029_v9 = vmul.f32 %v7225_v53, %v9099_v21 }
 0x81c   :  { %v3026_v58 = vmul.f32 %v7227_v61, %v9086_v33 }
 0x81d   :  { %6362 = vmatpush3.bf16.msra.mxu0 %v3161_v30  ;;  %v3025_v30 = vmul.f32 %v7217_v57, %v9083_v27 }
 0x81e   :  { %6843 = vmatprep.subr.msk.bf16.mxu0 %vm150_vm0, %v9009_v35  ;;  %v3151_v18 = vpack.c.bf16 %v3027_v7, %v3026_v58 }
 0x81f   :  { %v3150_v52 = vpack.c.bf16 %v3025_v30, %v3024_v12 }
 0x820   :  { %6364 = vmatmul.mubr.bf16.vlgmr.msra.gmra.mrb[48].mxu0 %v3147_v51  ;;  %v7229_v27 = vpop.eup %7228 }
 0x821   :  { %6367 = vmatprep.mubr.bf16.mxu0 %v3148_v59  ;;  %v3028_v49 = vmul.f32 %v7229_v27, %v9094_v34  ;;  %v7231_v17 = vpop.eup %7230  ;;  %v10157_v34 = vpack.c.bf16 %v9154_v56, %v9143_v44 }
 0x822   :  { %v3031_v55 = vmul.f32 %v7231_v17, %v9105_v22  ;;  %v10165_v22 = vld [vmem:[#allocation21_spill] sm:$0xff] }
 0x823   :  { %v3152_v16 = vpack.c.bf16 %v3029_v9, %v3028_v49 }
 0x826   :  { %6400 = vmatpush3.bf16.xpose.msra.mxu0 %v10126_v60 }
 0x827   :  { %6844 = vmatprep.subr.msk.bf16.mxu0 %vm150_vm0, %v8960_v31  ;;  %v7233_v31 = vpop.eup %7232 }
 0x828   :  { %6368 = vmatmul.mubr.bf16.gmra.mrb[52].mxu0 %v3149_v14  ;;  %v3030_v48 = vmul.f32 %v7233_v31, %v9102_v46  ;;  %v6437_v46 = vpop.f32.mrb[160].mxu1 }
 0x829   :  { %6371 = vmatprep.mubr.bf16.mxu0 %v3150_v52 }
 0x82a   :  { %v3153_v33 = vpack.c.bf16 %v3031_v55, %v3030_v48 }
 0x82e   :  { %6402 = vmatpush3.bf16.xpose.msra.mxu0 %v10127_v62 }
 0x82f   :  { %6845 = vmatprep.subr.msk.bf16.mxu0 %vm150_vm0, %v8967_v39  ;;  %v10158_v39 = vpack.c.bf16 %v9146_v8, %v9141_v6  ;;  %v10166_v6 = vld [vmem:[#allocation19_spill] sm:$0xff]  ;;  %v3713_v8 = vpop.f32.mrb[161].mxu1 }
 0x830   :  { %6372 = vmatmul.mubr.bf16.gmra.mrb[56].mxu0 %v3151_v18  ;;  %v10167_v44 = vpack.c.bf16 %v10165_v22, %v10166_v6  ;;  %v6438_v56 = vpop.f32.mrb[162].mxu1  ;;  %v9299_v6 = vld [vmem:[#allocation6 + $0x8] sm:$0xff] }
 0x831   :  { %6375 = vmatprep.mubr.bf16.mxu0 %v3152_v16 }
 0x836   :  { %6404 = vmatpush3.bf16.xpose.msra.mxu0 %v10148_v43 }
 0x837   :  { %6846 = vmatprep.subr.msk.bf16.mxu0 %vm150_vm0, %v8974_v15  ;;  %v10159_v15 = vpack.c.bf16 %v9173_v3, %v9162_v42  ;;  %v3716_v42 = vpop.f32.mrb[163].mxu1 }
 0x838   :  { %6376 = vmatmul.mubr.bf16.gmra.mrb[60].mxu0 %v3153_v33  ;;  %v6441_v3 = vpop.f32.mrb[164].mxu1 }
 0x839   :  { %6415 = vmatprep.mubr.msk.bf16.mxu0 %vm150_vm0, %v10157_v34 }
 0x83e   :  { %6406 = vmatpush3.bf16.xpose.msra.mxu0 %v10149_v2 }
 0x83f   :  { %6847 = vmatprep.subr.msk.bf16.mxu0 %vm150_vm0, %v8981_v32  ;;  %v10160_v32 = vpack.c.bf16 %v9165_v38, %v9160_v63  ;;  %v3785_v63 = vpack.c.bf16 %v6438_v56, %v6437_v46  ;;  %v3784_v38 = vpack.c.bf16 %v3716_v42, %v3713_v8  ;;  %v9305_v8 = vld [vmem:[#allocation6 + $0x10] sm:$0xff]  ;;  %v9311_v56 = vld [vmem:[#allocation6 + $0x18] sm:$0xff] }
 0x846   :  { %6408 = vmatpush3.bf16.xpose.msra.mxu0 %v10152_v54 }
 0x847   :  { %6848 = vmatprep.subr.msk.bf16.mxu0 %vm150_vm0, %v8988_v10  ;;  %v10161_v10 = vpack.c.bf16 %v9188_v40, %v9179_v25 }
 0x84e   :  { %6410 = vmatpush3.bf16.xpose.msra.mxu0 %v10154_v23 }
 0x84f   :  { %6849 = vmatprep.subr.msk.bf16.mxu0 %vm150_vm0, %v8995_v24  ;;  %v10162_v24 = vpack.c.bf16 %v9182_v45, %v9177_v5  ;;  %v3729_v5 = vpop.f32.mrb[165].mxu1 }
 0x850   :  { %v6442_v25 = vpop.f32.mrb[166].mxu1 }
 0x851   :  { %v3787_v45 = vpack.c.bf16 %v6442_v25, %v6441_v3  ;;  %v3732_v40 = vpop.f32.mrb[167].mxu1  ;;  %v9317_v3 = vld [vmem:[#allocation6 + $0x20] sm:$0xff] }
 0x852   :  { %v6445_v4 = vpop.f32.mrb[168].mxu1 }
 0x853   :  { %v3745_v20 = vpop.f32.mrb[169].mxu1 }
 0x854   :  { %v6446_v36 = vpop.f32.mrb[170].mxu1 }
 0x855   :  { %v3789_v51 = vpack.c.bf16 %v6446_v36, %v6445_v4  ;;  %v3748_v41 = vpop.f32.mrb[171].mxu1  ;;  %v9329_v4 = vld [vmem:[#allocation6 + $0x30] sm:$0xff]  ;;  %v9335_v36 = vld [vmem:[#allocation6 + $0x38] sm:$0xff] }
 0x856   :  { %6412 = vmatpush3.bf16.xpose.msra.mxu0 %v10155_v50  ;;  %v3788_v59 = vpack.c.bf16 %v3748_v41, %v3745_v20  ;;  %v6449_v57 = vpop.f32.mrb[172].mxu1 }
 0x857   :  { %6850 = vmatprep.subr.msk.bf16.mxu0 %vm150_vm0, %v9002_v0  ;;  %v10163_v0 = vld [vmem:[#allocation22_spill] sm:$0xff]  ;;  %v3761_v26 = vpop.f32.mrb[173].mxu1 }
 0x858   :  { %v10164_v21 = vpack.c.bf16 %v9203_v11, %v10163_v0  ;;  %v3786_v11 = vpack.c.bf16 %v3732_v40, %v3729_v5  ;;  %v6450_v47 = vpop.f32.mrb[174].mxu1  ;;  %v9294_v0 = vld [vmem:[#allocation6] sm:$0xff]  ;;  %v9323_v40 = vld [vmem:[#allocation6 + $0x28] sm:$0xff] }
 0x859   :  { %v3791_v28 = vpack.c.bf16 %v6450_v47, %v6449_v57  ;;  %v3764_v1 = vpop.f32.mrb[175].mxu1  ;;  %v9341_v57 = vld [vmem:[#allocation6 + $0x40] sm:$0xff] }
 0x85a   :  { %v3790_v30 = vpack.c.bf16 %v3764_v1, %v3761_v26  ;;  %v6489_v13 = vpop.f32.mrb[176].mxu1  ;;  %v9347_v1 = vld [vmem:[#allocation6 + $0x48] sm:$0xff] }
 0x85b   :  { %v3956_v29 = vpop.f32.mrb[177].mxu1 }
 0x85c   :  { %v6490_v12 = vpop.f32.mrb[178].mxu1 }
 0x85d   :  { %v4020_v14 = vpack.c.bf16 %v6490_v12, %v6489_v13  ;;  %v3959_v37 = vpop.f32.mrb[179].mxu1  ;;  %v9353_v13 = vld [vmem:[#allocation6 + $0x50] sm:$0xff]  ;;  %v9359_v12 = vld [vmem:[#allocation6 + $0x58] sm:$0xff] }
 0x85e   :  { %6414 = vmatpush3.bf16.xpose.msra.mxu0 %v10156_v19  ;;  %v4019_v52 = vpack.c.bf16 %v3959_v37, %v3956_v29  ;;  %v6493_v53 = vpop.f32.mrb[180].mxu1 }
 0x85f   :  { %6451 = vmatprep.subr.bf16.mxu0 %v3784_v38  ;;  %v3972_v61 = vpop.f32.mrb[181].mxu1 }
 0x860   :  { %6519 = vmatprep.mubr.msk.bf16.mxu1 %vm150_vm0, %v4019_v52  ;;  %v6494_v27 = vpop.f32.mrb[182].mxu1 }
 0x861   :  { %6520 = vmatmul.mubr.msk.bf16.vlgmr.msra.gmra.mrb[192].mxu1 %vm150_vm0, %v4020_v14  ;;  %v4022_v7 = vpack.c.bf16 %v6494_v27, %v6493_v53  ;;  %v3975_v9 = vpop.f32.mrb[183].mxu1  ;;  %v9365_v53 = vld [vmem:[#allocation6 + $0x60] sm:$0xff] }
 0x862   :  { %v4021_v58 = vpack.c.bf16 %v3975_v9, %v3972_v61  ;;  %v6497_v49 = vpop.f32.mrb[184].mxu1  ;;  %v9371_v9 = vld [vmem:[#allocation6 + $0x68] sm:$0xff] }
 0x863   :  { %v3988_v18 = vpop.f32.mrb[185].mxu1 }
 0x864   :  { %6523 = vmatprep.mubr.msk.bf16.mxu1 %vm150_vm0, %v4021_v58  ;;  %v6498_v17 = vpop.f32.mrb[186].mxu1 }
 0x865   :  { %6416 = vmatmul.mubr.msk.bf16.vlgmr.msra.gmra.mrb[112].mxu0 %vm150_vm0, %v10158_v39  ;;  %v4024_v16 = vpack.c.bf16 %v6498_v17, %v6497_v49  ;;  %v3991_v31 = vpop.f32.mrb[187].mxu1  ;;  %v9377_v49 = vld [vmem:[#allocation6 + $0x70] sm:$0xff]  ;;  %v9383_v17 = vld [vmem:[#allocation6 + $0x78] sm:$0xff] }
 0x866   :  { %6419 = vmatprep.mubr.msk.bf16.mxu0 %vm150_vm0, %v10159_v15  ;;  %6452 = vmatpush3.bf16.msra.mxu0 %v3784_v38  ;;  %v4023_v55 = vpack.c.bf16 %v3991_v31, %v3988_v18  ;;  %v6501_v48 = vpop.f32.mrb[188].mxu1 }
 0x867   :  { %6453 = vmatprep.subr.bf16.mxu0 %v3785_v63  ;;  %v4004_v33 = vpop.f32.mrb[189].mxu1 }
 0x868   :  { %v6502_v34 = vpop.f32.mrb[190].mxu1 }
 0x869   :  { %6524 = vmatmul.mubr.msk.bf16.gmra.mrb[196].mxu1 %vm150_vm0, %v4022_v7  ;;  %v4026_v39 = vpack.c.bf16 %v6502_v34, %v6501_v48  ;;  %v4007_v15 = vpop.f32.mrb[191].mxu1 }
 0x86a   :  { %6454 = vmatpush3.bf16.msra.mxu0 %v3785_v63  ;;  %6527 = vmatprep.mubr.msk.bf16.mxu1 %vm150_vm0, %v4023_v55 }
 0x86b   :  { %6455 = vmatprep.subr.bf16.mxu0 %v3786_v11 }
 0x86d   :  { %6420 = vmatmul.mubr.msk.bf16.gmra.mrb[116].mxu0 %vm150_vm0, %v10160_v32  ;;  %v4025_v32 = vpack.c.bf16 %v4007_v15, %v4004_v33 }
 0x86e   :  { %6423 = vmatprep.mubr.msk.bf16.mxu0 %vm150_vm0, %v10161_v10  ;;  %6456 = vmatpush3.bf16.msra.mxu0 %v3786_v11 }
 0x86f   :  { %6457 = vmatprep.subr.bf16.mxu0 %v3787_v45 }
 0x871   :  { %6528 = vmatmul.mubr.msk.bf16.gmra.mrb[200].mxu1 %vm150_vm0, %v4024_v16 }
 0x872   :  { %6458 = vmatpush3.bf16.msra.mxu0 %v3787_v45  ;;  %6531 = vmatprep.mubr.msk.bf16.mxu1 %vm150_vm0, %v4025_v32 }
 0x873   :  { %6459 = vmatprep.subr.bf16.mxu0 %v3788_v59 }
 0x875   :  { %6424 = vmatmul.mubr.msk.bf16.gmra.mrb[120].mxu0 %vm150_vm0, %v10162_v24 }
 0x876   :  { %6427 = vmatprep.mubr.msk.bf16.mxu0 %vm150_vm0, %v10164_v21  ;;  %6460 = vmatpush3.bf16.msra.mxu0 %v3788_v59 }
 0x877   :  { %6461 = vmatprep.subr.bf16.mxu0 %v3789_v51 }
 0x879   :  { %6532 = vmatmul.mubr.msk.bf16.gmra.mrb[204].mxu1 %vm150_vm0, %v4026_v39 }
 0x87a   :  { %6462 = vmatpush3.bf16.msra.mxu0 %v3789_v51  ;;  %6591 = vmatprep.mubr.msk.bf16.mxu1 %vm150_vm0, %v9009_v35 }
 0x87b   :  { %6463 = vmatprep.subr.bf16.mxu0 %v3790_v30 }
 0x87d   :  { %6428 = vmatmul.mubr.msk.bf16.gmra.mrb[124].mxu0 %vm150_vm0, %v10167_v44 }
 0x87e   :  { %6464 = vmatpush3.bf16.msra.mxu0 %v3790_v30 }
 0x87f   :  { %6465 = vmatprep.subr.bf16.mxu0 %v3791_v28 }
 0x882   :  { %6466 = vmatpush3.bf16.msra.mxu0 %v3791_v28 }
 0x934   :  { %v9390_v31 = vpop.f32.mrb[192].mxu1 }
 0x935   :  { %v9392_v55 = vpop.f32.mrb[193].mxu1 }
 0x936   :  { %v9394_v48 = vpop.f32.mrb[194].mxu1 }
 0x937   :  { %v9396_v33 = vpop.f32.mrb[195].mxu1 }
 0x938   :  { %v6417_v10 = vpop.f32.mrb[112].mxu0 }
 0x939   :  { %v3455_v24 = vpop.f32.mrb[113].mxu0  ;;  %v9308_v35 = vadd.f32 %v9305_v8, %v6417_v10 }
 0x93a   :  { %v9297_v21 = vadd.f32 %v9294_v0, %v3455_v24  ;;  %v6418_v46 = vpop.f32.mrb[114].mxu0 }
 0x93b   :  { %v3458_v22 = vpop.f32.mrb[115].mxu0  ;;  %v9314_v63 = vadd.f32 %v9311_v56, %v6418_v46 }
 0x93c   :  { %v9302_v44 = vadd.f32 %v9299_v6, %v3458_v22  ;;  %3518 = vmax.xlane.f32.xlu0 %v9297_v21  ;;  %v9398_v34 = vpop.f32.mrb[196].mxu1 }
 0x93d   :  { %v9400_v39 = vpop.f32.mrb[197].mxu1 }
 0x93e   :  { %3520 = vmax.xlane.f32.xlu1 %v9302_v44  ;;  %v9402_v15 = vpop.f32.mrb[198].mxu1 }
 0x93f   :  { %v9404_v32 = vpop.f32.mrb[199].mxu1 }
 0x940   :  { %v6421_v42 = vpop.f32.mrb[116].mxu0  ;;  %3522 = vmax.xlane.f32.xlu0 %v9308_v35 }
 0x941   :  { %v3471_v38 = vpop.f32.mrb[117].mxu0  ;;  %v9332_v20 = vadd.f32 %v9329_v4, %v6421_v42 }
 0x942   :  { %v9320_v5 = vadd.f32 %v9317_v3, %v3471_v38  ;;  %v6422_v25 = vpop.f32.mrb[118].mxu0  ;;  %3524 = vmax.xlane.f32.xlu1 %v9314_v63 }
 0x943   :  { %v3474_v45 = vpop.f32.mrb[119].mxu0  ;;  %v9338_v51 = vadd.f32 %v9335_v36, %v6422_v25 }
 0x944   :  { %v9326_v11 = vadd.f32 %v9323_v40, %v3474_v45  ;;  %3526 = vmax.xlane.f32.xlu0 %v9320_v5  ;;  %v9406_v10 = vpop.f32.mrb[200].mxu1 }
 0x945   :  { %v9408_v24 = vpop.f32.mrb[201].mxu1 }
 0x946   :  { %3528 = vmax.xlane.f32.xlu1 %v9326_v11  ;;  %v9410_v46 = vpop.f32.mrb[202].mxu1 }
 0x947   :  { %v9412_v22 = vpop.f32.mrb[203].mxu1 }
 0x948   :  { %v6425_v41 = vpop.f32.mrb[120].mxu0  ;;  %3530 = vmax.xlane.f32.xlu0 %v9332_v20 }
 0x949   :  { %v3487_v59 = vpop.f32.mrb[121].mxu0  ;;  %v9356_v29 = vadd.f32 %v9353_v13, %v6425_v41 }
 0x94a   :  { %v9344_v26 = vadd.f32 %v9341_v57, %v3487_v59  ;;  %v6426_v47 = vpop.f32.mrb[122].mxu0  ;;  %3532 = vmax.xlane.f32.xlu1 %v9338_v51 }
 0x94b   :  { %v3490_v28 = vpop.f32.mrb[123].mxu0  ;;  %v9362_v14 = vadd.f32 %v9359_v12, %v6426_v47 }
 0x94c   :  { %v9350_v30 = vadd.f32 %v9347_v1, %v3490_v28  ;;  %3534 = vmax.xlane.f32.xlu0 %v9344_v26  ;;  %v9414_v42 = vpop.f32.mrb[204].mxu1 }
 0x94d   :  { %v9416_v38 = vpop.f32.mrb[205].mxu1 }
 0x94e   :  { %3536 = vmax.xlane.f32.xlu1 %v9350_v30  ;;  %v9418_v25 = vpop.f32.mrb[206].mxu1 }
 0x94f   :  { %v9420_v45 = vpop.f32.mrb[207].mxu1 }
 0x950   :  { %v6429_v37 = vpop.f32.mrb[124].mxu0  ;;  %3538 = vmax.xlane.f32.xlu0 %v9356_v29 }
 0x951   :  { %v3503_v52 = vpop.f32.mrb[125].mxu0  ;;  %v9380_v18 = vadd.f32 %v9377_v49, %v6429_v37 }
 0x952   :  { %v9368_v61 = vadd.f32 %v9365_v53, %v3503_v52  ;;  %v6430_v27 = vpop.f32.mrb[126].mxu0  ;;  %3540 = vmax.xlane.f32.xlu1 %v9362_v14 }
 0x953   :  { %v3506_v7 = vpop.f32.mrb[127].mxu0  ;;  %v9386_v16 = vadd.f32 %v9383_v17, %v6430_v27 }
 0x954   :  { %v9374_v58 = vadd.f32 %v9371_v9, %v3506_v7  ;;  %3542 = vmax.xlane.f32.xlu0 %v9368_v61 }
 0x956   :  { %3544 = vmax.xlane.f32.xlu1 %v9374_v58 }
 0x958   :  { %3546 = vmax.xlane.f32.xlu0 %v9380_v18 }
 0x95a   :  { %3548 = vmax.xlane.f32.xlu1 %v9386_v16 }
 0x9c9   :  { %v3519_v41 = vpop.xlane.xlu0 %3518 }
 0x9ca   :  { %v3550_v59 = vsub.f32 %v9297_v21, %v3519_v41 }
 0x9cb   :  { %v3521_v47 = vpop.xlane.xlu1 %3520 }
 0x9cc   :  { %v3566_v28 = vmul.f32 1.442695, %v3550_v59  ;;  %v3551_v37 = vsub.f32 %v9302_v44, %v3521_v47 }
 0x9cd   :  { %v3523_v52 = vpop.xlane.xlu0 %3522 }
 0x9ce   :  { %7234 = vpow2.f32 %v3566_v28  ;;  %v3568_v27 = vmul.f32 1.442695, %v3551_v37  ;;  %v3552_v7 = vsub.f32 %v9308_v35, %v3523_v52 }
 0x9cf   :  { %v3525_v19 = vpop.xlane.xlu1 %3524 }
 0x9d0   :  { %7236 = vpow2.f32 %v3568_v27  ;;  %v3570_v50 = vmul.f32 1.442695, %v3552_v7  ;;  %v3553_v23 = vsub.f32 %v9314_v63, %v3525_v19 }
 0x9d1   :  { %v3527_v54 = vpop.xlane.xlu0 %3526 }
 0x9d2   :  { %7238 = vpow2.f32 %v3570_v50  ;;  %v3572_v2 = vmul.f32 1.442695, %v3553_v23  ;;  %v3554_v43 = vsub.f32 %v9320_v5, %v3527_v54 }
 0x9d3   :  { %v3529_v21 = vpop.xlane.xlu1 %3528 }
 0x9d4   :  { %7240 = vpow2.f32 %v3572_v2  ;;  %v3574_v41 = vmul.f32 1.442695, %v3554_v43  ;;  %v3555_v44 = vsub.f32 %v9326_v11, %v3529_v21 }
 0x9d5   :  { %v3531_v59 = vpop.xlane.xlu0 %3530 }
 0x9d6   :  { %7242 = vpow2.f32 %v3574_v41  ;;  %v3576_v47 = vmul.f32 1.442695, %v3555_v44  ;;  %v3556_v35 = vsub.f32 %v9332_v20, %v3531_v59 }
 0x9d7   :  { %v3533_v28 = vpop.xlane.xlu1 %3532 }
 0x9d8   :  { %v9429_v37 = vpop.eup %7234  ;;  %7244 = vpow2.f32 %v3576_v47  ;;  %v3578_v19 = vmul.f32 1.442695, %v3556_v35  ;;  %v3557_v50 = vsub.f32 %v9338_v51, %v3533_v28 }
 0x9d9   :  { %3598 = vadd.xlane.f32.xlu0 %v9429_v37  ;;  %v3535_v54 = vpop.xlane.xlu0 %3534 }
 0x9da   :  { %v9433_v23 = vpop.eup %7236  ;;  %7246 = vpow2.f32 %v3578_v19  ;;  %v3580_v43 = vmul.f32 1.442695, %v3557_v50  ;;  %v3558_v2 = vsub.f32 %v9344_v26, %v3535_v54 }
 0x9db   :  { %3600 = vadd.xlane.f32.xlu1 %v9433_v23  ;;  %v3537_v63 = vpop.xlane.xlu1 %3536 }
 0x9dc   :  { %v9437_v5 = vpop.eup %7238  ;;  %7248 = vpow2.f32 %v3580_v43  ;;  %v3582_v11 = vmul.f32 1.442695, %v3558_v2  ;;  %v3559_v20 = vsub.f32 %v9350_v30, %v3537_v63 }
 0x9dd   :  { %3602 = vadd.xlane.f32.xlu0 %v9437_v5  ;;  %v3539_v51 = vpop.xlane.xlu0 %3538 }
 0x9de   :  { %v9441_v52 = vpop.eup %7240  ;;  %7250 = vpow2.f32 %v3582_v11  ;;  %v3584_v27 = vmul.f32 1.442695, %v3559_v20  ;;  %v3560_v7 = vsub.f32 %v9356_v29, %v3539_v51 }
 0x9df   :  { %3604 = vadd.xlane.f32.xlu1 %v9441_v52  ;;  %v3541_v26 = vpop.xlane.xlu1 %3540 }
 0x9e0   :  { %v9445_v21 = vpop.eup %7242  ;;  %7252 = vpow2.f32 %v3584_v27  ;;  %v3586_v41 = vmul.f32 1.442695, %v3560_v7  ;;  %v3561_v44 = vsub.f32 %v9362_v14, %v3541_v26 }
 0x9e1   :  { %3606 = vadd.xlane.f32.xlu0 %v9445_v21  ;;  %v3543_v30 = vpop.xlane.xlu0 %3542 }
 0x9e2   :  { %v9449_v59 = vpop.eup %7244  ;;  %7254 = vpow2.f32 %v3586_v41  ;;  %v3588_v47 = vmul.f32 1.442695, %v3561_v44  ;;  %v3562_v35 = vsub.f32 %v9368_v61, %v3543_v30  ;;  %v9485_v41 = vadd.f32 %v9294_v0, %v9392_v55  ;;  %v9504_v0 = vld [vmem:[#allocation4 + $0x60] sm:$0xff]   ;;  %v6911_v55 = vld [vmem:[#allocation2 + $0x78] sm:$0xff]  }
 0x9e3   :  { %3608 = vadd.xlane.f32.xlu1 %v9449_v59  ;;  %v3545_v29 = vpop.xlane.xlu1 %3544  ;;  %v9492_v30 = vadd.f32 %v9299_v6, %v9396_v33  ;;  %v9509_v6 = vadd.f32 %v9317_v3, %v9400_v39  ;;  %6535 = vmatprep.subr.bf16.mxu0 %v9504_v0  ;;  %v9530_v3 = vadd.f32 %v9341_v57, %v9408_v24  ;;  %v9600_v33 = vld [vmem:[%s10057_s0 + $0x28] sm:$0xff]   ;;  %v9614_v39 = vld [vmem:[%s10057_s0 + $0x38] sm:$0xff]  }
 0x9e4   :  { %v9453_v28 = vpop.eup %7246  ;;  %7256 = vpow2.f32 %v3588_v47  ;;  %v3590_v19 = vmul.f32 1.442695, %v3562_v35  ;;  %v3563_v50 = vsub.f32 %v9374_v58, %v3545_v29  ;;  %v9496_v47 = vadd.f32 %v9305_v8, %v9390_v31 }
 0x9e5   :  { %3610 = vadd.xlane.f32.xlu0 %v9453_v28  ;;  %v3547_v14 = vpop.xlane.xlu0 %3546  ;;  %v9501_v35 = vadd.f32 %v9311_v56, %v9394_v48  ;;  %v9515_v8 = vadd.f32 %v9323_v40, %v9404_v32  ;;  %v9519_v56 = vadd.f32 %v9329_v4, %v9398_v34  ;;  %v9524_v31 = vadd.f32 %v9335_v36, %v9402_v15  ;;  %v9593_v48 = vld [vmem:[%s10057_s0 + $0x20] sm:$0xff]   ;;  %v9607_v34 = vld [vmem:[%s10057_s0 + $0x30] sm:$0xff]  }
 0x9e6   :  { %v9457_v54 = vpop.eup %7248  ;;  %7258 = vpow2.f32 %v3590_v19  ;;  %v3592_v43 = vmul.f32 1.442695, %v3563_v50  ;;  %v3564_v2 = vsub.f32 %v9380_v18, %v3547_v14  ;;  %v9535_v40 = vadd.f32 %v9347_v1, %v9412_v22  ;;  %v9621_v15 = vld [vmem:[%s10057_s0] sm:$0xff]  }
 0x9e7   :  { %3612 = vadd.xlane.f32.xlu1 %v9457_v54  ;;  %v3549_v61 = vpop.xlane.xlu1 %3548  ;;  %v9539_v4 = vadd.f32 %v9353_v13, %v9406_v10  ;;  %v9544_v36 = vadd.f32 %v9359_v12, %v9410_v46  ;;  %v9550_v57 = vadd.f32 %v9365_v53, %v9416_v38  ;;  %v9555_v1 = vadd.f32 %v9371_v9, %v9420_v45  ;;  %v6910_v53 = vld [vmem:[#allocation2 + $0x70] sm:$0xff]   ;;  %v9572_v9 = vld [vmem:[%s10057_s0 + $0x8] sm:$0xff]  }
 0x9e8   :  { %v9461_v63 = vpop.eup %7250  ;;  %7260 = vpow2.f32 %v3592_v43  ;;  %v3594_v11 = vmul.f32 1.442695, %v3564_v2  ;;  %v3565_v20 = vsub.f32 %v9386_v16, %v3549_v61  ;;  %v9559_v13 = vadd.f32 %v9377_v49, %v9414_v42  ;;  %6587 = vmatprep.subr.bf16.mxu1 %v6910_v53  ;;  %v9579_v49 = vld [vmem:[%s10057_s0 + $0x10] sm:$0xff]  }
 0x9e9   :  { %3614 = vadd.xlane.f32.xlu0 %v9461_v63  ;;  %v9564_v12 = vadd.f32 %v9383_v17, %v9418_v25  ;;  %6588 = vmatpush3.bf16.msra.mxu1 %v6910_v53  ;;  %v9586_v17 = vld [vmem:[%s10057_s0 + $0x18] sm:$0xff]  }
 0x9ea   :  { %v9465_v58 = vpop.eup %7252  ;;  %7262 = vpow2.f32 %v3594_v11  ;;  %v3596_v51 = vmul.f32 1.442695, %v3565_v20  ;;  %6589 = vmatprep.subr.bf16.mxu1 %v6911_v55 }
 0x9eb   :  { %3616 = vadd.xlane.f32.xlu1 %v9465_v58 }
 0x9ec   :  { %v9468_v27 = vpop.eup %7254  ;;  %7264 = vpow2.f32 %v3596_v51 }
 0x9ed   :  { %3618 = vadd.xlane.f32.xlu0 %v9468_v27  ;;  %6590 = vmatpush3.bf16.msra.mxu1 %v6911_v55 }
 0x9ee   :  { %v9471_v18 = vpop.eup %7256 }
 0x9ef   :  { %3620 = vadd.xlane.f32.xlu1 %v9471_v18 }
 0x9f0   :  { %v9474_v7 = vpop.eup %7258  ;;  %6592 = vmatmul.mubr.msk.bf16.vlgmr.msra.gmra.mrb[208].mxu1 %vm150_vm0, %v9572_v9 }
 0x9f1   :  { %3622 = vadd.xlane.f32.xlu0 %v9474_v7  ;;  %6595 = vmatprep.mubr.msk.bf16.mxu1 %vm150_vm0, %v9579_v49 }
 0x9f2   :  { %v9477_v16 = vpop.eup %7260 }
 0x9f3   :  { %3624 = vadd.xlane.f32.xlu1 %v9477_v16 }
 0x9f4   :  { %v9480_v26 = vpop.eup %7262 }
 0x9f5   :  { %3626 = vadd.xlane.f32.xlu0 %v9480_v26 }
 0x9f6   :  { %v9487_v44 = vpop.eup %7264 }
 0x9f7   :  { %3628 = vadd.xlane.f32.xlu1 %v9487_v44 }
 0x9f8   :  { %6596 = vmatmul.mubr.msk.bf16.gmra.mrb[212].mxu1 %vm150_vm0, %v9586_v17 }
 0x9f9   :  { %4148 = vmax.xlane.f32.xlu0 %v9485_v41  ;;  %6599 = vmatprep.mubr.msk.bf16.mxu1 %vm150_vm0, %v9593_v48 }
 0x9fb   :  { %4150 = vmax.xlane.f32.xlu1 %v9492_v30 }
 0x9fd   :  { %4152 = vmax.xlane.f32.xlu0 %v9496_v47 }
 0x9ff   :  { %4154 = vmax.xlane.f32.xlu1 %v9501_v35 }
 0xa00   :  { %6600 = vmatmul.mubr.msk.bf16.gmra.mrb[216].mxu1 %vm150_vm0, %v9600_v33 }
 0xa01   :  { %4156 = vmax.xlane.f32.xlu0 %v9509_v6  ;;  %6603 = vmatprep.mubr.msk.bf16.mxu1 %vm150_vm0, %v9607_v34 }
 0xa03   :  { %4158 = vmax.xlane.f32.xlu1 %v9515_v8 }
 0xa05   :  { %4160 = vmax.xlane.f32.xlu0 %v9519_v56 }
 0xa07   :  { %4162 = vmax.xlane.f32.xlu1 %v9524_v31 }
 0xa08   :  { %6604 = vmatmul.mubr.msk.bf16.gmra.mrb[220].mxu1 %vm150_vm0, %v9614_v39 }
 0xa09   :  { %4164 = vmax.xlane.f32.xlu0 %v9530_v3  ;;  %6643 = vmatprep.mubr.msk.bf16.mxu1 %vm150_vm0, %v9621_v15 }
 0xa0b   :  { %4166 = vmax.xlane.f32.xlu1 %v9535_v40 }
 0xa0d   :  { %4168 = vmax.xlane.f32.xlu0 %v9539_v4 }
 0xa0f   :  { %4170 = vmax.xlane.f32.xlu1 %v9544_v36 }
 0xa11   :  { %4172 = vmax.xlane.f32.xlu0 %v9550_v57 }
 0xa13   :  { %4174 = vmax.xlane.f32.xlu1 %v9555_v1 }
 0xa15   :  { %4176 = vmax.xlane.f32.xlu0 %v9559_v13 }
 0xa17   :  { %4178 = vmax.xlane.f32.xlu1 %v9564_v12 }
 0xa66   :  { %v3599_v32 = vpop.xlane.xlu0 %3598 }
 0xa67   :  { %7266 = vrcp.f32 %v3599_v32 }
 0xa68   :  { %v3601_v10 = vpop.xlane.xlu1 %3600 }
 0xa69   :  { %7268 = vrcp.f32 %v3601_v10  ;;  %v6909_v10 = vld [vmem:[#allocation4 + $0x68] sm:$0xff]  }
 0xa6a   :  { %v3603_v24 = vpop.xlane.xlu0 %3602 }
 0xa6b   :  { %7270 = vrcp.f32 %v3603_v24 }
 0xa6c   :  { %v3605_v46 = vpop.xlane.xlu1 %3604 }
 0xa6d   :  { %7272 = vrcp.f32 %v3605_v46 }
 0xa6e   :  { %v3607_v22 = vpop.xlane.xlu0 %3606 }
 0xa6f   :  { %7274 = vrcp.f32 %v3607_v22 }
 0xa70   :  { %v3609_v42 = vpop.xlane.xlu1 %3608 }
 0xa71   :  { %v7267_v38 = vpop.eup %7266  ;;  %7276 = vrcp.f32 %v3609_v42 }
 0xa72   :  { %v3611_v25 = vpop.xlane.xlu0 %3610  ;;  %v3646_v19 = vmul.f32 %v7267_v38, %v9429_v37 }
 0xa73   :  { %v7269_v45 = vpop.eup %7268  ;;  %7278 = vrcp.f32 %v3611_v25 }
 0xa74   :  { %v3613_v29 = vpop.xlane.xlu1 %3612  ;;  %v3647_v50 = vmul.f32 %v7269_v45, %v9433_v23 }
 0xa75   :  { %v7271_v14 = vpop.eup %7270  ;;  %7280 = vrcp.f32 %v3613_v29 }
 0xa76   :  { %v3615_v43 = vpop.xlane.xlu0 %3614  ;;  %v3776_v2 = vpack.c.bf16 %v3647_v50, %v3646_v19  ;;  %v3648_v11 = vmul.f32 %v7271_v14, %v9437_v5 }
 0xa77   :  { %v7273_v61 = vpop.eup %7272  ;;  %7282 = vrcp.f32 %v3615_v43 }
 0xa78   :  { %v3649_v20 = vmul.f32 %v7273_v61, %v9441_v52  ;;  %v3617_v51 = vpop.xlane.xlu1 %3616  ;;  %6467 = vmatprep.mubr.bf16.mxu0 %v3776_v2 }
 0xa79   :  { %v7275_v53 = vpop.eup %7274  ;;  %7284 = vrcp.f32 %v3617_v51 }
 0xa7a   :  { %v3619_v55 = vpop.xlane.xlu0 %3618  ;;  %v3777_v32 = vpack.c.bf16 %v3649_v20, %v3648_v11  ;;  %v3650_v24 = vmul.f32 %v7275_v53, %v9445_v21 }
 0xa7b   :  { %v7277_v37 = vpop.eup %7276  ;;  %7286 = vrcp.f32 %v3619_v55 }
 0xa7c   :  { %v3621_v23 = vpop.xlane.xlu1 %3620  ;;  %6468 = vmatmul.mubr.bf16.vlgmr.msra.gmra.mrb[48].mxu0 %v3777_v32  ;;  %v3651_v46 = vmul.f32 %v7277_v37, %v9449_v59 }
 0xa7d   :  { %v7279_v22 = vpop.eup %7278  ;;  %7288 = vrcp.f32 %v3621_v23  ;;  %6536 = vmatpush3.bf16.msra.mxu0 %v9504_v0 }
 0xa7e   :  { %v3623_v5 = vpop.xlane.xlu0 %3622  ;;  %v3778_v52 = vpack.c.bf16 %v3651_v46, %v3650_v24  ;;  %6537 = vmatprep.subr.bf16.mxu0 %v6909_v10  ;;  %v3652_v25 = vmul.f32 %v7279_v22, %v9453_v28 }
 0xa7f   :  { %v7281_v42 = vpop.eup %7280  ;;  %7290 = vrcp.f32 %v3623_v5 }
 0xa80   :  { %v3625_v38 = vpop.xlane.xlu1 %3624  ;;  %6471 = vmatprep.mubr.bf16.mxu0 %v3778_v52  ;;  %v3653_v45 = vmul.f32 %v7281_v42, %v9457_v54 }
 0xa81   :  { %v7283_v29 = vpop.eup %7282  ;;  %7292 = vrcp.f32 %v3625_v38  ;;  %6538 = vmatpush3.bf16.msra.mxu0 %v6909_v10 }
 0xa82   :  { %v3627_v21 = vpop.xlane.xlu0 %3626  ;;  %v3779_v59 = vpack.c.bf16 %v3653_v45, %v3652_v25  ;;  %v3654_v0 = vmul.f32 %v7283_v29, %v9461_v63 }
 0xa83   :  { %v7285_v19 = vpop.eup %7284  ;;  %7294 = vrcp.f32 %v3627_v21 }
 0xa84   :  { %v3629_v50 = vpop.xlane.xlu1 %3628  ;;  %6472 = vmatmul.mubr.bf16.gmra.mrb[52].mxu0 %v3779_v59  ;;  %v3655_v14 = vmul.f32 %v7285_v19, %v9465_v58 }
 0xa85   :  { %v7287_v43 = vpop.eup %7286  ;;  %7296 = vrcp.f32 %v3629_v50 }
 0xa86   :  { %v4149_v2 = vpop.xlane.xlu0 %4148  ;;  %v3780_v61 = vpack.c.bf16 %v3655_v14, %v3654_v0  ;;  %v3656_v20 = vmul.f32 %v7287_v43, %v9468_v27 }
 0xa87   :  { %v7289_v28 = vpop.eup %7288  ;;  %v4180_v54 = vsub.f32 %v9485_v41, %v4149_v2 }
 0xa88   :  { %v4151_v11 = vpop.xlane.xlu1 %4150  ;;  %6475 = vmatprep.mubr.bf16.mxu0 %v3780_v61  ;;  %v3657_v51 = vmul.f32 %v7289_v28, %v9471_v18 }
 0xa89   :  { %v7291_v53 = vpop.eup %7290  ;;  %v4196_v55 = vmul.f32 1.442695, %v4180_v54  ;;  %v4181_v32 = vsub.f32 %v9492_v30, %v4151_v11 }
 0xa8a   :  { %v4153_v63 = vpop.xlane.xlu0 %4152  ;;  %v3781_v10 = vpack.c.bf16 %v3657_v51, %v3656_v20  ;;  %v3658_v41 = vmul.f32 %v7291_v53, %v9474_v7 }
 0xa8b   :  { %v7293_v58 = vpop.eup %7292  ;;  %7298 = vpow2.f32 %v4196_v55  ;;  %v4198_v37 = vmul.f32 1.442695, %v4181_v32  ;;  %v4182_v23 = vsub.f32 %v9496_v47, %v4153_v63 }
 0xa8c   :  { %v4155_v24 = vpop.xlane.xlu1 %4154  ;;  %6476 = vmatmul.mubr.bf16.gmra.mrb[56].mxu0 %v3781_v10  ;;  %v3659_v46 = vmul.f32 %v7293_v58, %v9477_v16 }
 0xa8d   :  { %v7295_v27 = vpop.eup %7294  ;;  %7300 = vpow2.f32 %v4198_v37  ;;  %v4200_v18 = vmul.f32 1.442695, %v4182_v23  ;;  %v4183_v22 = vsub.f32 %v9501_v35, %v4155_v24 }
 0xa8e   :  { %v4157_v5 = vpop.xlane.xlu0 %4156  ;;  %v3782_v30 = vpack.c.bf16 %v3659_v46, %v3658_v41  ;;  %v3660_v47 = vmul.f32 %v7295_v27, %v9480_v26 }
 0xa8f   :  { %v7297_v52 = vpop.eup %7296  ;;  %7302 = vpow2.f32 %v4200_v18  ;;  %v4202_v42 = vmul.f32 1.442695, %v4183_v22  ;;  %v4184_v38 = vsub.f32 %v9509_v6, %v4157_v5 }
 0xa90   :  { %v4159_v25 = vpop.xlane.xlu1 %4158  ;;  %6479 = vmatprep.mubr.bf16.mxu0 %v3782_v30  ;;  %v3661_v7 = vmul.f32 %v7297_v52, %v9487_v44 }
 0xa91   :  { %7304 = vpow2.f32 %v4202_v42  ;;  %v4204_v16 = vmul.f32 1.442695, %v4184_v38  ;;  %v4185_v45 = vsub.f32 %v9515_v8, %v4159_v25 }
 0xa92   :  { %v4161_v29 = vpop.xlane.xlu0 %4160  ;;  %v3783_v21 = vpack.c.bf16 %v3661_v7, %v3660_v47 }
 0xa93   :  { %7306 = vpow2.f32 %v4204_v16  ;;  %v4206_v35 = vmul.f32 1.442695, %v4185_v45  ;;  %v4186_v59 = vsub.f32 %v9519_v56, %v4161_v29 }
 0xa94   :  { %v4163_v19 = vpop.xlane.xlu1 %4162  ;;  %6480 = vmatmul.mubr.bf16.gmra.mrb[60].mxu0 %v3783_v21 }
 0xa95   :  { %v9649_v50 = vpop.eup %7298  ;;  %7308 = vpow2.f32 %v4206_v35  ;;  %v4208_v6 = vmul.f32 1.442695, %v4186_v59  ;;  %v4187_v26 = vsub.f32 %v9524_v31, %v4163_v19  ;;  %6539 = vmatprep.mubr.msk.bf16.mxu0 %vm150_vm0, %v9621_v15 }
 0xa96   :  { %4228 = vadd.xlane.f32.xlu0 %v9649_v50  ;;  %v4165_v44 = vpop.xlane.xlu0 %4164 }
 0xa97   :  { %v9655_v8 = vpop.eup %7300  ;;  %7310 = vpow2.f32 %v4208_v6  ;;  %v4210_v0 = vmul.f32 1.442695, %v4187_v26  ;;  %v4188_v56 = vsub.f32 %v9530_v3, %v4165_v44 }
 0xa98   :  { %4230 = vadd.xlane.f32.xlu1 %v9655_v8  ;;  %v4167_v14 = vpop.xlane.xlu1 %4166 }
 0xa99   :  { %v9659_v43 = vpop.eup %7302  ;;  %7312 = vpow2.f32 %v4210_v0  ;;  %v4212_v2 = vmul.f32 1.442695, %v4188_v56  ;;  %v4189_v31 = vsub.f32 %v9535_v40, %v4167_v14 }
 0xa9a   :  { %4232 = vadd.xlane.f32.xlu0 %v9659_v43  ;;  %v4169_v61 = vpop.xlane.xlu0 %4168 }
 0xa9b   :  { %v9663_v28 = vpop.eup %7304  ;;  %7314 = vpow2.f32 %v4212_v2  ;;  %v4214_v54 = vmul.f32 1.442695, %v4189_v31  ;;  %v4190_v11 = vsub.f32 %v9539_v4, %v4169_v61 }
 0xa9c   :  { %4234 = vadd.xlane.f32.xlu1 %v9663_v28  ;;  %v4171_v3 = vpop.xlane.xlu1 %4170  ;;  %6540 = vmatmul.mubr.msk.bf16.vlgmr.msra.gmra.mrb[128].mxu0 %vm150_vm0, %v9572_v9 }
 0xa9d   :  { %v9669_v20 = vpop.eup %7306  ;;  %7316 = vpow2.f32 %v4214_v54  ;;  %v4216_v51 = vmul.f32 1.442695, %v4190_v11  ;;  %v4191_v40 = vsub.f32 %v9544_v36, %v4171_v3  ;;  %6543 = vmatprep.mubr.msk.bf16.mxu0 %vm150_vm0, %v9579_v49 }
 0xa9e   :  { %4236 = vadd.xlane.f32.xlu0 %v9669_v20  ;;  %v4173_v53 = vpop.xlane.xlu0 %4172 }
 0xa9f   :  { %v9675_v55 = vpop.eup %7308  ;;  %7318 = vpow2.f32 %v4216_v51  ;;  %v4218_v4 = vmul.f32 1.442695, %v4191_v40  ;;  %v4192_v32 = vsub.f32 %v9550_v57, %v4173_v53 }
 0xaa0   :  { %4238 = vadd.xlane.f32.xlu1 %v9675_v55  ;;  %v4175_v63 = vpop.xlane.xlu1 %4174 }
 0xaa1   :  { %v9679_v10 = vpop.eup %7310  ;;  %7320 = vpow2.f32 %v4218_v4  ;;  %v4220_v58 = vmul.f32 1.442695, %v4192_v32  ;;  %v4193_v36 = vsub.f32 %v9555_v1, %v4175_v63 }
 0xaa2   :  { %4240 = vadd.xlane.f32.xlu0 %v9679_v10  ;;  %v4177_v37 = vpop.xlane.xlu0 %4176 }
 0xaa3   :  { %v9683_v23 = vpop.eup %7312  ;;  %7322 = vpow2.f32 %v4220_v58  ;;  %v4222_v24 = vmul.f32 1.442695, %v4193_v36  ;;  %v4194_v41 = vsub.f32 %v9559_v13, %v4177_v37 }
 0xaa4   :  { %4242 = vadd.xlane.f32.xlu1 %v9683_v23  ;;  %v4179_v57 = vpop.xlane.xlu1 %4178  ;;  %6544 = vmatmul.mubr.msk.bf16.gmra.mrb[132].mxu0 %vm150_vm0, %v9586_v17 }
 0xaa5   :  { %v9689_v46 = vpop.eup %7314  ;;  %7324 = vpow2.f32 %v4222_v24  ;;  %v4224_v27 = vmul.f32 1.442695, %v4194_v41  ;;  %v4195_v1 = vsub.f32 %v9564_v12, %v4179_v57  ;;  %6547 = vmatprep.mubr.msk.bf16.mxu0 %vm150_vm0, %v9593_v48 }
 0xaa6   :  { %4244 = vadd.xlane.f32.xlu0 %v9689_v46 }
 0xaa7   :  { %v9695_v18 = vpop.eup %7316  ;;  %7326 = vpow2.f32 %v4224_v27  ;;  %v4226_v13 = vmul.f32 1.442695, %v4195_v1 }
 0xaa8   :  { %4246 = vadd.xlane.f32.xlu1 %v9695_v18 }
 0xaa9   :  { %v9698_v22 = vpop.eup %7318  ;;  %7328 = vpow2.f32 %v4226_v13 }
 0xaaa   :  { %4248 = vadd.xlane.f32.xlu0 %v9698_v22 }
 0xaab   :  { %v9701_v5 = vpop.eup %7320 }
 0xaac   :  { %4250 = vadd.xlane.f32.xlu1 %v9701_v5  ;;  %6548 = vmatmul.mubr.msk.bf16.gmra.mrb[136].mxu0 %vm150_vm0, %v9600_v33 }
 0xaad   :  { %v9706_v12 = vpop.eup %7322  ;;  %6551 = vmatprep.mubr.msk.bf16.mxu0 %vm150_vm0, %v9607_v34 }
 0xaae   :  { %4252 = vadd.xlane.f32.xlu0 %v9706_v12 }
 0xaaf   :  { %v9711_v30 = vpop.eup %7324 }
 0xab0   :  { %4254 = vadd.xlane.f32.xlu1 %v9711_v30 }
 0xab1   :  { %v9714_v52 = vpop.eup %7326 }
 0xab2   :  { %4256 = vadd.xlane.f32.xlu0 %v9714_v52 }
 0xab3   :  { %v9717_v42 = vpop.eup %7328 }
 0xab4   :  { %4258 = vadd.xlane.f32.xlu1 %v9717_v42  ;;  %6552 = vmatmul.mubr.msk.bf16.gmra.mrb[140].mxu0 %vm150_vm0, %v9614_v39 }
 0xac3   :  { %v9724_v21 = vpop.f32.mrb[208].mxu1 }
 0xac4   :  { %v9726_v35 = vpop.f32.mrb[209].mxu1 }
 0xac5   :  { %v9728_v59 = vpop.f32.mrb[210].mxu1 }
 0xac6   :  { %v4650_v19 = vpack.c.bf16 %v9728_v59, %v9724_v21  ;;  %v9732_v6 = vpop.f32.mrb[211].mxu1 }
 0xac7   :  { %v4649_v26 = vpack.c.bf16 %v9732_v6, %v9726_v35  ;;  %v10173_v35 = vld [vmem:[#allocation16_spill] sm:$0xff] }
 0xacb   :  { %v9736_v44 = vpop.f32.mrb[212].mxu1 }
 0xb23   :  { %v4229_v38 = vpop.xlane.xlu0 %4228 }
 0xb24   :  { %7330 = vrcp.f32 %v4229_v38 }
 0xb25   :  { %v4231_v25 = vpop.xlane.xlu1 %4230 }
 0xb26   :  { %7332 = vrcp.f32 %v4231_v25 }
 0xb27   :  { %v4233_v1 = vpop.xlane.xlu0 %4232 }
 0xb29   :  { %v4235_v24 = vpop.xlane.xlu1 %4234 }
 0xb2a   :  { %7334 = vrcp.f32 %v4235_v24 }
 0xb2d   :  { %v4239_v38 = vpop.xlane.xlu1 %4238 }
 0xb2e   :  { %v7331_v47 = vpop.eup %7330  ;;  %7336 = vrcp.f32 %v4239_v38 }
 0xb2f   :  { %v4276_v16 = vmul.f32 %v7331_v47, %v9649_v50  ;;  %v9738_v50 = vpop.f32.mrb[213].mxu1  ;;  %7338 = vrcp.f32 %v4233_v1 }
 0xb30   :  { %v7333_v7 = vpop.eup %7332 }
 0xb31   :  { %v4277_v45 = vmul.f32 %v7333_v7, %v9655_v8  ;;  %v9740_v8 = vpop.f32.mrb[214].mxu1  ;;  %v4237_v7 = vpop.xlane.xlu0 %4236 }
 0xb32   :  { %v9744_v56 = vpop.f32.mrb[215].mxu1  ;;  %v4243_v4 = vpop.xlane.xlu1 %4242  ;;  %7340 = vrcp.f32 %v4237_v7  ;;  %v10174_v6 = vpack.c.bf16 %v9740_v8, %v9736_v44  ;;  %v6912_v44 = vld [vmem:[#allocation4 + $0x70] sm:$0xff]  }
 0xb33   :  { %v4406_v29 = vpack.c.bf16 %v4277_v45, %v4276_v16  ;;  %v4651_v14 = vpack.c.bf16 %v9744_v56, %v9738_v50  ;;  %v9748_v2 = vpop.f32.mrb[216].mxu1  ;;  %7342 = vrcp.f32 %v4243_v4  ;;  %v6913_v50 = vld [vmem:[#allocation4 + $0x78] sm:$0xff]   ;;  %6639 = vmatprep.subr.bf16.mxu1 %v6912_v44  ;;  %v7482_v56 = vld [vmem:[#allocation6] sm:$0xff] }
 0xb34   :  { %v9750_v31 = vpop.f32.mrb[217].mxu1  ;;  %v7335_v24 = vpop.eup %7334  ;;  %6640 = vmatpush3.bf16.msra.mxu1 %v6912_v44 }
 0xb35   :  { %6571 = vmatprep.mubr.bf16.mxu0 %v4406_v29  ;;  %v9752_v61 = vpop.f32.mrb[218].mxu1  ;;  %6641 = vmatprep.subr.bf16.mxu1 %v6913_v50 }
 0xb36   :  { %v9756_v11 = vpop.f32.mrb[219].mxu1  ;;  %v4247_v3 = vpop.xlane.xlu1 %4246  ;;  %v10176_v21 = vpack.c.bf16 %v9752_v61, %v9748_v2 }
 0xb37   :  { %v9760_v51 = vpop.f32.mrb[220].mxu1  ;;  %7344 = vrcp.f32 %v4247_v3 }
 0xb38   :  { %v9762_v40 = vpop.f32.mrb[221].mxu1  ;;  %v7337_v1 = vpop.eup %7336  ;;  %6642 = vmatpush3.bf16.msra.mxu1 %v6913_v50 }
 0xb39   :  { %v9764_v53 = vpop.f32.mrb[222].mxu1  ;;  %v7339_v7 = vpop.eup %7338  ;;  %v4281_v4 = vmul.f32 %v7337_v1, %v9675_v55 }
 0xb3a   :  { %v9768_v32 = vpop.f32.mrb[223].mxu1 }
 0xb3b   :  { %v10177_v59 = vpack.c.bf16 %v9768_v32, %v9762_v40  ;;  %6644 = vmatmul.mubr.msk.bf16.vlgmr.msra.gmra.mrb[224].mxu1 %vm150_vm0, %v9572_v9 }
 0xb3c   :  { %6647 = vmatprep.mubr.msk.bf16.mxu1 %vm150_vm0, %v9579_v49 }
 0xb43   :  { %6648 = vmatmul.mubr.msk.bf16.gmra.mrb[228].mxu1 %vm150_vm0, %v9586_v17 }
 0xb44   :  { %6651 = vmatprep.mubr.msk.bf16.mxu1 %vm150_vm0, %v9593_v48 }
 0xb4b   :  { %6652 = vmatmul.mubr.msk.bf16.gmra.mrb[232].mxu1 %vm150_vm0, %v9600_v33 }
 0xb4c   :  { %6655 = vmatprep.mubr.msk.bf16.mxu1 %vm150_vm0, %v9607_v34 }
 0xb53   :  { %6656 = vmatmul.mubr.msk.bf16.gmra.mrb[236].mxu1 %vm150_vm0, %v9614_v39 }
 0xb6f   :  { %v6541_v58 = vpop.f32.mrb[128].mxu0 }
 0xb70   :  { %v4343_v36 = vpop.f32.mrb[129].mxu0 }
 0xb71   :  { %v6542_v37 = vpop.f32.mrb[130].mxu0 }
 0xb72   :  { %v4415_v41 = vpack.c.bf16 %v6542_v37, %v6541_v58  ;;  %v4346_v57 = vpop.f32.mrb[131].mxu0  ;;  %v4241_v58 = vpop.xlane.xlu0 %4240 }
 0xb73   :  { %v4414_v27 = vpack.c.bf16 %v4346_v57, %v4343_v36  ;;  %7346 = vrcp.f32 %v4241_v58 }
 0xb75   :  { %6555 = vmatprep.subr.bf16.mxu0 %v4414_v27 }
 0xb76   :  { %6556 = vmatpush3.bf16.msra.mxu0 %v4414_v27 }
 0xb77   :  { %v6545_v13 = vpop.f32.mrb[132].mxu0  ;;  %6557 = vmatprep.subr.bf16.mxu0 %v4415_v41 }
 0xb78   :  { %v4359_v25 = vpop.f32.mrb[133].mxu0 }
 0xb79   :  { %v6546_v47 = vpop.f32.mrb[134].mxu0 }
 0xb7a   :  { %v4417_v16 = vpack.c.bf16 %v6546_v47, %v6545_v13  ;;  %v4362_v45 = vpop.f32.mrb[135].mxu0  ;;  %6558 = vmatpush3.bf16.msra.mxu0 %v4415_v41  ;;  %v4245_v41 = vpop.xlane.xlu0 %4244 }
 0xb7b   :  { %v4416_v29 = vpack.c.bf16 %v4362_v45, %v4359_v25  ;;  %v4251_v45 = vpop.xlane.xlu1 %4250  ;;  %7348 = vrcp.f32 %v4245_v41 }
 0xb7c   :  { %7350 = vrcp.f32 %v4251_v45 }
 0xb7d   :  { %6559 = vmatprep.subr.bf16.mxu0 %v4416_v29 }
 0xb7e   :  { %6560 = vmatpush3.bf16.msra.mxu0 %v4416_v29  ;;  %v4249_v38 = vpop.xlane.xlu0 %4248 }
 0xb7f   :  { %v6549_v63 = vpop.f32.mrb[136].mxu0  ;;  %6561 = vmatprep.subr.bf16.mxu0 %v4417_v16 }
 0xb80   :  { %v4375_v36 = vpop.f32.mrb[137].mxu0 }
 0xb81   :  { %v6550_v37 = vpop.f32.mrb[138].mxu0 }
 0xb82   :  { %v4419_v57 = vpack.c.bf16 %v6550_v37, %v6549_v63  ;;  %v4378_v27 = vpop.f32.mrb[139].mxu0  ;;  %6562 = vmatpush3.bf16.msra.mxu0 %v4417_v16  ;;  %v4279_v16 = vmul.f32 %v7335_v24, %v9663_v28  ;;  %v4278_v37 = vmul.f32 %v7339_v7, %v9659_v43  ;;  %v4253_v3 = vpop.xlane.xlu0 %4252 }
 0xb83   :  { %v4418_v54 = vpack.c.bf16 %v4378_v27, %v4375_v36  ;;  %v4255_v36 = vpop.xlane.xlu1 %4254 }
 0xb84   :  { %7352 = vrcp.f32 %v4255_v36  ;;  %v4407_v58 = vpack.c.bf16 %v4279_v16, %v4278_v37 }
 0xb85   :  { %6563 = vmatprep.subr.bf16.mxu0 %v4418_v54  ;;  %7354 = vrcp.f32 %v4249_v38 }
 0xb86   :  { %6564 = vmatpush3.bf16.msra.mxu0 %v4418_v54  ;;  %v7341_v54 = vpop.eup %7340  ;;  %7356 = vrcp.f32 %v4253_v3  ;;  %v7488_v3 = vld [vmem:[#allocation6 + $0x30] sm:$0xff] }
 0xb87   :  { %v6553_v13 = vpop.f32.mrb[140].mxu0  ;;  %6565 = vmatprep.subr.bf16.mxu0 %v4419_v57  ;;  %v4259_v43 = vpop.xlane.xlu1 %4258 }
 0xb88   :  { %v4391_v25 = vpop.f32.mrb[141].mxu0  ;;  %7358 = vrcp.f32 %v4259_v43 }
 0xb89   :  { %v6554_v47 = vpop.f32.mrb[142].mxu0 }
 0xb8a   :  { %v4421_v29 = vpack.c.bf16 %v6554_v47, %v6553_v13  ;;  %v4394_v0 = vpop.f32.mrb[143].mxu0  ;;  %6566 = vmatpush3.bf16.msra.mxu0 %v4419_v57  ;;  %v7343_v57 = vpop.eup %7342 }
 0xb8b   :  { %v4420_v63 = vpack.c.bf16 %v4394_v0, %v4391_v25  ;;  %v4280_v0 = vmul.f32 %v7341_v54, %v9669_v20  ;;  %v7345_v28 = vpop.eup %7344  ;;  %v4283_v13 = vmul.f32 %v7343_v57, %v9683_v23  ;;  %v4257_v20 = vpop.xlane.xlu0 %4256 }
 0xb8c   :  { %v7347_v41 = vpop.eup %7346  ;;  %v4285_v25 = vmul.f32 %v7345_v28, %v9695_v18  ;;  %7360 = vrcp.f32 %v4257_v20 }
 0xb8d   :  { %6567 = vmatprep.subr.bf16.mxu0 %v4420_v63  ;;  %v4408_v27 = vpack.c.bf16 %v4281_v4, %v4280_v0  ;;  %v7349_v55 = vpop.eup %7348  ;;  %v4282_v47 = vmul.f32 %v7347_v41, %v9679_v10  ;;  %v7487_v4 = vld [vmem:[#allocation6 + $0x28] sm:$0xff]  ;;  %v7490_v41 = vld [vmem:[#allocation6 + $0x40] sm:$0xff] }
 0xb8e   :  { %6568 = vmatpush3.bf16.msra.mxu0 %v4420_v63 }
 0xb8f   :  { %6569 = vmatprep.subr.bf16.mxu0 %v4421_v29  ;;  %v4409_v45 = vpack.c.bf16 %v4283_v13, %v4282_v47  ;;  %v7492_v47 = vld [vmem:[#allocation6 + $0x50] sm:$0xff] }
 0xb92   :  { %6570 = vmatpush3.bf16.msra.mxu0 %v4421_v29  ;;  %v7351_v29 = vpop.eup %7350 }
 0xb93   :  { %6859 = vmatprep.subr.msk.bf16.mxu0 %vm150_vm0, %v9621_v15  ;;  %v4284_v15 = vmul.f32 %v7349_v55, %v9689_v46  ;;  %v7353_v24 = vpop.eup %7352  ;;  %v4287_v38 = vmul.f32 %v7351_v29, %v9701_v5 }
 0xb94   :  { %v7355_v23 = vpop.eup %7354  ;;  %v4289_v10 = vmul.f32 %v7353_v24, %v9711_v30  ;;  %v10168_v30 = vld [vmem:[#allocation11_spill] sm:$0xff] }
 0xb95   :  { %6572 = vmatmul.mubr.bf16.vlgmr.msra.gmra.mrb[48].mxu0 %v4407_v58  ;;  %v4410_v63 = vpack.c.bf16 %v4285_v25, %v4284_v15  ;;  %v7357_v18 = vpop.eup %7356  ;;  %v4286_v46 = vmul.f32 %v7355_v23, %v9698_v22  ;;  %v7489_v58 = vld [vmem:[#allocation6 + $0x38] sm:$0xff]  ;;  %v7491_v25 = vld [vmem:[#allocation6 + $0x48] sm:$0xff]  ;;  %v7494_v23 = vld [vmem:[#allocation6 + $0x60] sm:$0xff] }
 0xb96   :  { %6575 = vmatprep.mubr.bf16.mxu0 %v4408_v27  ;;  %v7359_v7 = vpop.eup %7358 }
 0xb97   :  { %v4411_v1 = vpack.c.bf16 %v4287_v38, %v4286_v46  ;;  %v7361_v16 = vpop.eup %7360  ;;  %v4291_v36 = vmul.f32 %v7359_v7, %v9717_v42  ;;  %v10172_v42 = vld [vmem:[#allocation15_spill] sm:$0xff]  ;;  %v7495_v46 = vld [vmem:[#allocation6 + $0x68] sm:$0xff] }
 0xb98   :  { %v4290_v5 = vmul.f32 %v7361_v16, %v9714_v52  ;;  %v10171_v52 = vld [vmem:[#allocation14_spill] sm:$0xff] }
 0xb9a   :  { %v4413_v22 = vpack.c.bf16 %v4291_v36, %v4290_v5 }
 0xb9b   :  { %6608 = vmatpush3.bf16.xpose.msra.mxu0 %v10126_v60  ;;  %v4288_v60 = vmul.f32 %v7357_v18, %v9706_v12  ;;  %v10170_v12 = vld [vmem:[#allocation13_spill] sm:$0xff] }
 0xb9c   :  { %6860 = vmatprep.subr.msk.bf16.mxu0 %vm150_vm0, %v9572_v9 }
 0xb9d   :  { %6576 = vmatmul.mubr.bf16.gmra.mrb[52].mxu0 %v4409_v45  ;;  %v4412_v54 = vpack.c.bf16 %v4289_v10, %v4288_v60  ;;  %v7493_v45 = vld [vmem:[#allocation6 + $0x58] sm:$0xff] }
 0xb9e   :  { %6579 = vmatprep.mubr.bf16.mxu0 %v4410_v63 }
 0xba3   :  { %6610 = vmatpush3.bf16.xpose.msra.mxu0 %v10127_v62  ;;  %v10169_v62 = vld [vmem:[#allocation12_spill] sm:$0xff] }
 0xba4   :  { %6861 = vmatprep.subr.msk.bf16.mxu0 %vm150_vm0, %v9579_v49 }
 0xba5   :  { %6580 = vmatmul.mubr.bf16.gmra.mrb[56].mxu0 %v4411_v1  ;;  %v7496_v1 = vld [vmem:[#allocation6 + $0x70] sm:$0xff] }
 0xba6   :  { %6583 = vmatprep.mubr.bf16.mxu0 %v4412_v54  ;;  %v7497_v54 = vld [vmem:[#allocation6 + $0x78] sm:$0xff] }
 0xbab   :  { %6612 = vmatpush3.bf16.xpose.msra.mxu0 %v10168_v30 }
 0xbac   :  { %6862 = vmatprep.subr.msk.bf16.mxu0 %vm150_vm0, %v9586_v17  ;;  %v7483_v17 = vld [vmem:[#allocation6 + $0x8] sm:$0xff] }
 0xbad   :  { %6584 = vmatmul.mubr.bf16.gmra.mrb[60].mxu0 %v4413_v22 }
 0xbae   :  { %6623 = vmatprep.mubr.msk.bf16.mxu0 %vm150_vm0, %v4649_v26  ;;  %v10175_v26 = vpack.c.bf16 %v9756_v11, %v9750_v31 }
 0xbb3   :  { %6614 = vmatpush3.bf16.xpose.msra.mxu0 %v10169_v62 }
 0xbb4   :  { %6863 = vmatprep.subr.msk.bf16.mxu0 %vm150_vm0, %v9593_v48  ;;  %v7484_v48 = vld [vmem:[#allocation6 + $0x10] sm:$0xff] }
 0xbbb   :  { %6616 = vmatpush3.bf16.xpose.msra.mxu0 %v10170_v12 }
 0xbbc   :  { %6864 = vmatprep.subr.msk.bf16.mxu0 %vm150_vm0, %v9600_v33 }
 0xbc3   :  { %6618 = vmatpush3.bf16.xpose.msra.mxu0 %v10171_v52 }
 0xbc4   :  { %6865 = vmatprep.subr.msk.bf16.mxu0 %vm150_vm0, %v9607_v34  ;;  %v7485_v34 = vld [vmem:[#allocation6 + $0x18] sm:$0xff] }
 0xbcb   :  { %6620 = vmatpush3.bf16.xpose.msra.mxu0 %v10172_v42 }
 0xbcc   :  { %6866 = vmatprep.subr.msk.bf16.mxu0 %vm150_vm0, %v9614_v39 }
 0xbd3   :  { %6622 = vmatpush3.bf16.xpose.msra.mxu0 %v10173_v35 }
 0xbda   :  { %6624 = vmatmul.mubr.msk.bf16.vlgmr.msra.gmra.mrb[144].mxu0 %vm150_vm0, %v4650_v19  ;;  %v10178_v19 = vpack.c.bf16 %v9764_v53, %v9760_v51  ;;  %v7486_v51 = vld [vmem:[#allocation6 + $0x20] sm:$0xff] }
 0xbdb   :  { %6627 = vmatprep.mubr.msk.bf16.mxu0 %vm150_vm0, %v4651_v14 }
 0xbe2   :  { %6628 = vmatmul.mubr.msk.bf16.gmra.mrb[148].mxu0 %vm150_vm0, %v10174_v6 }
 0xbe3   :  { %6631 = vmatprep.mubr.msk.bf16.mxu0 %vm150_vm0, %v10175_v26 }
 0xbea   :  { %6632 = vmatmul.mubr.msk.bf16.gmra.mrb[152].mxu0 %vm150_vm0, %v10176_v21 }
 0xbeb   :  { %6635 = vmatprep.mubr.msk.bf16.mxu0 %vm150_vm0, %v10177_v59 }
 0xbf2   :  { %6636 = vmatmul.mubr.msk.bf16.gmra.mrb[156].mxu0 %vm150_vm0, %v10178_v19 }
 0xc0e   :  { %v6645_v36 = vpop.f32.mrb[224].mxu1 }
 0xc0f   :  { %v4973_v5 = vpop.f32.mrb[225].mxu1 }
 0xc10   :  { %v6646_v30 = vpop.f32.mrb[226].mxu1 }
 0xc11   :  { %v5045_v22 = vpack.c.bf16 %v6646_v30, %v6645_v36  ;;  %v4976_v62 = vpop.f32.mrb[227].mxu1 }
 0xc12   :  { %v5044_v12 = vpack.c.bf16 %v4976_v62, %v4973_v5 }
 0xc14   :  { %6659 = vmatprep.subr.bf16.mxu0 %v5044_v12 }
 0xc15   :  { %6660 = vmatpush3.bf16.msra.mxu0 %v5044_v12 }
 0xc16   :  { %v6649_v52 = vpop.f32.mrb[228].mxu1  ;;  %6661 = vmatprep.subr.bf16.mxu0 %v5045_v22 }
 0xc17   :  { %v4989_v42 = vpop.f32.mrb[229].mxu1 }
 0xc18   :  { %v6650_v35 = vpop.f32.mrb[230].mxu1 }
 0xc19   :  { %v5047_v6 = vpack.c.bf16 %v6650_v35, %v6649_v52  ;;  %v4992_v26 = vpop.f32.mrb[231].mxu1  ;;  %6662 = vmatpush3.bf16.msra.mxu0 %v5045_v22 }
 0xc1a   :  { %v5046_v21 = vpack.c.bf16 %v4992_v26, %v4989_v42 }
 0xc1c   :  { %6663 = vmatprep.subr.bf16.mxu0 %v5046_v21 }
 0xc1d   :  { %6664 = vmatpush3.bf16.msra.mxu0 %v5046_v21 }
 0xc1e   :  { %v6653_v59 = vpop.f32.mrb[232].mxu1  ;;  %6665 = vmatprep.subr.bf16.mxu0 %v5047_v6 }
 0xc1f   :  { %v5005_v19 = vpop.f32.mrb[233].mxu1 }
 0xc20   :  { %v6654_v50 = vpop.f32.mrb[234].mxu1 }
 0xc21   :  { %6666 = vmatpush3.bf16.msra.mxu0 %v5047_v6 }
 0xcad   :  { %v6625_v8 = vpop.f32.mrb[144].mxu0 }
 0xcae   :  { %v4715_v9 = vpop.f32.mrb[145].mxu0  ;;  %v9861_v33 = vadd.f32 %v7484_v48, %v6625_v8 }
 0xcaf   :  { %v9856_v14 = vadd.f32 %v7482_v56, %v4715_v9  ;;  %v6626_v49 = vpop.f32.mrb[146].mxu0  ;;  %v5049_v9 = vpack.c.bf16 %v6654_v50, %v6653_v59  ;;  %v5008_v56 = vpop.f32.mrb[235].mxu1 }
 0xcb0   :  { %v4718_v2 = vpop.f32.mrb[147].mxu0  ;;  %v9864_v61 = vadd.f32 %v7485_v34, %v6626_v49 }
 0xcb1   :  { %v9858_v31 = vadd.f32 %v7483_v17, %v4718_v2  ;;  %4778 = vmax.xlane.f32.xlu0 %v9856_v14  ;;  %v5048_v2 = vpack.c.bf16 %v5008_v56, %v5005_v19 }
 0xcb3   :  { %4780 = vmax.xlane.f32.xlu1 %v9858_v31  ;;  %6667 = vmatprep.subr.bf16.mxu0 %v5048_v2 }
 0xcb4   :  { %6668 = vmatpush3.bf16.msra.mxu0 %v5048_v2 }
 0xcb5   :  { %v6629_v39 = vpop.f32.mrb[148].mxu0  ;;  %4782 = vmax.xlane.f32.xlu0 %v9861_v33  ;;  %6669 = vmatprep.subr.bf16.mxu0 %v5049_v9 }
 0xcb6   :  { %v4731_v11 = vpop.f32.mrb[149].mxu0  ;;  %v9873_v0 = vadd.f32 %v7488_v3, %v6629_v39 }
 0xcb7   :  { %v9867_v40 = vadd.f32 %v7486_v51, %v4731_v11  ;;  %v6630_v53 = vpop.f32.mrb[150].mxu0  ;;  %4784 = vmax.xlane.f32.xlu1 %v9864_v61 }
 0xcb8   :  { %v4734_v32 = vpop.f32.mrb[151].mxu0  ;;  %v9876_v57 = vadd.f32 %v7489_v58, %v6630_v53  ;;  %v9907_v53 = vpop.f32.mrb[236].mxu1  ;;  %6670 = vmatpush3.bf16.msra.mxu0 %v5049_v9 }
 0xcb9   :  { %v9870_v37 = vadd.f32 %v7487_v4, %v4734_v32  ;;  %4786 = vmax.xlane.f32.xlu0 %v9867_v40  ;;  %v9910_v4 = vpop.f32.mrb[237].mxu1 }
 0xcba   :  { %v6658_v59 = vpop.f32.mrb[238].mxu1 }
 0xcbb   :  { %4788 = vmax.xlane.f32.xlu1 %v9870_v37 }
 0xcbd   :  { %v6633_v27 = vpop.f32.mrb[152].mxu0  ;;  %4790 = vmax.xlane.f32.xlu0 %v9873_v0 }
 0xcbe   :  { %v4747_v28 = vpop.f32.mrb[153].mxu0  ;;  %v9885_v15 = vadd.f32 %v7492_v47, %v6633_v27 }
 0xcbf   :  { %v9879_v55 = vadd.f32 %v7490_v41, %v4747_v28  ;;  %v6634_v43 = vpop.f32.mrb[154].mxu0  ;;  %4792 = vmax.xlane.f32.xlu1 %v9876_v57 }
 0xcc0   :  { %v4750_v13 = vpop.f32.mrb[155].mxu0  ;;  %v9888_v29 = vadd.f32 %v7493_v45, %v6634_v43 }
 0xcc1   :  { %v9882_v20 = vadd.f32 %v7491_v25, %v4750_v13  ;;  %4794 = vmax.xlane.f32.xlu0 %v9879_v55 }
 0xcc3   :  { %4796 = vmax.xlane.f32.xlu1 %v9882_v20 }
 0xcc5   :  { %v6637_v63 = vpop.f32.mrb[156].mxu0  ;;  %4798 = vmax.xlane.f32.xlu0 %v9885_v15 }
 0xcc6   :  { %v4763_v24 = vpop.f32.mrb[157].mxu0  ;;  %v9897_v7 = vadd.f32 %v7496_v1, %v6637_v63 }
 0xcc7   :  { %v9891_v18 = vadd.f32 %v7494_v23, %v4763_v24  ;;  %v6638_v38 = vpop.f32.mrb[158].mxu0  ;;  %4800 = vmax.xlane.f32.xlu1 %v9888_v29 }
 0xcc8   :  { %v4766_v10 = vpop.f32.mrb[159].mxu0  ;;  %v9900_v16 = vadd.f32 %v7497_v54, %v6638_v38 }
 0xcc9   :  { %v9894_v60 = vadd.f32 %v7495_v46, %v4766_v10  ;;  %4802 = vmax.xlane.f32.xlu0 %v9891_v18 }
 0xccb   :  { %4804 = vmax.xlane.f32.xlu1 %v9894_v60 }
 0xccd   :  { %4806 = vmax.xlane.f32.xlu0 %v9897_v7 }
 0xccf   :  { %4808 = vmax.xlane.f32.xlu1 %v9900_v16 }
 0xd3e   :  { %v4779_v44 = vpop.xlane.xlu0 %4778 }
 0xd3f   :  { %v4810_v8 = vsub.f32 %v9856_v14, %v4779_v44 }
 0xd40   :  { %v4781_v49 = vpop.xlane.xlu1 %4780 }
 0xd41   :  { %v4826_v17 = vmul.f32 1.442695, %v4810_v8  ;;  %v4811_v48 = vsub.f32 %v9858_v31, %v4781_v49  ;;  %v5024_v8 = vpop.f32.mrb[239].mxu1 }
 0xd42   :  { %v4783_v34 = vpop.xlane.xlu0 %4782  ;;  %v5050_v9 = vpack.c.bf16 %v5024_v8, %v9910_v4 }
 0xd43   :  { %7362 = vpow2.f32 %v4826_v17  ;;  %v4828_v39 = vmul.f32 1.442695, %v4811_v48  ;;  %v4812_v11 = vsub.f32 %v9861_v33, %v4783_v34 }
 0xd44   :  { %v4785_v51 = vpop.xlane.xlu1 %4784  ;;  %6671 = vmatprep.subr.bf16.mxu0 %v5050_v9 }
 0xd45   :  { %7364 = vpow2.f32 %v4828_v39  ;;  %v4830_v14 = vmul.f32 1.442695, %v4812_v11  ;;  %v4813_v32 = vsub.f32 %v9864_v61, %v4785_v51  ;;  %6672 = vmatpush3.bf16.msra.mxu0 %v5050_v9 }
 0xd46   :  { %v4787_v3 = vpop.xlane.xlu0 %4786 }
 0xd47   :  { %7366 = vpow2.f32 %v4830_v14  ;;  %v4832_v31 = vmul.f32 1.442695, %v4813_v32  ;;  %v4814_v58 = vsub.f32 %v9867_v40, %v4787_v3 }
 0xd48   :  { %v4789_v27 = vpop.xlane.xlu1 %4788 }
 0xd49   :  { %7368 = vpow2.f32 %v4832_v31  ;;  %v4834_v33 = vmul.f32 1.442695, %v4814_v58  ;;  %v4815_v28 = vsub.f32 %v9870_v37, %v4789_v27 }
 0xd4a   :  { %v4791_v41 = vpop.xlane.xlu0 %4790 }
 0xd4b   :  { %7370 = vpow2.f32 %v4834_v33  ;;  %v4836_v43 = vmul.f32 1.442695, %v4815_v28  ;;  %v4816_v13 = vsub.f32 %v9873_v0, %v4791_v41 }
 0xd4c   :  { %v4793_v25 = vpop.xlane.xlu1 %4792 }
 0xd4d   :  { %v9915_v61 = vpop.eup %7362  ;;  %7372 = vpow2.f32 %v4836_v43  ;;  %v4838_v47 = vmul.f32 1.442695, %v4816_v13  ;;  %v4817_v45 = vsub.f32 %v9876_v57, %v4793_v25 }
 0xd4e   :  { %4858 = vadd.xlane.f32.xlu0 %v9915_v61  ;;  %v4795_v40 = vpop.xlane.xlu0 %4794 }
 0xd4f   :  { %v9919_v63 = vpop.eup %7364  ;;  %7374 = vpow2.f32 %v4838_v47  ;;  %v4840_v24 = vmul.f32 1.442695, %v4817_v45  ;;  %v4818_v37 = vsub.f32 %v9879_v55, %v4795_v40 }
 0xd50   :  { %4860 = vadd.xlane.f32.xlu1 %v9919_v63  ;;  %v4797_v23 = vpop.xlane.xlu1 %4796 }
 0xd51   :  { %v9923_v0 = vpop.eup %7366  ;;  %7376 = vpow2.f32 %v4840_v24  ;;  %v4842_v38 = vmul.f32 1.442695, %v4818_v37  ;;  %v4819_v10 = vsub.f32 %v9882_v20, %v4797_v23 }
 0xd52   :  { %4862 = vadd.xlane.f32.xlu0 %v9923_v0  ;;  %v4799_v57 = vpop.xlane.xlu0 %4798 }
 0xd53   :  { %v9927_v46 = vpop.eup %7368  ;;  %7378 = vpow2.f32 %v4842_v38  ;;  %v4844_v1 = vmul.f32 1.442695, %v4819_v10  ;;  %v4820_v54 = vsub.f32 %v9885_v15, %v4799_v57 }
 0xd54   :  { %4864 = vadd.xlane.f32.xlu1 %v9927_v46  ;;  %v4801_v55 = vpop.xlane.xlu1 %4800 }
 0xd55   :  { %v9931_v36 = vpop.eup %7370  ;;  %7380 = vpow2.f32 %v4844_v1  ;;  %v4846_v5 = vmul.f32 1.442695, %v4820_v54  ;;  %v4821_v30 = vsub.f32 %v9888_v29, %v4801_v55 }
 0xd56   :  { %4866 = vadd.xlane.f32.xlu0 %v9931_v36  ;;  %v4803_v20 = vpop.xlane.xlu0 %4802 }
 0xd57   :  { %v9935_v22 = vpop.eup %7372  ;;  %7382 = vpow2.f32 %v4846_v5  ;;  %v4848_v62 = vmul.f32 1.442695, %v4821_v30  ;;  %v4822_v12 = vsub.f32 %v9891_v18, %v4803_v20 }
 0xd58   :  { %4868 = vadd.xlane.f32.xlu1 %v9935_v22  ;;  %v4805_v15 = vpop.xlane.xlu1 %4804 }
 0xd59   :  { %v9939_v52 = vpop.eup %7374  ;;  %7384 = vpow2.f32 %v4848_v62  ;;  %v4850_v42 = vmul.f32 1.442695, %v4822_v12  ;;  %v4823_v35 = vsub.f32 %v9894_v60, %v4805_v15  ;;  %v5051_v60 = vpack.c.bf16 %v6658_v59, %v9907_v53 }
 0xd5a   :  { %4870 = vadd.xlane.f32.xlu0 %v9939_v52  ;;  %v4807_v29 = vpop.xlane.xlu0 %4806 }
 0xd5b   :  { %v9943_v6 = vpop.eup %7376  ;;  %7386 = vpow2.f32 %v4850_v42  ;;  %v4852_v26 = vmul.f32 1.442695, %v4823_v35  ;;  %v4824_v21 = vsub.f32 %v9897_v7, %v4807_v29  ;;  %6673 = vmatprep.subr.bf16.mxu0 %v5051_v60 }
 0xd5c   :  { %4872 = vadd.xlane.f32.xlu1 %v9943_v6  ;;  %v4809_v18 = vpop.xlane.xlu1 %4808  ;;  %6674 = vmatpush3.bf16.msra.mxu0 %v5051_v60 }
 0xd5d   :  { %v9947_v19 = vpop.eup %7378  ;;  %7388 = vpow2.f32 %v4852_v26  ;;  %v4854_v44 = vmul.f32 1.442695, %v4824_v21  ;;  %v4825_v50 = vsub.f32 %v9900_v16, %v4809_v18 }
 0xd5e   :  { %4874 = vadd.xlane.f32.xlu0 %v9947_v19 }
 0xd5f   :  { %v9953_v56 = vpop.eup %7380  ;;  %7390 = vpow2.f32 %v4854_v44  ;;  %v4856_v7 = vmul.f32 1.442695, %v4825_v50 }
 0xd60   :  { %4876 = vadd.xlane.f32.xlu1 %v9953_v56 }
 0xd61   :  { %v9956_v49 = vpop.eup %7382  ;;  %7392 = vpow2.f32 %v4856_v7 }
 0xd62   :  { %4878 = vadd.xlane.f32.xlu0 %v9956_v49 }
 0xd63   :  { %v9959_v16 = vpop.eup %7384 }
 0xd64   :  { %4880 = vadd.xlane.f32.xlu1 %v9959_v16 }
 0xd65   :  { %v9962_v2 = vpop.eup %7386 }
 0xd66   :  { %4882 = vadd.xlane.f32.xlu0 %v9962_v2 }
 0xd67   :  { %v9965_v17 = vpop.eup %7388 }
 0xd68   :  { %4884 = vadd.xlane.f32.xlu1 %v9965_v17 }
 0xd69   :  { %v9968_v48 = vpop.eup %7390 }
 0xd6a   :  { %4886 = vadd.xlane.f32.xlu0 %v9968_v48 }
 0xd6b   :  { %v9971_v34 = vpop.eup %7392 }
 0xd6c   :  { %4888 = vadd.xlane.f32.xlu1 %v9971_v34 }
 0xddb   :  { %v4859_v39 = vpop.xlane.xlu0 %4858 }
 0xddc   :  { %7394 = vrcp.f32 %v4859_v39 }
 0xddd   :  { %v4861_v11 = vpop.xlane.xlu1 %4860 }
 0xdde   :  { %7396 = vrcp.f32 %v4861_v11 }
 0xddf   :  { %v4863_v51 = vpop.xlane.xlu0 %4862 }
 0xde0   :  { %7398 = vrcp.f32 %v4863_v51 }
 0xde1   :  { %v4865_v53 = vpop.xlane.xlu1 %4864 }
 0xde2   :  { %7400 = vrcp.f32 %v4865_v53 }
 0xde3   :  { %v4867_v14 = vpop.xlane.xlu0 %4866 }
 0xde4   :  { %7402 = vrcp.f32 %v4867_v14 }
 0xde5   :  { %v4869_v32 = vpop.xlane.xlu1 %4868 }
 0xde6   :  { %v7395_v4 = vpop.eup %7394  ;;  %7404 = vrcp.f32 %v4869_v32 }
 0xde7   :  { %v4871_v3 = vpop.xlane.xlu0 %4870  ;;  %v4906_v27 = vmul.f32 %v7395_v4, %v9915_v61 }
 0xde8   :  { %v7397_v31 = vpop.eup %7396  ;;  %7406 = vrcp.f32 %v4871_v3 }
 0xde9   :  { %v4873_v58 = vpop.xlane.xlu1 %4872  ;;  %v4907_v33 = vmul.f32 %v7397_v31, %v9919_v63 }
 0xdea   :  { %v7399_v28 = vpop.eup %7398  ;;  %7408 = vrcp.f32 %v4873_v58 }
 0xdeb   :  { %v4875_v41 = vpop.xlane.xlu0 %4874  ;;  %v5036_v43 = vpack.c.bf16 %v4907_v33, %v4906_v27  ;;  %v4908_v25 = vmul.f32 %v7399_v28, %v9923_v0 }
 0xdec   :  { %v7401_v13 = vpop.eup %7400  ;;  %7410 = vrcp.f32 %v4875_v41 }
 0xded   :  { %v4909_v47 = vmul.f32 %v7401_v13, %v9927_v46  ;;  %v4877_v45 = vpop.xlane.xlu1 %4876  ;;  %6675 = vmatprep.mubr.bf16.mxu0 %v5036_v43 }
 0xdee   :  { %v7403_v40 = vpop.eup %7402  ;;  %7412 = vrcp.f32 %v4877_v45 }
 0xdef   :  { %v4879_v24 = vpop.xlane.xlu0 %4878  ;;  %v5037_v37 = vpack.c.bf16 %v4909_v47, %v4908_v25  ;;  %v4910_v63 = vmul.f32 %v7403_v40, %v9931_v36 }
 0xdf0   :  { %v7405_v23 = vpop.eup %7404  ;;  %7414 = vrcp.f32 %v4879_v24 }
 0xdf1   :  { %v4881_v61 = vpop.xlane.xlu1 %4880  ;;  %6676 = vmatmul.mubr.bf16.vlgmr.msra.gmra.mrb[48].mxu0 %v5037_v37  ;;  %v4911_v38 = vmul.f32 %v7405_v23, %v9935_v22 }
 0xdf2   :  { %v7407_v10 = vpop.eup %7406  ;;  %7416 = vrcp.f32 %v4881_v61 }
 0xdf3   :  { %v4883_v57 = vpop.xlane.xlu0 %4882  ;;  %v5038_v0 = vpack.c.bf16 %v4911_v38, %v4910_v63  ;;  %v4912_v54 = vmul.f32 %v7407_v10, %v9939_v52 }
 0xdf4   :  { %v7409_v1 = vpop.eup %7408  ;;  %7418 = vrcp.f32 %v4883_v57 }
 0xdf5   :  { %v4885_v46 = vpop.xlane.xlu1 %4884  ;;  %6679 = vmatprep.mubr.bf16.mxu0 %v5038_v0  ;;  %v4913_v55 = vmul.f32 %v7409_v1, %v9943_v6 }
 0xdf6   :  { %v7411_v5 = vpop.eup %7410  ;;  %7420 = vrcp.f32 %v4885_v46 }
 0xdf7   :  { %v4887_v30 = vpop.xlane.xlu0 %4886  ;;  %v5039_v20 = vpack.c.bf16 %v4913_v55, %v4912_v54  ;;  %v4914_v22 = vmul.f32 %v7411_v5, %v9947_v19 }
 0xdf8   :  { %v7413_v62 = vpop.eup %7412  ;;  %7422 = vrcp.f32 %v4887_v30 }
 0xdf9   :  { %v4889_v36 = vpop.xlane.xlu1 %4888  ;;  %6680 = vmatmul.mubr.bf16.gmra.mrb[52].mxu0 %v5039_v20  ;;  %v4915_v12 = vmul.f32 %v7413_v62, %v9953_v56  ;;  %v5442_v56 = vld [vmem:[%s10061_s4] ss:$0 sm:$0xff] }
 0xdfa   :  { %v7415_v15 = vpop.eup %7414  ;;  %7424 = vrcp.f32 %v4889_v36 }
 0xdfb   :  { %v5040_v42 = vpack.c.bf16 %v4915_v12, %v4914_v22  ;;  %v4916_v52 = vmul.f32 %v7415_v15, %v9956_v49 }
 0xdfc   :  { %v7417_v35 = vpop.eup %7416 }
 0xdfd   :  { %6683 = vmatprep.mubr.bf16.mxu0 %v5040_v42  ;;  %v4917_v29 = vmul.f32 %v7417_v35, %v9959_v16 }
 0xdfe   :  { %v7419_v6 = vpop.eup %7418 }
 0xdff   :  { %v5041_v26 = vpack.c.bf16 %v4917_v29, %v4916_v52  ;;  %v4918_v18 = vmul.f32 %v7419_v6, %v9962_v2 }
 0xe00   :  { %v7421_v21 = vpop.eup %7420 }
 0xe01   :  { %6684 = vmatmul.mubr.bf16.gmra.mrb[56].mxu0 %v5041_v26  ;;  %v4919_v59 = vmul.f32 %v7421_v21, %v9965_v17 }
 0xe02   :  { %v7423_v19 = vpop.eup %7422 }
 0xe03   :  { %v5042_v44 = vpack.c.bf16 %v4919_v59, %v4918_v18  ;;  %v4920_v60 = vmul.f32 %v7423_v19, %v9968_v48 }
 0xe04   :  { %v7425_v50 = vpop.eup %7424 }
 0xe05   :  { %6687 = vmatprep.mubr.bf16.mxu0 %v5042_v44  ;;  %v4921_v8 = vmul.f32 %v7425_v50, %v9971_v34 }
 0xe07   :  { %v5043_v9 = vpack.c.bf16 %v4921_v8, %v4920_v60 }
 0xe09   :  { %6688 = vmatmul.mubr.bf16.gmra.mrb[60].mxu0 %v5043_v9 }
 0xec4   :  { %v6677_v7 = vpop.f32.mrb[48].mxu0 }
 0xec5   :  { %v5174_v49 = vadd.f32 %v6677_v7, %v5442_v56  ;;  %v5086_v16 = vpop.f32.mrb[49].mxu0 }
 0xec6   :  { %v5172_v2 = vadd.f32 %v5442_v56, %v5086_v16  ;;  %v6678_v39 = vpop.f32.mrb[50].mxu0 }
 0xec7   :  { %5190 = vst.msk [vmem:[%s10062_s5 + $0x10] sm:$0xff] %vm150_vm0, %v5174_v49  ;;  %v5175_v17 = vadd.f32 %v6678_v39, %v5442_v56  ;;  %v5089_v48 = vpop.f32.mrb[51].mxu0 }
 0xec8   :  { %5188 = vst.msk [vmem:[%s10062_s5] sm:$0xff] %vm150_vm0, %v5172_v2  ;;  %v5173_v34 = vadd.f32 %v5442_v56, %v5089_v48 }
 0xec9   :  { %5191 = vst.msk [vmem:[%s10062_s5 + $0x18] sm:$0xff] %vm150_vm0, %v5175_v17 }
 0xeca   :  { %5189 = vst.msk [vmem:[%s10062_s5 + $0x8] sm:$0xff] %vm150_vm0, %v5173_v34 }
 0xecc   :  { %v6681_v11 = vpop.f32.mrb[52].mxu0 }
 0xecd   :  { %v5178_v51 = vadd.f32 %v6681_v11, %v5442_v56  ;;  %v5102_v53 = vpop.f32.mrb[53].mxu0 }
 0xece   :  { %v5176_v14 = vadd.f32 %v5442_v56, %v5102_v53  ;;  %v6682_v32 = vpop.f32.mrb[54].mxu0 }
 0xecf   :  { %5194 = vst.msk [vmem:[%s10062_s5 + $0x30] sm:$0xff] %vm150_vm0, %v5178_v51  ;;  %v5179_v4 = vadd.f32 %v6682_v32, %v5442_v56  ;;  %v5105_v3 = vpop.f32.mrb[55].mxu0 }
 0xed0   :  { %5192 = vst.msk [vmem:[%s10062_s5 + $0x20] sm:$0xff] %vm150_vm0, %v5176_v14  ;;  %v5177_v31 = vadd.f32 %v5442_v56, %v5105_v3 }
 0xed1   :  { %5195 = vst.msk [vmem:[%s10062_s5 + $0x38] sm:$0xff] %vm150_vm0, %v5179_v4 }
 0xed2   :  { %5193 = vst.msk [vmem:[%s10062_s5 + $0x28] sm:$0xff] %vm150_vm0, %v5177_v31 }
 0xed4   :  { %v6685_v58 = vpop.f32.mrb[56].mxu0 }
 0xed5   :  { %v5182_v27 = vadd.f32 %v6685_v58, %v5442_v56  ;;  %v5118_v33 = vpop.f32.mrb[57].mxu0 }
 0xed6   :  { %v5180_v28 = vadd.f32 %v5442_v56, %v5118_v33  ;;  %v6686_v41 = vpop.f32.mrb[58].mxu0 }
 0xed7   :  { %5198 = vst.msk [vmem:[%s10062_s5 + $0x50] sm:$0xff] %vm150_vm0, %v5182_v27  ;;  %v5183_v43 = vadd.f32 %v6686_v41, %v5442_v56  ;;  %v5121_v13 = vpop.f32.mrb[59].mxu0 }
 0xed8   :  { %5196 = vst.msk [vmem:[%s10062_s5 + $0x40] sm:$0xff] %vm150_vm0, %v5180_v28  ;;  %v5181_v25 = vadd.f32 %v5442_v56, %v5121_v13 }
 0xed9   :  { %5199 = vst.msk [vmem:[%s10062_s5 + $0x58] sm:$0xff] %vm150_vm0, %v5183_v43 }
 0xeda   :  { %5197 = vst.msk [vmem:[%s10062_s5 + $0x48] sm:$0xff] %vm150_vm0, %v5181_v25 }
 0xedc   :  { %v6689_v47 = vpop.f32.mrb[60].mxu0 }
 0xedd   :  { %v5186_v45 = vadd.f32 %v6689_v47, %v5442_v56  ;;  %v5134_v40 = vpop.f32.mrb[61].mxu0 }
 0xede   :  { %v5184_v24 = vadd.f32 %v5442_v56, %v5134_v40  ;;  %v6690_v37 = vpop.f32.mrb[62].mxu0 }
 0xedf   :  { %5202 = vst.msk [vmem:[%s10062_s5 + $0x70] sm:$0xff] %vm150_vm0, %v5186_v45  ;;  %v5187_v23 = vadd.f32 %v6690_v37, %v5442_v56  ;;  %v5137_v61 = vpop.f32.mrb[63].mxu0 }
 0xee0   :  { %5200 = vst.msk [vmem:[%s10062_s5 + $0x60] sm:$0xff] %vm150_vm0, %v5184_v24  ;;  %v5185_v63 = vadd.f32 %v5442_v56, %v5137_v61 }
 0xee1   :  { %5203 = vst.msk [vmem:[%s10062_s5 + $0x78] sm:$0xff] %vm150_vm0, %v5187_v23 }
 0xee2   :  { %5201 = vst.msk [vmem:[%s10062_s5 + $0x68] sm:$0xff] %vm150_vm0, %v5185_v63 }
 0xee3   :  { %5208 = vsyncpa [#allocation3], 1 }
 0xee4   :  { %5209 = vsyncpa [#allocation5], 1 }

</bundles_post_ra>
